<compile_context>
chip_gen: v7x
topology: tpu7x:2x2x1
jax: 0.10.0
libtpu: 0.0.40
codegen_flags: <defaults>
</compile_context>

<pallas_src>
import functools

import jax
import jax.numpy as jnp
from jax import lax
from jax.experimental import pallas as pl
from jax.experimental.pallas import tpu as pltpu


# ----------------------------------------------------------------------------
# MXU helpers: bf16 inputs, f32 accumulation.
# ----------------------------------------------------------------------------
def _mm(a, w_bf16):
    """a @ w  (weights are already bf16; only the activation is cast)."""
    return jnp.dot(a.astype(jnp.bfloat16), w_bf16,
                   preferred_element_type=jnp.float32)


def _mm_t(a, b):
    """a.T @ b as a transposed contraction (no transpose materialized)."""
    return lax.dot_general(a.astype(jnp.bfloat16), b.astype(jnp.bfloat16),
                           (((0,), (0,)), ((), ())),
                           preferred_element_type=jnp.float32)


# ----------------------------------------------------------------------------
# Fused forward kernel: one grid step == one tile of TB batch elements.
# ----------------------------------------------------------------------------
def _fused_forward_kernel(*refs, tb, n_ae, n_dec, dec_out):
    it = iter(refs)
    x_ref = next(it)                        # (TB, C, N) input slice, channels first
    ew1, eb1 = next(it), next(it)           # encoder per-point projection
    mw, mb = next(it), next(it)             # MPVCNN2 per-point projection (frozen)
    ew2, eb2 = next(it), next(it)           # encoder latent projection
    ae = [(next(it), next(it)) for _ in range(n_ae)]
    dec = [(next(it), next(it)) for _ in range(n_dec)]
    fw, fb = next(it), next(it)             # weighted_fusion_linear (scale pre-folded)
    o_ref = next(it)                        # (TB, C2, N) output block

    N = o_ref.shape[2]

    # -- Per-point front-end: contract x's channel axis directly (no x.T) ----
    # TODO(synk): Encoder / MPVCNN2 sources not provided; synthesized as a
    # shared per-point MLP (+ max-pool + linear) and a frozen per-point 1x1 conv.
    enc_pools, f_means = [], []
    for b in range(tb):
        xb = x_ref[b]                                                # (C, N)
        h_enc = jnp.maximum(_mm_t(xb, ew1[...]) + eb1[...], 0.0)     # (N, EH)
        feat = jnp.maximum(_mm_t(xb, mw[...]) + mb[...], 0.0)        # (N, C)
        enc_pools.append(jnp.max(h_enc, axis=0, keepdims=True))      # (1, EH)
        # adaptive_avg_pool1d(features, 1) + flatten == mean over points.
        f_means.append(jnp.mean(feat, axis=0, keepdims=True))        # (1, C)

    enc_pool = jnp.concatenate(enc_pools, axis=0)                    # (TB, EH)
    f_mean = jnp.concatenate(f_means, axis=0)                        # (TB, C)

    encoded = _mm(enc_pool, ew2[...]) + eb2[...]                     # (TB, L)

    # -- AE MLP: Linear -> Dropout(identity) -> ReLU, batched over the tile --
    z = f_mean
    for w_ref, b_ref in ae:
        z = jnp.maximum(_mm(z, w_ref[...]) + b_ref[...], 0.0)        # (TB, .)

    # -- Decoder (shared weights): all 2*TB latents decoded in one pass ------
    # TODO(synk): Decoder source not provided; synthesized as an MLP emitting
    # N*dec_out values per latent (channel-major layout).
    h = jnp.concatenate([z, encoded], axis=0)                        # (2*TB, L)
    for i, (w_ref, b_ref) in enumerate(dec):
        h = _mm(h, w_ref[...]) + b_ref[...]
        if i < n_dec - 1:
            h = jnp.maximum(h, 0.0)                                  # (2*TB, N*dec_out)

    # Single reshape -> channel-major rows.  Rows [b*dec_out:(b+1)*dec_out]
    # are element b's mpv-reconstruction channels, rows starting at
    # (tb+b)*dec_out its encoder-reconstruction channels — the same order as
    # torch.cat([rec_mpv, rec_enc], dim=2).transpose(2, 1).
    hr = h.reshape(2 * tb * dec_out, N)

    # -- Weighted-fusion attention: one (N, N) problem per element -----------
    # TODO(synk): if num_points >> 128, tile this over the key axis with an
    # online softmax instead of materializing full (N, N) f32 score blocks.
    for b in range(tb):
        cf = jnp.concatenate(
            [hr[b * dec_out:(b + 1) * dec_out],
             hr[(tb + b) * dec_out:(tb + b + 1) * dec_out]], axis=0)  # (C2, N)
        aw = _mm(cf, fw[...]) + fb[...]                               # (C2, N), scale folded in
        # s[n2, n1] = sum_c cf[c, n2] * aw[c, n1]; softmax over dim=1 of the
        # original (B, N, N) scores becomes the lane axis here.
        s = _mm_t(cf, aw)                                             # (N, N)
        s = s - jnp.max(s, axis=-1, keepdims=True)
        e = jnp.exp(s)
        p = e * pl.reciprocal(jnp.sum(e, axis=-1, keepdims=True), approx=True)
        # output_points[c, n1] = sum_n2 cf[c, n2] * p[n2, n1]   (no p.T).
        o_ref[b] = _mm(cf, p).astype(o_ref.dtype)
    # NOTE: at TB >= 32 a lane-dense (TB, C2*N) output layout would turn these
    # 6-sublane masked stores into full vst's; negligible at this size.


# ----------------------------------------------------------------------------
# Forward wrapper: a single pallas_call over batch tiles.
# ----------------------------------------------------------------------------
def point_cloud_autoencoder(params, input_points, num_points, *, max_batch_tile=32):
    B, C, Nin = input_points.shape
    assert num_points <= Nin, (num_points, Nin)
    N = num_points
    x = input_points[:, :, :N]                                       # (B, C, N)

    n_ae = len(params["ae"])
    n_dec = len(params["dec"])
    dec_out = params["dec"][-1][0].shape[1] // N
    C2 = 2 * dec_out
    scale = float(N) ** -0.5

    bf16 = lambda w: w.astype(jnp.bfloat16)          # pre-cast weights once, host side
    row = lambda b: b.reshape(1, -1).astype(jnp.float32)  # biases stay f32

    weights = [bf16(params["enc_w1"]), row(params["enc_b1"]),
               bf16(params["mpv_w"]), row(params["mpv_b"]),
               bf16(params["enc_w2"]), row(params["enc_b2"])]
    for w, b in params["ae"]:
        weights += [bf16(w), row(b)]
    for w, b in params["dec"]:
        weights += [bf16(w), row(b)]
    # Fold the attention scale N**-0.5 into the fusion linear.
    weights += [bf16(params["fuse_w"] * scale), row(params["fuse_b"] * scale)]

    # -- Batch tile: largest divisor of B within a per-element VMEM budget ---
    # Per element the attention temporaries (s, e, p) dominate: ~3*N*N*4 B.
    per_elem_bytes = 3 * N * N * 4 + 8 * C2 * N * 4
    act_budget = 12 * 1024 * 1024            # conservative: fits v5e/v7x scoped VMEM
    cap = max(1, min(max_batch_tile, act_budget // per_elem_bytes))
    tb = max(t for t in range(1, B + 1) if B % t == 0 and t <= cap)

    # Weights/biases are tiny (<0.5 MiB bf16): keep them fully VMEM-resident
    # across the whole grid via constant index maps.
    in_specs = [pl.BlockSpec((tb, C, N), lambda i: (i, 0, 0))]
    in_specs += [pl.BlockSpec(w.shape, lambda i: (0, 0)) for w in weights]

    kernel = functools.partial(_fused_forward_kernel, tb=tb, n_ae=n_ae,
                               n_dec=n_dec, dec_out=dec_out)

    return pl.pallas_call(
        kernel,
        out_shape=jax.ShapeDtypeStruct((B, C2, N), jnp.float32),
        grid=(B // tb,),
        in_specs=in_specs,
        out_specs=pl.BlockSpec((tb, C2, N), lambda i: (i, 0, 0)),
        compiler_params=pltpu.CompilerParams(
            # Batch tiles are independent.  On v7x, pltpu.CORE_PARALLEL on
            # this axis shards tiles across the two TensorCores.
            dimension_semantics=("parallel",),
            vmem_limit_bytes=32 * 1024 * 1024),   # explicit; safe on v5e/v6e/v7x
    )(x, *weights)


# ----------------------------------------------------------------------------
# Deterministic parameter init (weights stored (in, out); x @ w convention).
# ----------------------------------------------------------------------------
def init_params(key, C, L, N, hidden_ae, hidden_dec, dec_out_dim, enc_hidden=64):
    def lin(k, fan_in, fan_out):
        kw, kb = jax.random.split(k)
        w = jax.random.normal(kw, (fan_in, fan_out), jnp.float32) * (fan_in ** -0.5)
        b = 0.01 * jax.random.normal(kb, (fan_out,), jnp.float32)
        return w, b

    n_lin = 2 + 1 + (len(hidden_ae) + 1) + (len(hidden_dec) + 1) + 1
    keys = iter(jax.random.split(key, n_lin))

    params = {}
    # Encoder (synthetic stand-in)
    params["enc_w1"], params["enc_b1"] = lin(next(keys), C, enc_hidden)
    params["enc_w2"], params["enc_b2"] = lin(next(keys), enc_hidden, L)
    # MPVCNN2 (synthetic stand-in, frozen)
    params["mpv_w"], params["mpv_b"] = lin(next(keys), C, C)
    # AE MLP: [C] + hidden_ae + [L]
    ae_sizes = [C] + hidden_ae + [L]
    params["ae"] = [lin(next(keys), ae_sizes[i], ae_sizes[i + 1])
                    for i in range(len(ae_sizes) - 1)]
    # Decoder MLP: [L] + hidden_dec + [N * dec_out_dim]
    dec_sizes = [L] + hidden_dec + [N * dec_out_dim]
    params["dec"] = [lin(next(keys), dec_sizes[i], dec_sizes[i + 1])
                     for i in range(len(dec_sizes) - 1)]
    # weighted_fusion_linear: Linear(num_points, num_points)
    params["fuse_w"], params["fuse_b"] = lin(next(keys), N, N)
    return params


# ----------------------------------------------------------------------------
if __name__ == "__main__":
    B = 8                        # batch
    C = 8                        # num_input_features
    N = 128                      # num_points
    L = 64                       # num_latent_features
    hidden_ae = [16, 32, 64]     # hidden_sizes_AE (small)
    hidden_dec = [64, 128, 256]  # hidden_sizes_decoder (small)
    dec_out_dim = 3              # per-point decoder output (xyz)
    assert L >= hidden_ae[-1]

    key = jax.random.PRNGKey(0)
    pkey, xkey = jax.random.split(key)
    params = init_params(pkey, C, L, N, hidden_ae, hidden_dec, dec_out_dim)
    input_points = jax.random.normal(xkey, (B, C, N), jnp.float32)

    # max_batch_tile=4 -> tile of 4 elements per grid step, grid=(2,)
    out = point_cloud_autoencoder(params, input_points, N, max_batch_tile=4)
    out = jax.block_until_ready(out)
    assert out.shape == (B, 2 * dec_out_dim, N)
    assert bool(jnp.all(jnp.isfinite(out)))
    print("KERNEL_OK")
</pallas_src>

<mosaic_0001>
module attributes {stable_mosaic.version = 11 : i64} {
  func.func @_fused_forward_kernel(%arg0: i32, %arg1: memref<4x8x128xf32, #tpu.memory_space<vmem>>, %arg2: memref<8x64xbf16, #tpu.memory_space<vmem>>, %arg3: memref<1x64xf32, #tpu.memory_space<vmem>>, %arg4: memref<8x8xbf16, #tpu.memory_space<vmem>>, %arg5: memref<1x8xf32, #tpu.memory_space<vmem>>, %arg6: memref<64x64xbf16, #tpu.memory_space<vmem>>, %arg7: memref<1x64xf32, #tpu.memory_space<vmem>>, %arg8: memref<8x16xbf16, #tpu.memory_space<vmem>>, %arg9: memref<1x16xf32, #tpu.memory_space<vmem>>, %arg10: memref<16x32xbf16, #tpu.memory_space<vmem>>, %arg11: memref<1x32xf32, #tpu.memory_space<vmem>>, %arg12: memref<32x64xbf16, #tpu.memory_space<vmem>>, %arg13: memref<1x64xf32, #tpu.memory_space<vmem>>, %arg14: memref<64x64xbf16, #tpu.memory_space<vmem>>, %arg15: memref<1x64xf32, #tpu.memory_space<vmem>>, %arg16: memref<64x64xbf16, #tpu.memory_space<vmem>>, %arg17: memref<1x64xf32, #tpu.memory_space<vmem>>, %arg18: memref<64x128xbf16, #tpu.memory_space<vmem>>, %arg19: memref<1x128xf32, #tpu.memory_space<vmem>>, %arg20: memref<128x256xbf16, #tpu.memory_space<vmem>>, %arg21: memref<1x256xf32, #tpu.memory_space<vmem>>, %arg22: memref<256x384xbf16, #tpu.memory_space<vmem>>, %arg23: memref<1x384xf32, #tpu.memory_space<vmem>>, %arg24: memref<128x128xbf16, #tpu.memory_space<vmem>>, %arg25: memref<1x128xf32, #tpu.memory_space<vmem>>, %arg26: memref<4x6x128xf32, #tpu.memory_space<vmem>>) attributes {dimension_semantics = [#tpu.dimension_semantics<parallel>], iteration_bounds = array<i64: 2>, scalar_prefetch = 0 : i64, scratch_operands = 0 : i64, tpu.core_type = #tpu.core_type<tc>, window_params = [{transform_indices = @transform_0, window_bounds = array<i64: 4, 8, 128>}, {pipeline_mode = #tpu.pipeline_mode<synchronous>, transform_indices = @transform_1, window_bounds = array<i64: 8, 64>}, {pipeline_mode = #tpu.pipeline_mode<synchronous>, transform_indices = @transform_2, window_bounds = array<i64: 1, 64>}, {pipeline_mode = #tpu.pipeline_mode<synchronous>, transform_indices = @transform_3, window_bounds = array<i64: 8, 8>}, {pipeline_mode = #tpu.pipeline_mode<synchronous>, transform_indices = @transform_4, window_bounds = array<i64: 1, 8>}, {pipeline_mode = #tpu.pipeline_mode<synchronous>, transform_indices = @transform_5, window_bounds = array<i64: 64, 64>}, {pipeline_mode = #tpu.pipeline_mode<synchronous>, transform_indices = @transform_6, window_bounds = array<i64: 1, 64>}, {pipeline_mode = #tpu.pipeline_mode<synchronous>, transform_indices = @transform_7, window_bounds = array<i64: 8, 16>}, {pipeline_mode = #tpu.pipeline_mode<synchronous>, transform_indices = @transform_8, window_bounds = array<i64: 1, 16>}, {pipeline_mode = #tpu.pipeline_mode<synchronous>, transform_indices = @transform_9, window_bounds = array<i64: 16, 32>}, {pipeline_mode = #tpu.pipeline_mode<synchronous>, transform_indices = @transform_10, window_bounds = array<i64: 1, 32>}, {pipeline_mode = #tpu.pipeline_mode<synchronous>, transform_indices = @transform_11, window_bounds = array<i64: 32, 64>}, {pipeline_mode = #tpu.pipeline_mode<synchronous>, transform_indices = @transform_12, window_bounds = array<i64: 1, 64>}, {pipeline_mode = #tpu.pipeline_mode<synchronous>, transform_indices = @transform_13, window_bounds = array<i64: 64, 64>}, {pipeline_mode = #tpu.pipeline_mode<synchronous>, transform_indices = @transform_14, window_bounds = array<i64: 1, 64>}, {pipeline_mode = #tpu.pipeline_mode<synchronous>, transform_indices = @transform_15, window_bounds = array<i64: 64, 64>}, {pipeline_mode = #tpu.pipeline_mode<synchronous>, transform_indices = @transform_16, window_bounds = array<i64: 1, 64>}, {pipeline_mode = #tpu.pipeline_mode<synchronous>, transform_indices = @transform_17, window_bounds = array<i64: 64, 128>}, {pipeline_mode = #tpu.pipeline_mode<synchronous>, transform_indices = @transform_18, window_bounds = array<i64: 1, 128>}, {pipeline_mode = #tpu.pipeline_mode<synchronous>, transform_indices = @transform_19, window_bounds = array<i64: 128, 256>}, {pipeline_mode = #tpu.pipeline_mode<synchronous>, transform_indices = @transform_20, window_bounds = array<i64: 1, 256>}, {pipeline_mode = #tpu.pipeline_mode<synchronous>, transform_indices = @transform_21, window_bounds = array<i64: 256, 384>}, {pipeline_mode = #tpu.pipeline_mode<synchronous>, transform_indices = @transform_22, window_bounds = array<i64: 1, 384>}, {pipeline_mode = #tpu.pipeline_mode<synchronous>, transform_indices = @transform_23, window_bounds = array<i64: 128, 128>}, {pipeline_mode = #tpu.pipeline_mode<synchronous>, transform_indices = @transform_24, window_bounds = array<i64: 1, 128>}, {transform_indices = @transform_25, window_bounds = array<i64: 4, 6, 128>}]} {
    %c0 = arith.constant 0 : index
    %c0_0 = arith.constant 0 : index
    %c0_1 = arith.constant 0 : index
    %0 = vector.load %arg1[%c0, %c0_0, %c0_1] : memref<4x8x128xf32, #tpu.memory_space<vmem>>, vector<1x8x128xf32>
    %1 = vector.shape_cast %0 : vector<1x8x128xf32> to vector<8x128xf32>
    %c0_2 = arith.constant 0 : index
    %c0_3 = arith.constant 0 : index
    %2 = vector.load %arg2[%c0_2, %c0_3] : memref<8x64xbf16, #tpu.memory_space<vmem>>, vector<8x64xbf16>
    %3 = arith.truncf %1 : vector<8x128xf32> to vector<8x128xbf16>
    %cst = arith.constant dense<0.000000e+00> : vector<128x64xf32>
    %4 = tpu.matmul %3, %2, %cst {dimension_numbers = #tpu.dot_dimension_numbers<[0], [0], [1], [1], [0, 1, 1, 1], [], []>} : vector<8x128xbf16>, vector<8x64xbf16>, vector<128x64xf32> -> vector<128x64xf32>
    %c0_4 = arith.constant 0 : index
    %c0_5 = arith.constant 0 : index
    %5 = vector.load %arg3[%c0_4, %c0_5] : memref<1x64xf32, #tpu.memory_space<vmem>>, vector<1x64xf32>
    %6 = vector.broadcast %5 : vector<1x64xf32> to vector<128x64xf32>
    %7 = arith.addf %4, %6 : vector<128x64xf32>
    %cst_6 = arith.constant 0.000000e+00 : f32
    %8 = vector.broadcast %cst_6 : f32 to vector<128x64xf32>
    %9 = arith.maximumf %7, %8 : vector<128x64xf32>
    %c0_7 = arith.constant 0 : index
    %c0_8 = arith.constant 0 : index
    %10 = vector.load %arg4[%c0_7, %c0_8] : memref<8x8xbf16, #tpu.memory_space<vmem>>, vector<8x8xbf16>
    %11 = arith.truncf %1 : vector<8x128xf32> to vector<8x128xbf16>
    %cst_9 = arith.constant dense<0.000000e+00> : vector<128x8xf32>
    %12 = tpu.matmul %11, %10, %cst_9 {dimension_numbers = #tpu.dot_dimension_numbers<[0], [0], [1], [1], [0, 1, 1, 1], [], []>} : vector<8x128xbf16>, vector<8x8xbf16>, vector<128x8xf32> -> vector<128x8xf32>
    %c0_10 = arith.constant 0 : index
    %c0_11 = arith.constant 0 : index
    %13 = vector.load %arg5[%c0_10, %c0_11] : memref<1x8xf32, #tpu.memory_space<vmem>>, vector<1x8xf32>
    %14 = vector.broadcast %13 : vector<1x8xf32> to vector<128x8xf32>
    %15 = arith.addf %12, %14 : vector<128x8xf32>
    %cst_12 = arith.constant 0.000000e+00 : f32
    %16 = vector.broadcast %cst_12 : f32 to vector<128x8xf32>
    %17 = arith.maximumf %15, %16 : vector<128x8xf32>
    %cst_13 = arith.constant dense<0xFF800000> : vector<64xf32>
    %18 = vector.multi_reduction <maximumf>, %9, %cst_13 [0] : vector<128x64xf32> to vector<64xf32>
    %19 = vector.shape_cast %18 : vector<64xf32> to vector<1x64xf32>
    %cst_14 = arith.constant dense<0.000000e+00> : vector<8xf32>
    %20 = vector.multi_reduction <add>, %17, %cst_14 [0] : vector<128x8xf32> to vector<8xf32>
    %21 = vector.shape_cast %20 : vector<8xf32> to vector<1x8xf32>
    %cst_15 = arith.constant 1.280000e+02 : f32
    %22 = vector.broadcast %cst_15 : f32 to vector<1x8xf32>
    %23 = arith.divf %21, %22 : vector<1x8xf32>
    %c1 = arith.constant 1 : index
    %c0_16 = arith.constant 0 : index
    %c0_17 = arith.constant 0 : index
    %24 = vector.load %arg1[%c1, %c0_16, %c0_17] : memref<4x8x128xf32, #tpu.memory_space<vmem>>, vector<1x8x128xf32>
    %25 = vector.shape_cast %24 : vector<1x8x128xf32> to vector<8x128xf32>
    %c0_18 = arith.constant 0 : index
    %c0_19 = arith.constant 0 : index
    %26 = vector.load %arg2[%c0_18, %c0_19] : memref<8x64xbf16, #tpu.memory_space<vmem>>, vector<8x64xbf16>
    %27 = arith.truncf %25 : vector<8x128xf32> to vector<8x128xbf16>
    %cst_20 = arith.constant dense<0.000000e+00> : vector<128x64xf32>
    %28 = tpu.matmul %27, %26, %cst_20 {dimension_numbers = #tpu.dot_dimension_numbers<[0], [0], [1], [1], [0, 1, 1, 1], [], []>} : vector<8x128xbf16>, vector<8x64xbf16>, vector<128x64xf32> -> vector<128x64xf32>
    %c0_21 = arith.constant 0 : index
    %c0_22 = arith.constant 0 : index
    %29 = vector.load %arg3[%c0_21, %c0_22] : memref<1x64xf32, #tpu.memory_space<vmem>>, vector<1x64xf32>
    %30 = vector.broadcast %29 : vector<1x64xf32> to vector<128x64xf32>
    %31 = arith.addf %28, %30 : vector<128x64xf32>
    %cst_23 = arith.constant 0.000000e+00 : f32
    %32 = vector.broadcast %cst_23 : f32 to vector<128x64xf32>
    %33 = arith.maximumf %31, %32 : vector<128x64xf32>
    %c0_24 = arith.constant 0 : index
    %c0_25 = arith.constant 0 : index
    %34 = vector.load %arg4[%c0_24, %c0_25] : memref<8x8xbf16, #tpu.memory_space<vmem>>, vector<8x8xbf16>
    %35 = arith.truncf %25 : vector<8x128xf32> to vector<8x128xbf16>
    %cst_26 = arith.constant dense<0.000000e+00> : vector<128x8xf32>
    %36 = tpu.matmul %35, %34, %cst_26 {dimension_numbers = #tpu.dot_dimension_numbers<[0], [0], [1], [1], [0, 1, 1, 1], [], []>} : vector<8x128xbf16>, vector<8x8xbf16>, vector<128x8xf32> -> vector<128x8xf32>
    %c0_27 = arith.constant 0 : index
    %c0_28 = arith.constant 0 : index
    %37 = vector.load %arg5[%c0_27, %c0_28] : memref<1x8xf32, #tpu.memory_space<vmem>>, vector<1x8xf32>
    %38 = vector.broadcast %37 : vector<1x8xf32> to vector<128x8xf32>
    %39 = arith.addf %36, %38 : vector<128x8xf32>
    %cst_29 = arith.constant 0.000000e+00 : f32
    %40 = vector.broadcast %cst_29 : f32 to vector<128x8xf32>
    %41 = arith.maximumf %39, %40 : vector<128x8xf32>
    %cst_30 = arith.constant dense<0xFF800000> : vector<64xf32>
    %42 = vector.multi_reduction <maximumf>, %33, %cst_30 [0] : vector<128x64xf32> to vector<64xf32>
    %43 = vector.shape_cast %42 : vector<64xf32> to vector<1x64xf32>
    %cst_31 = arith.constant dense<0.000000e+00> : vector<8xf32>
    %44 = vector.multi_reduction <add>, %41, %cst_31 [0] : vector<128x8xf32> to vector<8xf32>
    %45 = vector.shape_cast %44 : vector<8xf32> to vector<1x8xf32>
    %cst_32 = arith.constant 1.280000e+02 : f32
    %46 = vector.broadcast %cst_32 : f32 to vector<1x8xf32>
    %47 = arith.divf %45, %46 : vector<1x8xf32>
    %c2 = arith.constant 2 : index
    %c0_33 = arith.constant 0 : index
    %c0_34 = arith.constant 0 : index
    %48 = vector.load %arg1[%c2, %c0_33, %c0_34] : memref<4x8x128xf32, #tpu.memory_space<vmem>>, vector<1x8x128xf32>
    %49 = vector.shape_cast %48 : vector<1x8x128xf32> to vector<8x128xf32>
    %c0_35 = arith.constant 0 : index
    %c0_36 = arith.constant 0 : index
    %50 = vector.load %arg2[%c0_35, %c0_36] : memref<8x64xbf16, #tpu.memory_space<vmem>>, vector<8x64xbf16>
    %51 = arith.truncf %49 : vector<8x128xf32> to vector<8x128xbf16>
    %cst_37 = arith.constant dense<0.000000e+00> : vector<128x64xf32>
    %52 = tpu.matmul %51, %50, %cst_37 {dimension_numbers = #tpu.dot_dimension_numbers<[0], [0], [1], [1], [0, 1, 1, 1], [], []>} : vector<8x128xbf16>, vector<8x64xbf16>, vector<128x64xf32> -> vector<128x64xf32>
    %c0_38 = arith.constant 0 : index
    %c0_39 = arith.constant 0 : index
    %53 = vector.load %arg3[%c0_38, %c0_39] : memref<1x64xf32, #tpu.memory_space<vmem>>, vector<1x64xf32>
    %54 = vector.broadcast %53 : vector<1x64xf32> to vector<128x64xf32>
    %55 = arith.addf %52, %54 : vector<128x64xf32>
    %cst_40 = arith.constant 0.000000e+00 : f32
    %56 = vector.broadcast %cst_40 : f32 to vector<128x64xf32>
    %57 = arith.maximumf %55, %56 : vector<128x64xf32>
    %c0_41 = arith.constant 0 : index
    %c0_42 = arith.constant 0 : index
    %58 = vector.load %arg4[%c0_41, %c0_42] : memref<8x8xbf16, #tpu.memory_space<vmem>>, vector<8x8xbf16>
    %59 = arith.truncf %49 : vector<8x128xf32> to vector<8x128xbf16>
    %cst_43 = arith.constant dense<0.000000e+00> : vector<128x8xf32>
    %60 = tpu.matmul %59, %58, %cst_43 {dimension_numbers = #tpu.dot_dimension_numbers<[0], [0], [1], [1], [0, 1, 1, 1], [], []>} : vector<8x128xbf16>, vector<8x8xbf16>, vector<128x8xf32> -> vector<128x8xf32>
    %c0_44 = arith.constant 0 : index
    %c0_45 = arith.constant 0 : index
    %61 = vector.load %arg5[%c0_44, %c0_45] : memref<1x8xf32, #tpu.memory_space<vmem>>, vector<1x8xf32>
    %62 = vector.broadcast %61 : vector<1x8xf32> to vector<128x8xf32>
    %63 = arith.addf %60, %62 : vector<128x8xf32>
    %cst_46 = arith.constant 0.000000e+00 : f32
    %64 = vector.broadcast %cst_46 : f32 to vector<128x8xf32>
    %65 = arith.maximumf %63, %64 : vector<128x8xf32>
    %cst_47 = arith.constant dense<0xFF800000> : vector<64xf32>
    %66 = vector.multi_reduction <maximumf>, %57, %cst_47 [0] : vector<128x64xf32> to vector<64xf32>
    %67 = vector.shape_cast %66 : vector<64xf32> to vector<1x64xf32>
    %cst_48 = arith.constant dense<0.000000e+00> : vector<8xf32>
    %68 = vector.multi_reduction <add>, %65, %cst_48 [0] : vector<128x8xf32> to vector<8xf32>
    %69 = vector.shape_cast %68 : vector<8xf32> to vector<1x8xf32>
    %cst_49 = arith.constant 1.280000e+02 : f32
    %70 = vector.broadcast %cst_49 : f32 to vector<1x8xf32>
    %71 = arith.divf %69, %70 : vector<1x8xf32>
    %c3 = arith.constant 3 : index
    %c0_50 = arith.constant 0 : index
    %c0_51 = arith.constant 0 : index
    %72 = vector.load %arg1[%c3, %c0_50, %c0_51] : memref<4x8x128xf32, #tpu.memory_space<vmem>>, vector<1x8x128xf32>
    %73 = vector.shape_cast %72 : vector<1x8x128xf32> to vector<8x128xf32>
    %c0_52 = arith.constant 0 : index
    %c0_53 = arith.constant 0 : index
    %74 = vector.load %arg2[%c0_52, %c0_53] : memref<8x64xbf16, #tpu.memory_space<vmem>>, vector<8x64xbf16>
    %75 = arith.truncf %73 : vector<8x128xf32> to vector<8x128xbf16>
    %cst_54 = arith.constant dense<0.000000e+00> : vector<128x64xf32>
    %76 = tpu.matmul %75, %74, %cst_54 {dimension_numbers = #tpu.dot_dimension_numbers<[0], [0], [1], [1], [0, 1, 1, 1], [], []>} : vector<8x128xbf16>, vector<8x64xbf16>, vector<128x64xf32> -> vector<128x64xf32>
    %c0_55 = arith.constant 0 : index
    %c0_56 = arith.constant 0 : index
    %77 = vector.load %arg3[%c0_55, %c0_56] : memref<1x64xf32, #tpu.memory_space<vmem>>, vector<1x64xf32>
    %78 = vector.broadcast %77 : vector<1x64xf32> to vector<128x64xf32>
    %79 = arith.addf %76, %78 : vector<128x64xf32>
    %cst_57 = arith.constant 0.000000e+00 : f32
    %80 = vector.broadcast %cst_57 : f32 to vector<128x64xf32>
    %81 = arith.maximumf %79, %80 : vector<128x64xf32>
    %c0_58 = arith.constant 0 : index
    %c0_59 = arith.constant 0 : index
    %82 = vector.load %arg4[%c0_58, %c0_59] : memref<8x8xbf16, #tpu.memory_space<vmem>>, vector<8x8xbf16>
    %83 = arith.truncf %73 : vector<8x128xf32> to vector<8x128xbf16>
    %cst_60 = arith.constant dense<0.000000e+00> : vector<128x8xf32>
    %84 = tpu.matmul %83, %82, %cst_60 {dimension_numbers = #tpu.dot_dimension_numbers<[0], [0], [1], [1], [0, 1, 1, 1], [], []>} : vector<8x128xbf16>, vector<8x8xbf16>, vector<128x8xf32> -> vector<128x8xf32>
    %c0_61 = arith.constant 0 : index
    %c0_62 = arith.constant 0 : index
    %85 = vector.load %arg5[%c0_61, %c0_62] : memref<1x8xf32, #tpu.memory_space<vmem>>, vector<1x8xf32>
    %86 = vector.broadcast %85 : vector<1x8xf32> to vector<128x8xf32>
    %87 = arith.addf %84, %86 : vector<128x8xf32>
    %cst_63 = arith.constant 0.000000e+00 : f32
    %88 = vector.broadcast %cst_63 : f32 to vector<128x8xf32>
    %89 = arith.maximumf %87, %88 : vector<128x8xf32>
    %cst_64 = arith.constant dense<0xFF800000> : vector<64xf32>
    %90 = vector.multi_reduction <maximumf>, %81, %cst_64 [0] : vector<128x64xf32> to vector<64xf32>
    %91 = vector.shape_cast %90 : vector<64xf32> to vector<1x64xf32>
    %cst_65 = arith.constant dense<0.000000e+00> : vector<8xf32>
    %92 = vector.multi_reduction <add>, %89, %cst_65 [0] : vector<128x8xf32> to vector<8xf32>
    %93 = vector.shape_cast %92 : vector<8xf32> to vector<1x8xf32>
    %cst_66 = arith.constant 1.280000e+02 : f32
    %94 = vector.broadcast %cst_66 : f32 to vector<1x8xf32>
    %95 = arith.divf %93, %94 : vector<1x8xf32>
    %96 = tpu.concatenate %19, %43, %67, %91 in 0 : vector<1x64xf32>, vector<1x64xf32>, vector<1x64xf32>, vector<1x64xf32> -> vector<4x64xf32>
    %97 = tpu.concatenate %23, %47, %71, %95 in 0 : vector<1x8xf32>, vector<1x8xf32>, vector<1x8xf32>, vector<1x8xf32> -> vector<4x8xf32>
    %c0_67 = arith.constant 0 : index
    %c0_68 = arith.constant 0 : index
    %98 = vector.load %arg6[%c0_67, %c0_68] : memref<64x64xbf16, #tpu.memory_space<vmem>>, vector<64x64xbf16>
    %99 = arith.truncf %96 : vector<4x64xf32> to vector<4x64xbf16>
    %cst_69 = arith.constant dense<0.000000e+00> : vector<4x64xf32>
    %100 = tpu.matmul %99, %98, %cst_69 {dimension_numbers = #tpu.dot_dimension_numbers<[1], [0], [0], [1], [0, 0, 1, 1], [], []>} : vector<4x64xbf16>, vector<64x64xbf16>, vector<4x64xf32> -> vector<4x64xf32>
    %c0_70 = arith.constant 0 : index
    %c0_71 = arith.constant 0 : index
    %101 = vector.load %arg7[%c0_70, %c0_71] : memref<1x64xf32, #tpu.memory_space<vmem>>, vector<1x64xf32>
    %102 = vector.broadcast %101 : vector<1x64xf32> to vector<4x64xf32>
    %103 = arith.addf %100, %102 : vector<4x64xf32>
    %c0_72 = arith.constant 0 : index
    %c0_73 = arith.constant 0 : index
    %104 = vector.load %arg8[%c0_72, %c0_73] : memref<8x16xbf16, #tpu.memory_space<vmem>>, vector<8x16xbf16>
    %105 = arith.truncf %97 : vector<4x8xf32> to vector<4x8xbf16>
    %cst_74 = arith.constant dense<0.000000e+00> : vector<4x16xf32>
    %106 = tpu.matmul %105, %104, %cst_74 {dimension_numbers = #tpu.dot_dimension_numbers<[1], [0], [0], [1], [0, 0, 1, 1], [], []>} : vector<4x8xbf16>, vector<8x16xbf16>, vector<4x16xf32> -> vector<4x16xf32>
    %c0_75 = arith.constant 0 : index
    %c0_76 = arith.constant 0 : index
    %107 = vector.load %arg9[%c0_75, %c0_76] : memref<1x16xf32, #tpu.memory_space<vmem>>, vector<1x16xf32>
    %108 = vector.broadcast %107 : vector<1x16xf32> to vector<4x16xf32>
    %109 = arith.addf %106, %108 : vector<4x16xf32>
    %cst_77 = arith.constant 0.000000e+00 : f32
    %110 = vector.broadcast %cst_77 : f32 to vector<4x16xf32>
    %111 = arith.maximumf %109, %110 : vector<4x16xf32>
    %c0_78 = arith.constant 0 : index
    %c0_79 = arith.constant 0 : index
    %112 = vector.load %arg10[%c0_78, %c0_79] : memref<16x32xbf16, #tpu.memory_space<vmem>>, vector<16x32xbf16>
    %113 = arith.truncf %111 : vector<4x16xf32> to vector<4x16xbf16>
    %cst_80 = arith.constant dense<0.000000e+00> : vector<4x32xf32>
    %114 = tpu.matmul %113, %112, %cst_80 {dimension_numbers = #tpu.dot_dimension_numbers<[1], [0], [0], [1], [0, 0, 1, 1], [], []>} : vector<4x16xbf16>, vector<16x32xbf16>, vector<4x32xf32> -> vector<4x32xf32>
    %c0_81 = arith.constant 0 : index
    %c0_82 = arith.constant 0 : index
    %115 = vector.load %arg11[%c0_81, %c0_82] : memref<1x32xf32, #tpu.memory_space<vmem>>, vector<1x32xf32>
    %116 = vector.broadcast %115 : vector<1x32xf32> to vector<4x32xf32>
    %117 = arith.addf %114, %116 : vector<4x32xf32>
    %cst_83 = arith.constant 0.000000e+00 : f32
    %118 = vector.broadcast %cst_83 : f32 to vector<4x32xf32>
    %119 = arith.maximumf %117, %118 : vector<4x32xf32>
    %c0_84 = arith.constant 0 : index
    %c0_85 = arith.constant 0 : index
    %120 = vector.load %arg12[%c0_84, %c0_85] : memref<32x64xbf16, #tpu.memory_space<vmem>>, vector<32x64xbf16>
    %121 = arith.truncf %119 : vector<4x32xf32> to vector<4x32xbf16>
    %cst_86 = arith.constant dense<0.000000e+00> : vector<4x64xf32>
    %122 = tpu.matmul %121, %120, %cst_86 {dimension_numbers = #tpu.dot_dimension_numbers<[1], [0], [0], [1], [0, 0, 1, 1], [], []>} : vector<4x32xbf16>, vector<32x64xbf16>, vector<4x64xf32> -> vector<4x64xf32>
    %c0_87 = arith.constant 0 : index
    %c0_88 = arith.constant 0 : index
    %123 = vector.load %arg13[%c0_87, %c0_88] : memref<1x64xf32, #tpu.memory_space<vmem>>, vector<1x64xf32>
    %124 = vector.broadcast %123 : vector<1x64xf32> to vector<4x64xf32>
    %125 = arith.addf %122, %124 : vector<4x64xf32>
    %cst_89 = arith.constant 0.000000e+00 : f32
    %126 = vector.broadcast %cst_89 : f32 to vector<4x64xf32>
    %127 = arith.maximumf %125, %126 : vector<4x64xf32>
    %c0_90 = arith.constant 0 : index
    %c0_91 = arith.constant 0 : index
    %128 = vector.load %arg14[%c0_90, %c0_91] : memref<64x64xbf16, #tpu.memory_space<vmem>>, vector<64x64xbf16>
    %129 = arith.truncf %127 : vector<4x64xf32> to vector<4x64xbf16>
    %cst_92 = arith.constant dense<0.000000e+00> : vector<4x64xf32>
    %130 = tpu.matmul %129, %128, %cst_92 {dimension_numbers = #tpu.dot_dimension_numbers<[1], [0], [0], [1], [0, 0, 1, 1], [], []>} : vector<4x64xbf16>, vector<64x64xbf16>, vector<4x64xf32> -> vector<4x64xf32>
    %c0_93 = arith.constant 0 : index
    %c0_94 = arith.constant 0 : index
    %131 = vector.load %arg15[%c0_93, %c0_94] : memref<1x64xf32, #tpu.memory_space<vmem>>, vector<1x64xf32>
    %132 = vector.broadcast %131 : vector<1x64xf32> to vector<4x64xf32>
    %133 = arith.addf %130, %132 : vector<4x64xf32>
    %cst_95 = arith.constant 0.000000e+00 : f32
    %134 = vector.broadcast %cst_95 : f32 to vector<4x64xf32>
    %135 = arith.maximumf %133, %134 : vector<4x64xf32>
    %136 = tpu.concatenate %135, %103 in 0 : vector<4x64xf32>, vector<4x64xf32> -> vector<8x64xf32>
    %c0_96 = arith.constant 0 : index
    %c0_97 = arith.constant 0 : index
    %137 = vector.load %arg16[%c0_96, %c0_97] : memref<64x64xbf16, #tpu.memory_space<vmem>>, vector<64x64xbf16>
    %138 = arith.truncf %136 : vector<8x64xf32> to vector<8x64xbf16>
    %cst_98 = arith.constant dense<0.000000e+00> : vector<8x64xf32>
    %139 = tpu.matmul %138, %137, %cst_98 {dimension_numbers = #tpu.dot_dimension_numbers<[1], [0], [0], [1], [0, 0, 1, 1], [], []>} : vector<8x64xbf16>, vector<64x64xbf16>, vector<8x64xf32> -> vector<8x64xf32>
    %c0_99 = arith.constant 0 : index
    %c0_100 = arith.constant 0 : index
    %140 = vector.load %arg17[%c0_99, %c0_100] : memref<1x64xf32, #tpu.memory_space<vmem>>, vector<1x64xf32>
    %141 = vector.broadcast %140 : vector<1x64xf32> to vector<8x64xf32>
    %142 = arith.addf %139, %141 : vector<8x64xf32>
    %cst_101 = arith.constant 0.000000e+00 : f32
    %143 = vector.broadcast %cst_101 : f32 to vector<8x64xf32>
    %144 = arith.maximumf %142, %143 : vector<8x64xf32>
    %c0_102 = arith.constant 0 : index
    %c0_103 = arith.constant 0 : index
    %145 = vector.load %arg18[%c0_102, %c0_103] : memref<64x128xbf16, #tpu.memory_space<vmem>>, vector<64x128xbf16>
    %146 = arith.truncf %144 : vector<8x64xf32> to vector<8x64xbf16>
    %cst_104 = arith.constant dense<0.000000e+00> : vector<8x128xf32>
    %147 = tpu.matmul %146, %145, %cst_104 {dimension_numbers = #tpu.dot_dimension_numbers<[1], [0], [0], [1], [0, 0, 1, 1], [], []>} : vector<8x64xbf16>, vector<64x128xbf16>, vector<8x128xf32> -> vector<8x128xf32>
    %c0_105 = arith.constant 0 : index
    %c0_106 = arith.constant 0 : index
    %148 = vector.load %arg19[%c0_105, %c0_106] : memref<1x128xf32, #tpu.memory_space<vmem>>, vector<1x128xf32>
    %149 = vector.broadcast %148 : vector<1x128xf32> to vector<8x128xf32>
    %150 = arith.addf %147, %149 : vector<8x128xf32>
    %cst_107 = arith.constant 0.000000e+00 : f32
    %151 = vector.broadcast %cst_107 : f32 to vector<8x128xf32>
    %152 = arith.maximumf %150, %151 : vector<8x128xf32>
    %c0_108 = arith.constant 0 : index
    %c0_109 = arith.constant 0 : index
    %153 = vector.load %arg20[%c0_108, %c0_109] : memref<128x256xbf16, #tpu.memory_space<vmem>>, vector<128x256xbf16>
    %154 = arith.truncf %152 : vector<8x128xf32> to vector<8x128xbf16>
    %cst_110 = arith.constant dense<0.000000e+00> : vector<8x256xf32>
    %155 = tpu.matmul %154, %153, %cst_110 {dimension_numbers = #tpu.dot_dimension_numbers<[1], [0], [0], [1], [0, 0, 1, 1], [], []>} : vector<8x128xbf16>, vector<128x256xbf16>, vector<8x256xf32> -> vector<8x256xf32>
    %c0_111 = arith.constant 0 : index
    %c0_112 = arith.constant 0 : index
    %156 = vector.load %arg21[%c0_111, %c0_112] : memref<1x256xf32, #tpu.memory_space<vmem>>, vector<1x256xf32>
    %157 = vector.broadcast %156 : vector<1x256xf32> to vector<8x256xf32>
    %158 = arith.addf %155, %157 : vector<8x256xf32>
    %cst_113 = arith.constant 0.000000e+00 : f32
    %159 = vector.broadcast %cst_113 : f32 to vector<8x256xf32>
    %160 = arith.maximumf %158, %159 : vector<8x256xf32>
    %c0_114 = arith.constant 0 : index
    %c0_115 = arith.constant 0 : index
    %161 = vector.load %arg22[%c0_114, %c0_115] : memref<256x384xbf16, #tpu.memory_space<vmem>>, vector<256x384xbf16>
    %162 = arith.truncf %160 : vector<8x256xf32> to vector<8x256xbf16>
    %cst_116 = arith.constant dense<0.000000e+00> : vector<8x384xf32>
    %163 = tpu.matmul %162, %161, %cst_116 {dimension_numbers = #tpu.dot_dimension_numbers<[1], [0], [0], [1], [0, 0, 1, 1], [], []>} : vector<8x256xbf16>, vector<256x384xbf16>, vector<8x384xf32> -> vector<8x384xf32>
    %c0_117 = arith.constant 0 : index
    %c0_118 = arith.constant 0 : index
    %164 = vector.load %arg23[%c0_117, %c0_118] : memref<1x384xf32, #tpu.memory_space<vmem>>, vector<1x384xf32>
    %165 = vector.broadcast %164 : vector<1x384xf32> to vector<8x384xf32>
    %166 = arith.addf %163, %165 : vector<8x384xf32>
    %167 = vector.shape_cast %166 : vector<8x384xf32> to vector<24x128xf32>
    %168 = vector.extract_strided_slice %167 {offsets = [0, 0], sizes = [3, 128], strides = [1, 1]} : vector<24x128xf32> to vector<3x128xf32>
    %169 = vector.extract_strided_slice %167 {offsets = [12, 0], sizes = [3, 128], strides = [1, 1]} : vector<24x128xf32> to vector<3x128xf32>
    %170 = tpu.concatenate %168, %169 in 0 : vector<3x128xf32>, vector<3x128xf32> -> vector<6x128xf32>
    %c0_119 = arith.constant 0 : index
    %c0_120 = arith.constant 0 : index
    %171 = vector.load %arg24[%c0_119, %c0_120] : memref<128x128xbf16, #tpu.memory_space<vmem>>, vector<128x128xbf16>
    %172 = arith.truncf %170 : vector<6x128xf32> to vector<6x128xbf16>
    %cst_121 = arith.constant dense<0.000000e+00> : vector<6x128xf32>
    %173 = tpu.matmul %172, %171, %cst_121 {dimension_numbers = #tpu.dot_dimension_numbers<[1], [0], [0], [1], [0, 0, 1, 1], [], []>} : vector<6x128xbf16>, vector<128x128xbf16>, vector<6x128xf32> -> vector<6x128xf32>
    %c0_122 = arith.constant 0 : index
    %c0_123 = arith.constant 0 : index
    %174 = vector.load %arg25[%c0_122, %c0_123] : memref<1x128xf32, #tpu.memory_space<vmem>>, vector<1x128xf32>
    %175 = vector.broadcast %174 : vector<1x128xf32> to vector<6x128xf32>
    %176 = arith.addf %173, %175 : vector<6x128xf32>
    %177 = arith.truncf %170 : vector<6x128xf32> to vector<6x128xbf16>
    %178 = arith.truncf %176 : vector<6x128xf32> to vector<6x128xbf16>
    %cst_124 = arith.constant dense<0.000000e+00> : vector<128x128xf32>
    %179 = tpu.matmul %177, %178, %cst_124 {dimension_numbers = #tpu.dot_dimension_numbers<[0], [0], [1], [1], [0, 1, 1, 1], [], []>} : vector<6x128xbf16>, vector<6x128xbf16>, vector<128x128xf32> -> vector<128x128xf32>
    %cst_125 = arith.constant dense<0xFF800000> : vector<128xf32>
    %180 = vector.multi_reduction <maximumf>, %179, %cst_125 [1] : vector<128x128xf32> to vector<128xf32>
    %181 = vector.shape_cast %180 : vector<128xf32> to vector<128x1xf32>
    %182 = vector.broadcast %181 : vector<128x1xf32> to vector<128x128xf32>
    %183 = arith.subf %179, %182 : vector<128x128xf32>
    %184 = math.exp %183 : vector<128x128xf32>
    %cst_126 = arith.constant dense<0.000000e+00> : vector<128xf32>
    %185 = vector.multi_reduction <add>, %184, %cst_126 [1] : vector<128x128xf32> to vector<128xf32>
    %186 = vector.shape_cast %185 : vector<128xf32> to vector<128x1xf32>
    %187 = tpu.reciprocal %186 {approx = true} : vector<128x1xf32> -> vector<128x1xf32>
    %188 = vector.broadcast %187 : vector<128x1xf32> to vector<128x128xf32>
    %189 = arith.mulf %184, %188 : vector<128x128xf32>
    %190 = arith.truncf %170 : vector<6x128xf32> to vector<6x128xbf16>
    %cst_127 = arith.constant dense<0.000000e+00> : vector<6x128xf32>
    %191 = tpu.matmul %190, %189, %cst_127 {dimension_numbers = #tpu.dot_dimension_numbers<[1], [0], [0], [1], [0, 0, 1, 1], [], []>} : vector<6x128xbf16>, vector<128x128xf32>, vector<6x128xf32> -> vector<6x128xf32>
    %c0_128 = arith.constant 0 : index
    %c0_129 = arith.constant 0 : index
    %c0_130 = arith.constant 0 : index
    %192 = vector.load %arg26[%c0_128, %c0_129, %c0_130] : memref<4x6x128xf32, #tpu.memory_space<vmem>>, vector<1x6x128xf32>
    %193 = vector.shape_cast %192 : vector<1x6x128xf32> to vector<6x128xf32>
    %194 = vector.shape_cast %191 : vector<6x128xf32> to vector<1x6x128xf32>
    tpu.vector_store %arg26[%c0_128, %c0_129, %c0_130], %194 {strides = array<i32>} : memref<4x6x128xf32, #tpu.memory_space<vmem>>, vector<1x6x128xf32>,
    %195 = vector.extract_strided_slice %167 {offsets = [3, 0], sizes = [3, 128], strides = [1, 1]} : vector<24x128xf32> to vector<3x128xf32>
    %196 = vector.extract_strided_slice %167 {offsets = [15, 0], sizes = [3, 128], strides = [1, 1]} : vector<24x128xf32> to vector<3x128xf32>
    %197 = tpu.concatenate %195, %196 in 0 : vector<3x128xf32>, vector<3x128xf32> -> vector<6x128xf32>
    %c0_131 = arith.constant 0 : index
    %c0_132 = arith.constant 0 : index
    %198 = vector.load %arg24[%c0_131, %c0_132] : memref<128x128xbf16, #tpu.memory_space<vmem>>, vector<128x128xbf16>
    %199 = arith.truncf %197 : vector<6x128xf32> to vector<6x128xbf16>
    %cst_133 = arith.constant dense<0.000000e+00> : vector<6x128xf32>
    %200 = tpu.matmul %199, %198, %cst_133 {dimension_numbers = #tpu.dot_dimension_numbers<[1], [0], [0], [1], [0, 0, 1, 1], [], []>} : vector<6x128xbf16>, vector<128x128xbf16>, vector<6x128xf32> -> vector<6x128xf32>
    %c0_134 = arith.constant 0 : index
    %c0_135 = arith.constant 0 : index
    %201 = vector.load %arg25[%c0_134, %c0_135] : memref<1x128xf32, #tpu.memory_space<vmem>>, vector<1x128xf32>
    %202 = vector.broadcast %201 : vector<1x128xf32> to vector<6x128xf32>
    %203 = arith.addf %200, %202 : vector<6x128xf32>
    %204 = arith.truncf %197 : vector<6x128xf32> to vector<6x128xbf16>
    %205 = arith.truncf %203 : vector<6x128xf32> to vector<6x128xbf16>
    %cst_136 = arith.constant dense<0.000000e+00> : vector<128x128xf32>
    %206 = tpu.matmul %204, %205, %cst_136 {dimension_numbers = #tpu.dot_dimension_numbers<[0], [0], [1], [1], [0, 1, 1, 1], [], []>} : vector<6x128xbf16>, vector<6x128xbf16>, vector<128x128xf32> -> vector<128x128xf32>
    %cst_137 = arith.constant dense<0xFF800000> : vector<128xf32>
    %207 = vector.multi_reduction <maximumf>, %206, %cst_137 [1] : vector<128x128xf32> to vector<128xf32>
    %208 = vector.shape_cast %207 : vector<128xf32> to vector<128x1xf32>
    %209 = vector.broadcast %208 : vector<128x1xf32> to vector<128x128xf32>
    %210 = arith.subf %206, %209 : vector<128x128xf32>
    %211 = math.exp %210 : vector<128x128xf32>
    %cst_138 = arith.constant dense<0.000000e+00> : vector<128xf32>
    %212 = vector.multi_reduction <add>, %211, %cst_138 [1] : vector<128x128xf32> to vector<128xf32>
    %213 = vector.shape_cast %212 : vector<128xf32> to vector<128x1xf32>
    %214 = tpu.reciprocal %213 {approx = true} : vector<128x1xf32> -> vector<128x1xf32>
    %215 = vector.broadcast %214 : vector<128x1xf32> to vector<128x128xf32>
    %216 = arith.mulf %211, %215 : vector<128x128xf32>
    %217 = arith.truncf %197 : vector<6x128xf32> to vector<6x128xbf16>
    %cst_139 = arith.constant dense<0.000000e+00> : vector<6x128xf32>
    %218 = tpu.matmul %217, %216, %cst_139 {dimension_numbers = #tpu.dot_dimension_numbers<[1], [0], [0], [1], [0, 0, 1, 1], [], []>} : vector<6x128xbf16>, vector<128x128xf32>, vector<6x128xf32> -> vector<6x128xf32>
    %c1_140 = arith.constant 1 : index
    %c0_141 = arith.constant 0 : index
    %c0_142 = arith.constant 0 : index
    %219 = vector.load %arg26[%c1_140, %c0_141, %c0_142] : memref<4x6x128xf32, #tpu.memory_space<vmem>>, vector<1x6x128xf32>
    %220 = vector.shape_cast %219 : vector<1x6x128xf32> to vector<6x128xf32>
    %221 = vector.shape_cast %218 : vector<6x128xf32> to vector<1x6x128xf32>
    tpu.vector_store %arg26[%c1_140, %c0_141, %c0_142], %221 {strides = array<i32>} : memref<4x6x128xf32, #tpu.memory_space<vmem>>, vector<1x6x128xf32>,
    %222 = vector.extract_strided_slice %167 {offsets = [6, 0], sizes = [3, 128], strides = [1, 1]} : vector<24x128xf32> to vector<3x128xf32>
    %223 = vector.extract_strided_slice %167 {offsets = [18, 0], sizes = [3, 128], strides = [1, 1]} : vector<24x128xf32> to vector<3x128xf32>
    %224 = tpu.concatenate %222, %223 in 0 : vector<3x128xf32>, vector<3x128xf32> -> vector<6x128xf32>
    %c0_143 = arith.constant 0 : index
    %c0_144 = arith.constant 0 : index
    %225 = vector.load %arg24[%c0_143, %c0_144] : memref<128x128xbf16, #tpu.memory_space<vmem>>, vector<128x128xbf16>
    %226 = arith.truncf %224 : vector<6x128xf32> to vector<6x128xbf16>
    %cst_145 = arith.constant dense<0.000000e+00> : vector<6x128xf32>
    %227 = tpu.matmul %226, %225, %cst_145 {dimension_numbers = #tpu.dot_dimension_numbers<[1], [0], [0], [1], [0, 0, 1, 1], [], []>} : vector<6x128xbf16>, vector<128x128xbf16>, vector<6x128xf32> -> vector<6x128xf32>
    %c0_146 = arith.constant 0 : index
    %c0_147 = arith.constant 0 : index
    %228 = vector.load %arg25[%c0_146, %c0_147] : memref<1x128xf32, #tpu.memory_space<vmem>>, vector<1x128xf32>
    %229 = vector.broadcast %228 : vector<1x128xf32> to vector<6x128xf32>
    %230 = arith.addf %227, %229 : vector<6x128xf32>
    %231 = arith.truncf %224 : vector<6x128xf32> to vector<6x128xbf16>
    %232 = arith.truncf %230 : vector<6x128xf32> to vector<6x128xbf16>
    %cst_148 = arith.constant dense<0.000000e+00> : vector<128x128xf32>
    %233 = tpu.matmul %231, %232, %cst_148 {dimension_numbers = #tpu.dot_dimension_numbers<[0], [0], [1], [1], [0, 1, 1, 1], [], []>} : vector<6x128xbf16>, vector<6x128xbf16>, vector<128x128xf32> -> vector<128x128xf32>
    %cst_149 = arith.constant dense<0xFF800000> : vector<128xf32>
    %234 = vector.multi_reduction <maximumf>, %233, %cst_149 [1] : vector<128x128xf32> to vector<128xf32>
    %235 = vector.shape_cast %234 : vector<128xf32> to vector<128x1xf32>
    %236 = vector.broadcast %235 : vector<128x1xf32> to vector<128x128xf32>
    %237 = arith.subf %233, %236 : vector<128x128xf32>
    %238 = math.exp %237 : vector<128x128xf32>
    %cst_150 = arith.constant dense<0.000000e+00> : vector<128xf32>
    %239 = vector.multi_reduction <add>, %238, %cst_150 [1] : vector<128x128xf32> to vector<128xf32>
    %240 = vector.shape_cast %239 : vector<128xf32> to vector<128x1xf32>
    %241 = tpu.reciprocal %240 {approx = true} : vector<128x1xf32> -> vector<128x1xf32>
    %242 = vector.broadcast %241 : vector<128x1xf32> to vector<128x128xf32>
    %243 = arith.mulf %238, %242 : vector<128x128xf32>
    %244 = arith.truncf %224 : vector<6x128xf32> to vector<6x128xbf16>
    %cst_151 = arith.constant dense<0.000000e+00> : vector<6x128xf32>
    %245 = tpu.matmul %244, %243, %cst_151 {dimension_numbers = #tpu.dot_dimension_numbers<[1], [0], [0], [1], [0, 0, 1, 1], [], []>} : vector<6x128xbf16>, vector<128x128xf32>, vector<6x128xf32> -> vector<6x128xf32>
    %c2_152 = arith.constant 2 : index
    %c0_153 = arith.constant 0 : index
    %c0_154 = arith.constant 0 : index
    %246 = vector.load %arg26[%c2_152, %c0_153, %c0_154] : memref<4x6x128xf32, #tpu.memory_space<vmem>>, vector<1x6x128xf32>
    %247 = vector.shape_cast %246 : vector<1x6x128xf32> to vector<6x128xf32>
    %248 = vector.shape_cast %245 : vector<6x128xf32> to vector<1x6x128xf32>
    tpu.vector_store %arg26[%c2_152, %c0_153, %c0_154], %248 {strides = array<i32>} : memref<4x6x128xf32, #tpu.memory_space<vmem>>, vector<1x6x128xf32>,
    %249 = vector.extract_strided_slice %167 {offsets = [9, 0], sizes = [3, 128], strides = [1, 1]} : vector<24x128xf32> to vector<3x128xf32>
    %250 = vector.extract_strided_slice %167 {offsets = [21, 0], sizes = [3, 128], strides = [1, 1]} : vector<24x128xf32> to vector<3x128xf32>
    %251 = tpu.concatenate %249, %250 in 0 : vector<3x128xf32>, vector<3x128xf32> -> vector<6x128xf32>
    %c0_155 = arith.constant 0 : index
    %c0_156 = arith.constant 0 : index
    %252 = vector.load %arg24[%c0_155, %c0_156] : memref<128x128xbf16, #tpu.memory_space<vmem>>, vector<128x128xbf16>
    %253 = arith.truncf %251 : vector<6x128xf32> to vector<6x128xbf16>
    %cst_157 = arith.constant dense<0.000000e+00> : vector<6x128xf32>
    %254 = tpu.matmul %253, %252, %cst_157 {dimension_numbers = #tpu.dot_dimension_numbers<[1], [0], [0], [1], [0, 0, 1, 1], [], []>} : vector<6x128xbf16>, vector<128x128xbf16>, vector<6x128xf32> -> vector<6x128xf32>
    %c0_158 = arith.constant 0 : index
    %c0_159 = arith.constant 0 : index
    %255 = vector.load %arg25[%c0_158, %c0_159] : memref<1x128xf32, #tpu.memory_space<vmem>>, vector<1x128xf32>
    %256 = vector.broadcast %255 : vector<1x128xf32> to vector<6x128xf32>
    %257 = arith.addf %254, %256 : vector<6x128xf32>
    %258 = arith.truncf %251 : vector<6x128xf32> to vector<6x128xbf16>
    %259 = arith.truncf %257 : vector<6x128xf32> to vector<6x128xbf16>
    %cst_160 = arith.constant dense<0.000000e+00> : vector<128x128xf32>
    %260 = tpu.matmul %258, %259, %cst_160 {dimension_numbers = #tpu.dot_dimension_numbers<[0], [0], [1], [1], [0, 1, 1, 1], [], []>} : vector<6x128xbf16>, vector<6x128xbf16>, vector<128x128xf32> -> vector<128x128xf32>
    %cst_161 = arith.constant dense<0xFF800000> : vector<128xf32>
    %261 = vector.multi_reduction <maximumf>, %260, %cst_161 [1] : vector<128x128xf32> to vector<128xf32>
    %262 = vector.shape_cast %261 : vector<128xf32> to vector<128x1xf32>
    %263 = vector.broadcast %262 : vector<128x1xf32> to vector<128x128xf32>
    %264 = arith.subf %260, %263 : vector<128x128xf32>
    %265 = math.exp %264 : vector<128x128xf32>
    %cst_162 = arith.constant dense<0.000000e+00> : vector<128xf32>
    %266 = vector.multi_reduction <add>, %265, %cst_162 [1] : vector<128x128xf32> to vector<128xf32>
    %267 = vector.shape_cast %266 : vector<128xf32> to vector<128x1xf32>
    %268 = tpu.reciprocal %267 {approx = true} : vector<128x1xf32> -> vector<128x1xf32>
    %269 = vector.broadcast %268 : vector<128x1xf32> to vector<128x128xf32>
    %270 = arith.mulf %265, %269 : vector<128x128xf32>
    %271 = arith.truncf %251 : vector<6x128xf32> to vector<6x128xbf16>
    %cst_163 = arith.constant dense<0.000000e+00> : vector<6x128xf32>
    %272 = tpu.matmul %271, %270, %cst_163 {dimension_numbers = #tpu.dot_dimension_numbers<[1], [0], [0], [1], [0, 0, 1, 1], [], []>} : vector<6x128xbf16>, vector<128x128xf32>, vector<6x128xf32> -> vector<6x128xf32>
    %c3_164 = arith.constant 3 : index
    %c0_165 = arith.constant 0 : index
    %c0_166 = arith.constant 0 : index
    %273 = vector.load %arg26[%c3_164, %c0_165, %c0_166] : memref<4x6x128xf32, #tpu.memory_space<vmem>>, vector<1x6x128xf32>
    %274 = vector.shape_cast %273 : vector<1x6x128xf32> to vector<6x128xf32>
    %275 = vector.shape_cast %272 : vector<6x128xf32> to vector<1x6x128xf32>
    tpu.vector_store %arg26[%c3_164, %c0_165, %c0_166], %275 {strides = array<i32>} : memref<4x6x128xf32, #tpu.memory_space<vmem>>, vector<1x6x128xf32>,
    return
  }
  func.func @transform_0(%arg0: i32) -> (i32, i32, i32) {
    %c0_i32 = arith.constant 0 : i32
    %c0_i32_0 = arith.constant 0 : i32
    %c0_i32_1 = arith.constant 0 : i32
    return %arg0, %c0_i32, %c0_i32_0 : i32, i32, i32
  }
  func.func @transform_1(%arg0: i32) -> (i32, i32) {
    %c0_i32 = arith.constant 0 : i32
    %c0_i32_0 = arith.constant 0 : i32
    %c0_i32_1 = arith.constant 0 : i32
    return %c0_i32, %c0_i32_0 : i32, i32
  }
  func.func @transform_2(%arg0: i32) -> (i32, i32) {
    %c0_i32 = arith.constant 0 : i32
    %c0_i32_0 = arith.constant 0 : i32
    %c0_i32_1 = arith.constant 0 : i32
    return %c0_i32, %c0_i32_0 : i32, i32
  }
  func.func @transform_3(%arg0: i32) -> (i32, i32) {
    %c0_i32 = arith.constant 0 : i32
    %c0_i32_0 = arith.constant 0 : i32
    %c0_i32_1 = arith.constant 0 : i32
    return %c0_i32, %c0_i32_0 : i32, i32
  }
  func.func @transform_4(%arg0: i32) -> (i32, i32) {
    %c0_i32 = arith.constant 0 : i32
    %c0_i32_0 = arith.constant 0 : i32
    %c0_i32_1 = arith.constant 0 : i32
    return %c0_i32, %c0_i32_0 : i32, i32
  }
  func.func @transform_5(%arg0: i32) -> (i32, i32) {
    %c0_i32 = arith.constant 0 : i32
    %c0_i32_0 = arith.constant 0 : i32
    %c0_i32_1 = arith.constant 0 : i32
    return %c0_i32, %c0_i32_0 : i32, i32
  }
  func.func @transform_6(%arg0: i32) -> (i32, i32) {
    %c0_i32 = arith.constant 0 : i32
    %c0_i32_0 = arith.constant 0 : i32
    %c0_i32_1 = arith.constant 0 : i32
    return %c0_i32, %c0_i32_0 : i32, i32
  }
  func.func @transform_7(%arg0: i32) -> (i32, i32) {
    %c0_i32 = arith.constant 0 : i32
    %c0_i32_0 = arith.constant 0 : i32
    %c0_i32_1 = arith.constant 0 : i32
    return %c0_i32, %c0_i32_0 : i32, i32
  }
  func.func @transform_8(%arg0: i32) -> (i32, i32) {
    %c0_i32 = arith.constant 0 : i32
    %c0_i32_0 = arith.constant 0 : i32
    %c0_i32_1 = arith.constant 0 : i32
    return %c0_i32, %c0_i32_0 : i32, i32
  }
  func.func @transform_9(%arg0: i32) -> (i32, i32) {
    %c0_i32 = arith.constant 0 : i32
    %c0_i32_0 = arith.constant 0 : i32
    %c0_i32_1 = arith.constant 0 : i32
    return %c0_i32, %c0_i32_0 : i32, i32
  }
  func.func @transform_10(%arg0: i32) -> (i32, i32) {
    %c0_i32 = arith.constant 0 : i32
    %c0_i32_0 = arith.constant 0 : i32
    %c0_i32_1 = arith.constant 0 : i32
    return %c0_i32, %c0_i32_0 : i32, i32
  }
  func.func @transform_11(%arg0: i32) -> (i32, i32) {
    %c0_i32 = arith.constant 0 : i32
    %c0_i32_0 = arith.constant 0 : i32
    %c0_i32_1 = arith.constant 0 : i32
    return %c0_i32, %c0_i32_0 : i32, i32
  }
  func.func @transform_12(%arg0: i32) -> (i32, i32) {
    %c0_i32 = arith.constant 0 : i32
    %c0_i32_0 = arith.constant 0 : i32
    %c0_i32_1 = arith.constant 0 : i32
    return %c0_i32, %c0_i32_0 : i32, i32
  }
  func.func @transform_13(%arg0: i32) -> (i32, i32) {
    %c0_i32 = arith.constant 0 : i32
    %c0_i32_0 = arith.constant 0 : i32
    %c0_i32_1 = arith.constant 0 : i32
    return %c0_i32, %c0_i32_0 : i32, i32
  }
  func.func @transform_14(%arg0: i32) -> (i32, i32) {
    %c0_i32 = arith.constant 0 : i32
    %c0_i32_0 = arith.constant 0 : i32
    %c0_i32_1 = arith.constant 0 : i32
    return %c0_i32, %c0_i32_0 : i32, i32
  }
  func.func @transform_15(%arg0: i32) -> (i32, i32) {
    %c0_i32 = arith.constant 0 : i32
    %c0_i32_0 = arith.constant 0 : i32
    %c0_i32_1 = arith.constant 0 : i32
    return %c0_i32, %c0_i32_0 : i32, i32
  }
  func.func @transform_16(%arg0: i32) -> (i32, i32) {
    %c0_i32 = arith.constant 0 : i32
    %c0_i32_0 = arith.constant 0 : i32
    %c0_i32_1 = arith.constant 0 : i32
    return %c0_i32, %c0_i32_0 : i32, i32
  }
  func.func @transform_17(%arg0: i32) -> (i32, i32) {
    %c0_i32 = arith.constant 0 : i32
    %c0_i32_0 = arith.constant 0 : i32
    %c0_i32_1 = arith.constant 0 : i32
    return %c0_i32, %c0_i32_0 : i32, i32
  }
  func.func @transform_18(%arg0: i32) -> (i32, i32) {
    %c0_i32 = arith.constant 0 : i32
    %c0_i32_0 = arith.constant 0 : i32
    %c0_i32_1 = arith.constant 0 : i32
    return %c0_i32, %c0_i32_0 : i32, i32
  }
  func.func @transform_19(%arg0: i32) -> (i32, i32) {
    %c0_i32 = arith.constant 0 : i32
    %c0_i32_0 = arith.constant 0 : i32
    %c0_i32_1 = arith.constant 0 : i32
    return %c0_i32, %c0_i32_0 : i32, i32
  }
  func.func @transform_20(%arg0: i32) -> (i32, i32) {
    %c0_i32 = arith.constant 0 : i32
    %c0_i32_0 = arith.constant 0 : i32
    %c0_i32_1 = arith.constant 0 : i32
    return %c0_i32, %c0_i32_0 : i32, i32
  }
  func.func @transform_21(%arg0: i32) -> (i32, i32) {
    %c0_i32 = arith.constant 0 : i32
    %c0_i32_0 = arith.constant 0 : i32
    %c0_i32_1 = arith.constant 0 : i32
    return %c0_i32, %c0_i32_0 : i32, i32
  }
  func.func @transform_22(%arg0: i32) -> (i32, i32) {
    %c0_i32 = arith.constant 0 : i32
    %c0_i32_0 = arith.constant 0 : i32
    %c0_i32_1 = arith.constant 0 : i32
    return %c0_i32, %c0_i32_0 : i32, i32
  }
  func.func @transform_23(%arg0: i32) -> (i32, i32) {
    %c0_i32 = arith.constant 0 : i32
    %c0_i32_0 = arith.constant 0 : i32
    %c0_i32_1 = arith.constant 0 : i32
    return %c0_i32, %c0_i32_0 : i32, i32
  }
  func.func @transform_24(%arg0: i32) -> (i32, i32) {
    %c0_i32 = arith.constant 0 : i32
    %c0_i32_0 = arith.constant 0 : i32
    %c0_i32_1 = arith.constant 0 : i32
    return %c0_i32, %c0_i32_0 : i32, i32
  }
  func.func @transform_25(%arg0: i32) -> (i32, i32, i32) {
    %c0_i32 = arith.constant 0 : i32
    %c0_i32_0 = arith.constant 0 : i32
    %c0_i32_1 = arith.constant 0 : i32
    return %arg0, %c0_i32, %c0_i32_0 : i32, i32, i32
  }
}

</mosaic_0001>

<bundles_post_ra>
// kernel: tpu_custom_call.1
= control target key start
LH: loop header
LB: loop body
LE: loop exit
PB: predicated region body
PF: predicated region fallthrough
CT: control target
= control target key end

     0   :  { %s10112_s0 = inlined_call_operand.hbm [shape: f32[8,8,128], index: 0, kind: input, shape index: {}]   ;;  %s10113_s1 = inlined_call_operand.hbm [shape: bf16[8,64], index: 1, kind: input, shape index: {}]   ;;  %s10114_s2 = inlined_call_operand.hbm [shape: f32[1,64], index: 2, kind: input, shape index: {}]   ;;  %s10115_s3 = inlined_call_operand.vmem [shape: bf16[8,8], index: 3, kind: input, shape index: {}]   ;;  %s10116_s4 = inlined_call_operand.hbm [shape: f32[1,8], index: 4, kind: input, shape index: {}]   ;;  %s10117_s5 = inlined_call_operand.hbm [shape: bf16[64,64], index: 5, kind: input, shape index: {}]   ;;  %s10118_s6 = inlined_call_operand.hbm [shape: f32[1,64], index: 6, kind: input, shape index: {}]   ;;  %s10119_s7 = inlined_call_operand.hbm [shape: bf16[8,16], index: 7, kind: input, shape index: {}]   ;;  %s10120_s8 = inlined_call_operand.hbm [shape: f32[1,16], index: 8, kind: input, shape index: {}]   ;;  %s10121_s9 = inlined_call_operand.hbm [shape: bf16[16,32], index: 9, kind: input, shape index: {}]   ;;  %s10122_s10 = inlined_call_operand.hbm [shape: f32[1,32], index: 10, kind: input, shape index: {}]   ;;  %s10123_s11 = inlined_call_operand.vmem [shape: bf16[32,64], index: 11, kind: input, shape index: {}]   ;;  %s10124_s12 = inlined_call_operand.hbm [shape: f32[1,64], index: 12, kind: input, shape index: {}]   ;;  %s10125_s13 = inlined_call_operand.hbm [shape: bf16[64,64], index: 13, kind: input, shape index: {}]   ;;  %s10126_s14 = inlined_call_operand.hbm [shape: f32[1,64], index: 14, kind: input, shape index: {}]   ;;  %s10127_s15 = inlined_call_operand.hbm [shape: bf16[64,64], index: 15, kind: input, shape index: {}]   ;;  %s10128_s16 = inlined_call_operand.hbm [shape: f32[1,64], index: 16, kind: input, shape index: {}]   ;;  %s10129_s17 = inlined_call_operand.hbm [shape: bf16[64,128], index: 17, kind: input, shape index: {}]   ;;  %s10130_s18 = inlined_call_operand.hbm [shape: f32[1,128], index: 18, kind: input, shape index: {}]   ;;  %s10131_s19 = inlined_call_operand.hbm [shape: bf16[128,256], index: 19, kind: input, shape index: {}]   ;;  %s10132_s20 = inlined_call_operand.hbm [shape: f32[1,256], index: 20, kind: input, shape index: {}]   ;;  %s10133_s21 = inlined_call_operand.hbm [shape: bf16[256,384], index: 21, kind: input, shape index: {}]   ;;  %s10134_s22 = inlined_call_operand.vmem [shape: f32[1,384], index: 22, kind: input, shape index: {}]   ;;  %s10135_s23 = inlined_call_operand.vmem [shape: bf16[128,128], index: 23, kind: input, shape index: {}]   ;;  %s10136_s24 = inlined_call_operand.vmem [shape: f32[1,128], index: 24, kind: input, shape index: {}]   ;;  %s10137_s25 = inlined_call_operand.vmem [shape: f32[8,6,128], index: 25, kind: output, shape index: {}]  }
   0x1   :  { %10167 = sst [smem:[#allocation47_spill]] %s10112_s0 }
   0x2   :  { %10168 = sst [smem:[#allocation48_spill]] %s10113_s1 }
   0x3   :  { %10169 = sst [smem:[#allocation49_spill]] %s10114_s2 }
   0x4   :  { %10170 = sst [smem:[#allocation50_spill]] %s10115_s3 }
   0x5   :  { %10171 = sst [smem:[#allocation51_spill]] %s10116_s4 }
   0x6   :  { %10172 = sst [smem:[#allocation52_spill]] %s10117_s5 }
   0x7   :  { %10173 = sst [smem:[#allocation53_spill]] %s10118_s6 }
   0x8   :  { %10174 = sst [smem:[#allocation54_spill]] %s10119_s7 }
   0x9   :  { %10175 = sst [smem:[#allocation55_spill]] %s10120_s8 }
   0xa   :  { %10176 = sst [smem:[#allocation56_spill]] %s10121_s9 }
   0xb   :  { %10177 = sst [smem:[#allocation57_spill]] %s10122_s10 }
   0xc   :  { %10178 = sst [smem:[#allocation58_spill]] %s10123_s11 }
   0xd   :  { %10179 = sst [smem:[#allocation59_spill]] %s10125_s13 }
   0xe   :  { %10180 = sst [smem:[#allocation60_spill]] %s10127_s15 }
   0xf   :  { %10181 = sst [smem:[#allocation61_spill]] %s10129_s17 }
  0x10   :  { %10182 = sst [smem:[#allocation62_spill]] %s10134_s22 }
  0x11   :  { %10183 = sst [smem:[#allocation63_spill]] %s10135_s23 }
  0x12   :  { %10184 = sst [smem:[#allocation64_spill]] %s10136_s24 }
  0x13   :  { %10185 = sst [smem:[#allocation65_spill]] %s10137_s25 }
  0x14   :  { %30 = vsyncpa [#allocation3], 0 }
  0x15   :  { %32 = vsyncpa [#allocation3 + $0x1], 0 }
  0x16   :  { %33 = vsyncpa [#allocation5], 0 }
  0x17   :  { %34 = vsyncpa [#allocation8], 0 }
  0x18   :  { %35 = vsyncpa [#allocation11], 0 }
  0x19   :  { %36 = vsyncpa [#allocation14], 0 }
  0x1a   :  { %37 = vsyncpa [#allocation17], 0 }
  0x1b   :  { %38 = vsyncpa [#allocation20], 0 }
  0x1c   :  { %39 = vsyncpa [#allocation23], 0 }
  0x1d   :  { %40 = vsyncpa [#allocation26], 0 }
  0x1e   :  { %41 = vsyncpa [#allocation29], 0 }
  0x1f   :  { %42 = vsyncpa [#allocation32], 0  ;;  %s8344_s29 = smov 0   ;;  %s8346_s2 = smov 0  }
  0x20   :  { %s8348_s6 = smov 0   ;;  %s8350_s30 = smov 0  }
  0x21 LB: > { %10186 = sst [smem:[#allocation44_spill]] %s8170_s29  ;;  %s8184_s7 = smov [#allocation4]   ;;  %s8182_s30 = sphi %s8350_s30, %s10229_s30   ;;  %s8178_s6 = sphi %s8348_s6, %s10228_s6   ;;  %s8174_s2 = sphi %s8346_s2, %s10227_s2   ;;  %s8170_s29 = sphi %s8344_s29, %s10226_s29  }
  0x22   : > { %s622_s3 = sshll.u32 %s8184_s7, 4  ;;  %s10147_s26 = sadd.s32 4294967295, %s8182_s30   ;;  %s8373_s3 = int_to_ptr.vmem [resolvable:$true] %s622_s3 }
  0x23   : > { %p5745_p0 = scmp.ge.s32.totalorder %s8182_s30, 1  ;;  %p8368_p1 = scmp.eq.s32.totalorder %s10147_s26, 0 }
  0x24   : > { %p609_p2 = scmp.lt.s32.totalorder %s8182_s30, 3  ;;  %s8185_s27 = smov [#allocation7]  }
  0x25   : > { %s10187_s1 = scalar_select %p8368_p1, 1, 0 }
  0x26   : > { %p8375_p3 = pnand %p5745_p0, %p609_p2  ;;  %s647_s4 = sshll.u32 %s8185_s27, 4  ;;  %s8381_s4 = int_to_ptr.vmem [resolvable:$true] %s647_s4 }
  0x27   : > { %10188 = sst [smem:[#allocation45_spill]] %s10187_s1  ;;  %s8186_s28 = smov [#allocation10]  }
  0x28   : > { %s10189_s8 = scalar_select %p8375_p3, 1, 0 }
  0x29   : > { %p6987_p4 = pneg %p8375_p3  ;;  %s671_s9 = sshll.u32 %s8186_s28, 4  ;;  %s8389_s9 = int_to_ptr.vmem [resolvable:$true] %s671_s9 }
  0x2a   : > { %10190 = sst [smem:[#allocation46_spill]] %s10189_s8  ;;  %s8187_s0 = smov [#allocation13]  }
  0x2b   : > { %p8385_p5 = pnand %p6987_p4, %p8368_p1  ;;  %s8391_s7 = sshll.u32 %s8187_s0, 4  ;;  %s694_s7 = int_to_ptr.vmem [resolvable:$true] %s8391_s7 }
  0x2c   : > { %s10192_s24 = sld [smem:[#allocation48_spill]] }
  0x2d   : > { %p8401_p7 = pneg %p8385_p5 }
  0x32   : > { %s7546_s22 = scalar_lea.hbm %s10192_s24, 64 }
  0x33   : > { %p7547_p6 = scmp.ne.s32.totalorder %s10192_s24, %s7546_s22  ;;  %p7553_p10 = scmp.lt.u32.totalorder %s7546_s22, %s10192_s24 }
  0x35   : > { %p7549_p8 = pnand %p8401_p7, %p7547_p6 }
  0x37   : > { %p7550_p9 = pneg %p7549_p8 }
  0x39   : > { %p7555_p11 = pnand %p7553_p10, %p7550_p9 }
  0x3b   : > { %7558 = shalt.err (!%p7555_p11)
}
  0x3c   : > { %s7559_s23 = scalar_lea.vmem %s8373_s3, 64  ;;  %p7567_p2 = scmp.lt.s32.totalorder %s8373_s3, %s8373_s3 }
  0x3d   : > { %p7560_p12 = scmp.ne.s32.totalorder %s8373_s3, %s7559_s23  ;;  %p7568_p4 = scmp.lt.s32.totalorder %s7559_s23, %s7559_s23 }
  0x3f   : > { %p7562_p13 = pnand %p7560_p12, %p8401_p7  ;;  %p7569_p6 = por %p7568_p4, %p7567_p2 }
  0x41   : > { %p7563_p0 = pneg %p7562_p13 }
  0x43   : > { %p7570_p8 = pnand %p7569_p6, %p7563_p0 }
  0x45   : > { %7573 = shalt.err (!%p7570_p8)
}
  0x46   : > { %6990 = dma.hbm_to_vmem [thread:$0]  (!%p8385_p5), %s10192_s24, 64, %s8373_s3, [#allocation5]  }
  0x47   : > { %s10194_s27 = sld [smem:[#allocation51_spill]] }
  0x4d   : > { %s7574_s0 = scalar_lea.hbm %s10194_s27, 16 }
  0x4e   : > { %p7575_p9 = scmp.ne.s32.totalorder %s10194_s27, %s7574_s0  ;;  %p7581_p12 = scmp.lt.u32.totalorder %s7574_s0, %s10194_s27 }
  0x50   : > { %p7577_p10 = pnand %p7575_p9, %p8401_p7 }
  0x52   : > { %p7578_p11 = pneg %p7577_p10 }
  0x54   : > { %p7583_p13 = pnand %p7581_p12, %p7578_p11 }
  0x56   : > { %7586 = shalt.err (!%p7583_p13)
}
  0x57   : > { %s7587_s3 = scalar_lea.vmem %s8381_s4, 16  ;;  %s7594_s1 = scalar_lea.vmem %s8381_s4, 32 }
  0x58   : > { %p7588_p0 = scmp.ne.s32.totalorder %s8381_s4, %s7587_s3  ;;  %p7595_p6 = scmp.lt.s32.totalorder %s8381_s4, %s8381_s4 }
  0x59   : > { %p7596_p8 = scmp.lt.s32.totalorder %s7594_s1, %s7587_s3 }
  0x5a   : > { %p7590_p2 = pnand %p7588_p0, %p8401_p7 }
  0x5b   : > { %p7597_p9 = por %p7596_p8, %p7595_p6 }
  0x5c   : > { %p7591_p4 = pneg %p7590_p2 }
  0x5e   : > { %p7598_p10 = pnand %p7597_p9, %p7591_p4 }
  0x60   : > { %7601 = shalt.err (!%p7598_p10)
}
  0x61   : > { %6996 = dma.hbm_to_vmem [thread:$0]  (!%p8385_p5), %s10194_s27, 16, %s8381_s4, [#allocation8]  }
  0x62   : > { %s10195_s25 = sld [smem:[#allocation53_spill]] }
  0x68   : > { %s7602_s26 = scalar_lea.hbm %s10195_s25, 16 }
  0x69   : > { %p7603_p11 = scmp.ne.s32.totalorder %s10195_s25, %s7602_s26  ;;  %p7609_p0 = scmp.lt.u32.totalorder %s7602_s26, %s10195_s25 }
  0x6b   : > { %p7605_p12 = pnand %p7603_p11, %p8401_p7 }
  0x6d   : > { %p7606_p13 = pneg %p7605_p12 }
  0x6f   : > { %p7611_p2 = pnand %p7609_p0, %p7606_p13 }
  0x71   : > { %7614 = shalt.err (!%p7611_p2)
}
  0x72   : > { %s7615_s4 = scalar_lea.vmem %s8389_s9, 16  ;;  %s7622_s29 = scalar_lea.vmem %s8389_s9, 32 }
  0x73   : > { %p7616_p4 = scmp.ne.s32.totalorder %s8389_s9, %s7615_s4  ;;  %p7623_p9 = scmp.lt.s32.totalorder %s8389_s9, %s8389_s9 }
  0x74   : > { %p7624_p10 = scmp.lt.s32.totalorder %s7622_s29, %s7615_s4 }
  0x75   : > { %p7618_p6 = pnand %p7616_p4, %p8401_p7 }
  0x76   : > { %p7625_p11 = por %p7624_p10, %p7623_p9 }
  0x77   : > { %p7619_p8 = pneg %p7618_p6 }
  0x79   : > { %p7626_p12 = pnand %p7625_p11, %p7619_p8 }
  0x7b   : > { %7629 = shalt.err (!%p7626_p12)
}
  0x7c   : > { %7002 = dma.hbm_to_vmem [thread:$0]  (!%p8385_p5), %s10195_s25, 16, %s8389_s9, [#allocation11]  }
  0x7d   : > { %s8188_s22 = smov [#allocation16]   ;;  %s10196_s3 = sld [smem:[#allocation55_spill]] }
  0x7e   : > { %s717_s26 = sshll.u32 %s8188_s22, 4  ;;  %s718_s26 = int_to_ptr.vmem [resolvable:$true] %s717_s26 }
  0x83   : > { %s7630_s1 = scalar_lea.hbm %s10196_s3, 16 }
  0x84   : > { %p7631_p13 = scmp.ne.s32.totalorder %s10196_s3, %s7630_s1  ;;  %p7637_p4 = scmp.lt.u32.totalorder %s7630_s1, %s10196_s3 }
  0x86   : > { %p7633_p0 = pnand %p7631_p13, %p8401_p7 }
  0x88   : > { %p7634_p2 = pneg %p7633_p0 }
  0x8a   : > { %p7639_p6 = pnand %p7637_p4, %p7634_p2 }
  0x8c   : > { %7642 = shalt.err (!%p7639_p6)
}
  0x8d   : > { %s7643_s9 = scalar_lea.vmem %s694_s7, 16  ;;  %s7650_s8 = scalar_lea.vmem %s694_s7, 32 }
  0x8e   : > { %p7644_p8 = scmp.ne.s32.totalorder %s694_s7, %s7643_s9  ;;  %p7651_p11 = scmp.lt.s32.totalorder %s694_s7, %s694_s7 }
  0x8f   : > { %p7652_p12 = scmp.lt.s32.totalorder %s7650_s8, %s7643_s9 }
  0x90   : > { %p7646_p9 = pnand %p7644_p8, %p8401_p7 }
  0x91   : > { %p7653_p3 = por %p7652_p12, %p7651_p11 }
  0x92   : > { %p7647_p10 = pneg %p7646_p9 }
  0x94   : > { %p7654_p1 = pnand %p7653_p3, %p7647_p10 }
  0x96   : > { %7657 = shalt.err (!%p7654_p1)
}
  0x97   : > { %7008 = dma.hbm_to_vmem [thread:$0]  (!%p8385_p5), %s10196_s3, 16, %s694_s7, [#allocation14]  }
  0x98   : > { %s10197_s10 = sld [smem:[#allocation57_spill]] }
  0x9e   : > { %s7658_s0 = scalar_lea.hbm %s10197_s10, 16 }
  0x9f   : > { %p7659_p13 = scmp.ne.s32.totalorder %s10197_s10, %s7658_s0  ;;  %p7665_p1 = scmp.lt.u32.totalorder %s7658_s0, %s10197_s10 }
  0xa1   : > { %p7661_p0 = pnand %p7659_p13, %p8401_p7 }
  0xa3   : > { %p7662_p3 = pneg %p7661_p0 }
  0xa5   : > { %p7667_p2 = pnand %p7665_p1, %p7662_p3 }
  0xa7   : > { %7670 = shalt.err (!%p7667_p2)
}
  0xa8   : > { %s7671_s9 = scalar_lea.vmem %s718_s26, 16  ;;  %s7678_s7 = scalar_lea.vmem %s718_s26, 32 }
  0xa9   : > { %p7672_p4 = scmp.ne.s32.totalorder %s718_s26, %s7671_s9  ;;  %p7679_p9 = scmp.lt.s32.totalorder %s718_s26, %s718_s26 }
  0xaa   : > { %p7680_p10 = scmp.lt.s32.totalorder %s7678_s7, %s7671_s9 }
  0xab   : > { %p7674_p6 = pnand %p7672_p4, %p8401_p7 }
  0xac   : > { %p7681_p11 = por %p7680_p10, %p7679_p9 }
  0xad   : > { %p7675_p8 = pneg %p7674_p6 }
  0xaf   : > { %p7682_p12 = pnand %p7681_p11, %p7675_p8 }
  0xb1   : > { %7685 = shalt.err (!%p7682_p12)
}
  0xb2   : > { %7014 = dma.hbm_to_vmem [thread:$0]  (!%p8385_p5), %s10197_s10, 16, %s718_s26, [#allocation17]  }
  0xb3   : > { %s8189_s22 = smov [#allocation19]   ;;  %s8190_s27 = smov [#allocation22]  }
  0xb4   : > { %s741_s24 = sshll.u32 %s8189_s22, 4  ;;  %s765_s0 = sshll.u32 %s8190_s27, 4  ;;  %s742_s24 = int_to_ptr.vmem [resolvable:$true] %s741_s24  ;;  %s766_s0 = int_to_ptr.vmem [resolvable:$true] %s765_s0 }
  0xb5   : > { %s10198_s13 = sld [smem:[#allocation59_spill]] }
  0xbb   : > { %s7686_s4 = scalar_lea.hbm %s10198_s13, 512 }
  0xbc   : > { %p7687_p13 = scmp.ne.s32.totalorder %s10198_s13, %s7686_s4  ;;  %p7693_p1 = scmp.lt.u32.totalorder %s7686_s4, %s10198_s13 }
  0xbe   : > { %p7689_p0 = pnand %p7687_p13, %p8401_p7 }
  0xc0   : > { %p7690_p3 = pneg %p7689_p0 }
  0xc2   : > { %p7695_p2 = pnand %p7693_p1, %p7690_p3 }
  0xc4   : > { %7698 = shalt.err (!%p7695_p2)
}
  0xc5   : > { %s7699_s26 = scalar_lea.vmem %s742_s24, 512  ;;  %p7707_p9 = scmp.lt.s32.totalorder %s742_s24, %s742_s24 }
  0xc6   : > { %p7700_p4 = scmp.ne.s32.totalorder %s742_s24, %s7699_s26  ;;  %p7708_p10 = scmp.lt.s32.totalorder %s7699_s26, %s7699_s26 }
  0xc8   : > { %p7702_p6 = pnand %p7700_p4, %p8401_p7  ;;  %p7709_p11 = por %p7708_p10, %p7707_p9 }
  0xca   : > { %p7703_p8 = pneg %p7702_p6 }
  0xcc   : > { %p7710_p12 = pnand %p7709_p11, %p7703_p8 }
  0xce   : > { %7713 = shalt.err (!%p7710_p12)
}
  0xcf   : > { %s10160_s11 = smov 64   ;;  %s10162_s22 = smov 4  }
  0xd0   : > { %7020 = dma.hbm_to_vmem [thread:$0]  (!%p8385_p5), %s10198_s13, 512, %s742_s24, [#allocation20], %s10160_s11, %s10160_s11, %s10162_s22  }
  0xd1   : > { %s10199_s15 = sld [smem:[#allocation60_spill]] }
  0xd7   : > { %s7714_s29 = scalar_lea.hbm %s10199_s15, 512 }
  0xd8   : > { %p7715_p13 = scmp.ne.s32.totalorder %s10199_s15, %s7714_s29  ;;  %p7721_p1 = scmp.lt.u32.totalorder %s7714_s29, %s10199_s15 }
  0xda   : > { %p7717_p0 = pnand %p7715_p13, %p8401_p7 }
  0xdc   : > { %p7718_p3 = pneg %p7717_p0 }
  0xde   : > { %p7723_p2 = pnand %p7721_p1, %p7718_p3 }
  0xe0   : > { %7726 = shalt.err (!%p7723_p2)
}
  0xe1   : > { %s7727_s27 = scalar_lea.vmem %s766_s0, 512  ;;  %p7735_p9 = scmp.lt.s32.totalorder %s766_s0, %s766_s0 }
  0xe2   : > { %p7728_p4 = scmp.ne.s32.totalorder %s766_s0, %s7727_s27  ;;  %p7736_p10 = scmp.lt.s32.totalorder %s7727_s27, %s7727_s27 }
  0xe4   : > { %p7730_p6 = pnand %p7728_p4, %p8401_p7  ;;  %p7737_p11 = por %p7736_p10, %p7735_p9 }
  0xe6   : > { %p7731_p8 = pneg %p7730_p6 }
  0xe8   : > { %p7738_p12 = pnand %p7737_p11, %p7731_p8 }
  0xea   : > { %7741 = shalt.err (!%p7738_p12)
}
  0xeb   : > { %7026 = dma.hbm_to_vmem [thread:$0]  (!%p8385_p5), %s10199_s15, 512, %s766_s0, [#allocation23], %s10160_s11, %s10160_s11, %s10162_s22  }
  0xec   : > { %s8193_s1 = smov [#allocation25]   ;;  %s8194_s29 = smov [#allocation28]  }
  0xed   : > { %s789_s4 = sshll.u32 %s8193_s1, 4  ;;  %s813_s9 = sshll.u32 %s8194_s29, 4  ;;  %s790_s4 = int_to_ptr.vmem [resolvable:$true] %s789_s4  ;;  %s814_s9 = int_to_ptr.vmem [resolvable:$true] %s813_s9 }
  0xee   : > { %s10200_s17 = sld [smem:[#allocation61_spill]] }
  0xf4   : > { %s7742_s26 = scalar_lea.hbm %s10200_s17, 512 }
  0xf5   : > { %p7743_p13 = scmp.ne.s32.totalorder %s10200_s17, %s7742_s26  ;;  %p7749_p1 = scmp.lt.u32.totalorder %s7742_s26, %s10200_s17 }
  0xf7   : > { %p7745_p0 = pnand %p7743_p13, %p8401_p7 }
  0xf9   : > { %p7746_p3 = pneg %p7745_p0 }
  0xfb   : > { %p7751_p2 = pnand %p7749_p1, %p7746_p3 }
  0xfd   : > { %7754 = shalt.err (!%p7751_p2)
}
  0xfe   : > { %s7755_s0 = scalar_lea.vmem %s790_s4, 512  ;;  %p7763_p9 = scmp.lt.s32.totalorder %s790_s4, %s790_s4 }
  0xff   : > { %p7756_p4 = scmp.ne.s32.totalorder %s790_s4, %s7755_s0  ;;  %p7764_p10 = scmp.lt.s32.totalorder %s7755_s0, %s7755_s0 }
 0x101   : > { %p7758_p6 = pnand %p7756_p4, %p8401_p7  ;;  %p7765_p11 = por %p7764_p10, %p7763_p9 }
 0x103   : > { %p7759_p8 = pneg %p7758_p6 }
 0x105   : > { %p7766_p12 = pnand %p7765_p11, %p7759_p8 }
 0x107   : > { %7769 = shalt.err (!%p7766_p12)
}
 0x108   : > { %7032 = dma.hbm_to_vmem [thread:$0]  (!%p8385_p5), %s10200_s17, 512, %s790_s4, [#allocation26], %s10160_s11, %s10160_s11, %s10162_s22  }
 0x109   : > { %s7770_s29 = scalar_lea.hbm %s10131_s19, 2048 }
 0x10a   : > { %p7771_p13 = scmp.ne.s32.totalorder %s10131_s19, %s7770_s29  ;;  %p7777_p1 = scmp.lt.u32.totalorder %s7770_s29, %s10131_s19 }
 0x10c   : > { %p7773_p0 = pnand %p7771_p13, %p8401_p7 }
 0x10e   : > { %p7774_p3 = pneg %p7773_p0 }
 0x110   : > { %p7779_p2 = pnand %p7777_p1, %p7774_p3 }
 0x112   : > { %7782 = shalt.err (!%p7779_p2)
}
 0x113   : > { %s7783_s24 = scalar_lea.vmem %s814_s9, 2048  ;;  %p7791_p9 = scmp.lt.s32.totalorder %s814_s9, %s814_s9 }
 0x114   : > { %p7784_p4 = scmp.ne.s32.totalorder %s814_s9, %s7783_s24  ;;  %p7792_p10 = scmp.lt.s32.totalorder %s7783_s24, %s7783_s24 }
 0x116   : > { %p7786_p6 = pnand %p7784_p4, %p8401_p7  ;;  %p7793_p11 = por %p7792_p10, %p7791_p9 }
 0x118   : > { %p7787_p8 = pneg %p7786_p6 }
 0x11a   : > { %p7794_p12 = pnand %p7793_p11, %p7787_p8 }
 0x11c   : > { %7797 = shalt.err (!%p7794_p12)
}
 0x11d   : > { %s10164_s4 = smov 128   ;;  %s10165_s0 = smov 8  }
 0x11e   : > { %7038 = dma.hbm_to_vmem [thread:$0]  (!%p8385_p5), %s10131_s19, 2048, %s814_s9, [#allocation29], %s10164_s4, %s10164_s4, %s10165_s0  }
 0x11f   : > { %s8197_s23 = smov [#allocation6]   ;;  %s8198_s29 = smov [#allocation9]  }
 0x120   : > { %s633_s1 = sshll.u32 %s8197_s23, 4  ;;  %s657_s7 = sshll.u32 %s8198_s29, 4  ;;  %s634_s1 = int_to_ptr.vmem [resolvable:$true] %s633_s1  ;;  %s658_s7 = int_to_ptr.vmem [resolvable:$true] %s657_s7 }
 0x121   : > { %s10201_s27 = sld [smem:[#allocation49_spill]] }
 0x127   : > { %s7798_s24 = scalar_lea.hbm %s10201_s27, 16 }
 0x128   : > { %p7799_p13 = scmp.ne.s32.totalorder %s10201_s27, %s7798_s24  ;;  %p7805_p1 = scmp.lt.u32.totalorder %s7798_s24, %s10201_s27 }
 0x12a   : > { %p7801_p0 = pnand %p7799_p13, %p8401_p7 }
 0x12c   : > { %p7802_p3 = pneg %p7801_p0 }
 0x12e   : > { %p7807_p2 = pnand %p7805_p1, %p7802_p3 }
 0x130   : > { %7810 = shalt.err (!%p7807_p2)
}
 0x131   : > { %s7811_s9 = scalar_lea.vmem %s634_s1, 16  ;;  %s7818_s10 = scalar_lea.vmem %s634_s1, 32 }
 0x132   : > { %p7812_p4 = scmp.ne.s32.totalorder %s634_s1, %s7811_s9  ;;  %p7819_p9 = scmp.lt.s32.totalorder %s634_s1, %s634_s1 }
 0x133   : > { %p7820_p10 = scmp.lt.s32.totalorder %s7818_s10, %s7811_s9 }
 0x134   : > { %p7814_p6 = pnand %p7812_p4, %p8401_p7 }
 0x135   : > { %p7821_p11 = por %p7820_p10, %p7819_p9 }
 0x136   : > { %p7815_p8 = pneg %p7814_p6 }
 0x138   : > { %p7822_p12 = pnand %p7821_p11, %p7815_p8 }
 0x13a   : > { %7825 = shalt.err (!%p7822_p12)
}
 0x13b   : > { %6993 = dma.hbm_to_vmem [thread:$0]  (!%p8385_p5), %s10201_s27, 16, %s634_s1, [#allocation5]  }
 0x13c   : > { %s10202_s3 = sld [smem:[#allocation52_spill]] }
 0x142   : > { %s7826_s23 = scalar_lea.hbm %s10202_s3, 512 }
 0x143   : > { %p7827_p13 = scmp.ne.s32.totalorder %s10202_s3, %s7826_s23  ;;  %p7833_p1 = scmp.lt.u32.totalorder %s7826_s23, %s10202_s3 }
 0x145   : > { %p7829_p0 = pnand %p7827_p13, %p8401_p7 }
 0x147   : > { %p7830_p3 = pneg %p7829_p0 }
 0x149   : > { %p7835_p2 = pnand %p7833_p1, %p7830_p3 }
 0x14b   : > { %7838 = shalt.err (!%p7835_p2)
}
 0x14c   : > { %s7839_s9 = scalar_lea.vmem %s658_s7, 512  ;;  %p7847_p9 = scmp.lt.s32.totalorder %s658_s7, %s658_s7 }
 0x14d   : > { %p7840_p4 = scmp.ne.s32.totalorder %s658_s7, %s7839_s9  ;;  %p7848_p10 = scmp.lt.s32.totalorder %s7839_s9, %s7839_s9 }
 0x14f   : > { %p7842_p6 = pnand %p7840_p4, %p8401_p7  ;;  %p7849_p11 = por %p7848_p10, %p7847_p9 }
 0x151   : > { %p7843_p8 = pneg %p7842_p6 }
 0x153   : > { %p7850_p12 = pnand %p7849_p11, %p7843_p8 }
 0x155   : > { %7853 = shalt.err (!%p7850_p12)
}
 0x156   : > { %s10203_s1 = smov 4   ;;  %s10204_s10 = smov 64  }
 0x157   : > { %6999 = dma.hbm_to_vmem [thread:$0]  (!%p8385_p5), %s10202_s3, 512, %s658_s7, [#allocation8], %s10204_s10, %s10204_s10, %s10203_s1  }
 0x158   : > { %s8199_s13 = smov [#allocation12]   ;;  %s8200_s23 = smov [#allocation15]  }
 0x159   : > { %s682_s15 = sshll.u32 %s8199_s13, 4  ;;  %s703_s29 = sshll.u32 %s8200_s23, 4  ;;  %s683_s15 = int_to_ptr.vmem [resolvable:$true] %s682_s15  ;;  %s704_s29 = int_to_ptr.vmem [resolvable:$true] %s703_s29 }
 0x15a   : > { %s10205_s24 = sld [smem:[#allocation54_spill]] }
 0x160   : > { %s7854_s9 = scalar_lea.hbm %s10205_s24, 64 }
 0x161   : > { %p7855_p13 = scmp.ne.s32.totalorder %s10205_s24, %s7854_s9  ;;  %p7861_p1 = scmp.lt.u32.totalorder %s7854_s9, %s10205_s24 }
 0x163   : > { %p7857_p0 = pnand %p7855_p13, %p8401_p7 }
 0x165   : > { %p7858_p3 = pneg %p7857_p0 }
 0x167   : > { %p7863_p2 = pnand %p7861_p1, %p7858_p3 }
 0x169   : > { %7866 = shalt.err (!%p7863_p2)
}
 0x16a   : > { %s7867_s7 = scalar_lea.vmem %s683_s15, 64  ;;  %p7875_p9 = scmp.lt.s32.totalorder %s683_s15, %s683_s15 }
 0x16b   : > { %p7868_p4 = scmp.ne.s32.totalorder %s683_s15, %s7867_s7  ;;  %p7876_p10 = scmp.lt.s32.totalorder %s7867_s7, %s7867_s7 }
 0x16d   : > { %p7870_p6 = pnand %p7868_p4, %p8401_p7  ;;  %p7877_p11 = por %p7876_p10, %p7875_p9 }
 0x16f   : > { %p7871_p8 = pneg %p7870_p6 }
 0x171   : > { %p7878_p12 = pnand %p7877_p11, %p7871_p8 }
 0x173   : > { %7881 = shalt.err (!%p7878_p12)
}
 0x174   : > { %7005 = dma.hbm_to_vmem [thread:$0]  (!%p8385_p5), %s10205_s24, 64, %s683_s15, [#allocation11]  }
 0x175   : > { %s10206_s13 = sld [smem:[#allocation56_spill]] }
 0x17b   : > { %s7882_s23 = scalar_lea.hbm %s10206_s13, 128 }
 0x17c   : > { %p7883_p13 = scmp.ne.s32.totalorder %s10206_s13, %s7882_s23  ;;  %p7889_p1 = scmp.lt.u32.totalorder %s7882_s23, %s10206_s13 }
 0x17e   : > { %p7885_p0 = pnand %p7883_p13, %p8401_p7 }
 0x180   : > { %p7886_p3 = pneg %p7885_p0 }
 0x182   : > { %p7891_p2 = pnand %p7889_p1, %p7886_p3 }
 0x184   : > { %7894 = shalt.err (!%p7891_p2)
}
 0x185   : > { %s7895_s7 = scalar_lea.vmem %s704_s29, 128  ;;  %p7903_p9 = scmp.lt.s32.totalorder %s704_s29, %s704_s29 }
 0x186   : > { %p7896_p4 = scmp.ne.s32.totalorder %s704_s29, %s7895_s7  ;;  %p7904_p10 = scmp.lt.s32.totalorder %s7895_s7, %s7895_s7 }
 0x188   : > { %p7898_p6 = pnand %p7896_p4, %p8401_p7  ;;  %p7905_p11 = por %p7904_p10, %p7903_p9 }
 0x18a   : > { %p7899_p8 = pneg %p7898_p6 }
 0x18c   : > { %p7906_p12 = pnand %p7905_p11, %p7899_p8 }
 0x18e   : > { %7909 = shalt.err (!%p7906_p12)
}
 0x18f   : > { %7011 = dma.hbm_to_vmem [thread:$0]  (!%p8385_p5), %s10206_s13, 128, %s704_s29, [#allocation14], %s10204_s10, %s10204_s10, %s10203_s1  }
 0x190   : > { %s8201_s0 = smov [#allocation18]   ;;  %s8202_s22 = smov [#allocation21]  }
 0x191   : > { %s731_s17 = sshll.u32 %s8201_s0, 4  ;;  %s755_s23 = sshll.u32 %s8202_s22, 4  ;;  %s732_s17 = int_to_ptr.vmem [resolvable:$true] %s731_s17  ;;  %s756_s23 = int_to_ptr.vmem [resolvable:$true] %s755_s23 }
 0x192   : > { %s7910_s9 = scalar_lea.hbm %s10124_s12, 16 }
 0x193   : > { %p7911_p13 = scmp.ne.s32.totalorder %s10124_s12, %s7910_s9  ;;  %p7917_p1 = scmp.lt.u32.totalorder %s7910_s9, %s10124_s12 }
 0x195   : > { %p7913_p0 = pnand %p7911_p13, %p8401_p7 }
 0x197   : > { %p7914_p3 = pneg %p7913_p0 }
 0x199   : > { %p7919_p2 = pnand %p7917_p1, %p7914_p3 }
 0x19b   : > { %7922 = shalt.err (!%p7919_p2)
}
 0x19c   : > { %s7923_s1 = scalar_lea.vmem %s732_s17, 16  ;;  %s7930_s10 = scalar_lea.vmem %s732_s17, 32 }
 0x19d   : > { %p7924_p4 = scmp.ne.s32.totalorder %s732_s17, %s7923_s1  ;;  %p7931_p9 = scmp.lt.s32.totalorder %s732_s17, %s732_s17 }
 0x19e   : > { %p7932_p10 = scmp.lt.s32.totalorder %s7930_s10, %s7923_s1 }
 0x19f   : > { %p7926_p6 = pnand %p7924_p4, %p8401_p7 }
 0x1a0   : > { %p7933_p11 = por %p7932_p10, %p7931_p9 }
 0x1a1   : > { %p7927_p8 = pneg %p7926_p6 }
 0x1a3   : > { %p7934_p12 = pnand %p7933_p11, %p7927_p8 }
 0x1a5   : > { %7937 = shalt.err (!%p7934_p12)
}
 0x1a6   : > { %7017 = dma.hbm_to_vmem [thread:$0]  (!%p8385_p5), %s10124_s12, 16, %s732_s17, [#allocation17]  }
 0x1a7   : > { %s7938_s22 = scalar_lea.hbm %s10126_s14, 16 }
 0x1a8   : > { %p7939_p13 = scmp.ne.s32.totalorder %s10126_s14, %s7938_s22  ;;  %p7945_p1 = scmp.lt.u32.totalorder %s7938_s22, %s10126_s14 }
 0x1aa   : > { %p7941_p0 = pnand %p7939_p13, %p8401_p7 }
 0x1ac   : > { %p7942_p3 = pneg %p7941_p0 }
 0x1ae   : > { %p7947_p2 = pnand %p7945_p1, %p7942_p3 }
 0x1b0   : > { %7950 = shalt.err (!%p7947_p2)
}
 0x1b1   : > { %s7951_s7 = scalar_lea.vmem %s756_s23, 16  ;;  %s7958_s17 = scalar_lea.vmem %s756_s23, 32 }
 0x1b2   : > { %p7952_p4 = scmp.ne.s32.totalorder %s756_s23, %s7951_s7  ;;  %p7959_p9 = scmp.lt.s32.totalorder %s756_s23, %s756_s23 }
 0x1b3   : > { %p7960_p10 = scmp.lt.s32.totalorder %s7958_s17, %s7951_s7 }
 0x1b4   : > { %p7954_p6 = pnand %p7952_p4, %p8401_p7 }
 0x1b5   : > { %p7961_p11 = por %p7960_p10, %p7959_p9 }
 0x1b6   : > { %p7955_p8 = pneg %p7954_p6 }
 0x1b8   : > { %p7962_p12 = pnand %p7961_p11, %p7955_p8 }
 0x1ba   : > { %7965 = shalt.err (!%p7962_p12)
}
 0x1bb   : > { %7023 = dma.hbm_to_vmem [thread:$0]  (!%p8385_p5), %s10126_s14, 16, %s756_s23, [#allocation20]  }
 0x1bc   : > { %s8203_s10 = smov [#allocation24]   ;;  %s8204_s4 = smov [#allocation27]  }
 0x1bd   : > { %s779_s29 = sshll.u32 %s8203_s10, 4  ;;  %s803_s3 = sshll.u32 %s8204_s4, 4  ;;  %s780_s29 = int_to_ptr.vmem [resolvable:$true] %s779_s29  ;;  %s804_s3 = int_to_ptr.vmem [resolvable:$true] %s803_s3 }
 0x1be   : > { %s7966_s8 = scalar_lea.hbm %s10128_s16, 16 }
 0x1bf   : > { %p7967_p13 = scmp.ne.s32.totalorder %s10128_s16, %s7966_s8  ;;  %p7973_p1 = scmp.lt.u32.totalorder %s7966_s8, %s10128_s16 }
 0x1c1   : > { %p7969_p0 = pnand %p7967_p13, %p8401_p7 }
 0x1c3   : > { %p7970_p3 = pneg %p7969_p0 }
 0x1c5   : > { %p7975_p2 = pnand %p7973_p1, %p7970_p3 }
 0x1c7   : > { %7978 = shalt.err (!%p7975_p2)
}
 0x1c8   : > { %s7979_s23 = scalar_lea.vmem %s780_s29, 16  ;;  %s7986_s17 = scalar_lea.vmem %s780_s29, 32 }
 0x1c9   : > { %p7980_p4 = scmp.ne.s32.totalorder %s780_s29, %s7979_s23  ;;  %p7987_p9 = scmp.lt.s32.totalorder %s780_s29, %s780_s29 }
 0x1ca   : > { %p7988_p10 = scmp.lt.s32.totalorder %s7986_s17, %s7979_s23 }
 0x1cb   : > { %p7982_p6 = pnand %p7980_p4, %p8401_p7 }
 0x1cc   : > { %p7989_p11 = por %p7988_p10, %p7987_p9 }
 0x1cd   : > { %p7983_p8 = pneg %p7982_p6 }
 0x1cf   : > { %p7990_p12 = pnand %p7989_p11, %p7983_p8 }
 0x1d1   : > { %7993 = shalt.err (!%p7990_p12)
}
 0x1d2   : > { %7029 = dma.hbm_to_vmem [thread:$0]  (!%p8385_p5), %s10128_s16, 16, %s780_s29, [#allocation23]  }
 0x1d3   : > { %s7994_s0 = scalar_lea.hbm %s10130_s18, 16 }
 0x1d4   : > { %p7995_p13 = scmp.ne.s32.totalorder %s10130_s18, %s7994_s0  ;;  %p8001_p1 = scmp.lt.u32.totalorder %s7994_s0, %s10130_s18 }
 0x1d6   : > { %p7997_p0 = pnand %p7995_p13, %p8401_p7 }
 0x1d8   : > { %p7998_p3 = pneg %p7997_p0 }
 0x1da   : > { %p8003_p2 = pnand %p8001_p1, %p7998_p3 }
 0x1dc   : > { %8006 = shalt.err (!%p8003_p2)
}
 0x1dd   : > { %s8007_s11 = scalar_lea.vmem %s804_s3, 16  ;;  %s8014_s29 = scalar_lea.vmem %s804_s3, 32 }
 0x1de   : > { %p8008_p4 = scmp.ne.s32.totalorder %s804_s3, %s8007_s11  ;;  %p8015_p9 = scmp.lt.s32.totalorder %s804_s3, %s804_s3 }
 0x1df   : > { %p8016_p10 = scmp.lt.s32.totalorder %s8014_s29, %s8007_s11 }
 0x1e0   : > { %p8010_p6 = pnand %p8008_p4, %p8401_p7 }
 0x1e1   : > { %p8017_p11 = por %p8016_p10, %p8015_p9 }
 0x1e2   : > { %p8011_p8 = pneg %p8010_p6 }
 0x1e4   : > { %p8018_p12 = pnand %p8017_p11, %p8011_p8 }
 0x1e6   : > { %8021 = shalt.err (!%p8018_p12)
}
 0x1e7   : > { %7035 = dma.hbm_to_vmem [thread:$0]  (!%p8385_p5), %s10130_s18, 16, %s804_s3, [#allocation26]  }
 0x1e8   : > { %s8205_s17 = smov [#allocation30]   ;;  %s8206_s1 = smov [#allocation31]  }
 0x1e9   : > { %s827_s15 = sshll.u32 %s8205_s17, 4  ;;  %s837_s10 = sshll.u32 %s8206_s1, 4  ;;  %s828_s15 = int_to_ptr.vmem [resolvable:$true] %s827_s15  ;;  %s838_s10 = int_to_ptr.vmem [resolvable:$true] %s837_s10 }
 0x1ea   : > { %s8022_s22 = scalar_lea.hbm %s10132_s20, 32 }
 0x1eb   : > { %p8023_p13 = scmp.ne.s32.totalorder %s10132_s20, %s8022_s22  ;;  %p8029_p1 = scmp.lt.u32.totalorder %s8022_s22, %s10132_s20 }
 0x1ed   : > { %p8025_p0 = pnand %p8023_p13, %p8401_p7 }
 0x1ef   : > { %p8026_p3 = pneg %p8025_p0 }
 0x1f1   : > { %p8031_p2 = pnand %p8029_p1, %p8026_p3 }
 0x1f3   : > { %8034 = shalt.err (!%p8031_p2)
}
 0x1f4   : > { %s8035_s3 = scalar_lea.vmem %s828_s15, 32  ;;  %p8043_p9 = scmp.lt.s32.totalorder %s828_s15, %s828_s15 }
 0x1f5   : > { %p8036_p4 = scmp.ne.s32.totalorder %s828_s15, %s8035_s3  ;;  %p8044_p10 = scmp.lt.s32.totalorder %s8035_s3, %s8035_s3 }
 0x1f7   : > { %p8038_p6 = pnand %p8036_p4, %p8401_p7  ;;  %p8045_p11 = por %p8044_p10, %p8043_p9 }
 0x1f9   : > { %p8039_p8 = pneg %p8038_p6 }
 0x1fb   : > { %p8046_p12 = pnand %p8045_p11, %p8039_p8 }
 0x1fd   : > { %8049 = shalt.err (!%p8046_p12)
}
 0x1fe   : > { %7041 = dma.hbm_to_vmem [thread:$0]  (!%p8385_p5), %s10132_s20, 32, %s828_s15, [#allocation29]  }
 0x1ff   : > { %s8050_s1 = scalar_lea.hbm %s10133_s21, 6144 }
 0x200   : > { %p8051_p13 = scmp.ne.s32.totalorder %s10133_s21, %s8050_s1  ;;  %p8057_p1 = scmp.lt.u32.totalorder %s8050_s1, %s10133_s21 }
 0x202   : > { %p8053_p0 = pnand %p8051_p13, %p8401_p7 }
 0x204   : > { %p8054_p3 = pneg %p8053_p0 }
 0x206   : > { %p8059_p2 = pnand %p8057_p1, %p8054_p3 }
 0x208   : > { %8062 = shalt.err (!%p8059_p2)
}
 0x209   : > { %s8063_s26 = scalar_lea.vmem %s838_s10, 6144  ;;  %p8071_p9 = scmp.lt.s32.totalorder %s838_s10, %s838_s10 }
 0x20a   : > { %p8064_p4 = scmp.ne.s32.totalorder %s838_s10, %s8063_s26  ;;  %p8072_p10 = scmp.lt.s32.totalorder %s8063_s26, %s8063_s26 }
 0x20c   : > { %p8066_p6 = pnand %p8064_p4, %p8401_p7  ;;  %p8073_p11 = por %p8072_p10, %p8071_p9 }
 0x20e   : > { %p8067_p8 = pneg %p8066_p6 }
 0x210   : > { %p8074_p12 = pnand %p8073_p11, %p8067_p8 }
 0x212   : > { %8077 = shalt.err (!%p8074_p12)
}
 0x213   : > { %s8207_s15 = smov 192   ;;  %s10207_s9 = sld [smem:[#allocation44_spill]] }
 0x214   : > { %s10208_s11 = sld [smem:[#allocation45_spill]]  ;;  %s8208_s28 = smov 12  }
 0x215   : > { %7044 = dma.hbm_to_vmem [thread:$0]  (!%p8385_p5), %s10133_s21, 6144, %s838_s10, [#allocation32], %s8207_s15, %s8207_s15, %s8208_s28  }
 0x216   : > { %s8778_s7 = sadd.s32 1, %s8182_s30   ;;  %s55_s17 = sadd.s32 1, %s8178_s6 }
 0x217   : > { %s52_s23 = ssub.s32 %s8182_s30, %s8778_s7  ;;  %p62_p13 = scmp.ne.s32.totalorder %s8178_s6, %s8174_s2 }
 0x218   : > { %p53_p7 = scmp.eq.s32.totalorder %s52_s23, 0  ;;  %p63_p0 = scmp.eq.s32.totalorder %s8182_s30, 0 }
 0x219   : > { %p68_p3 = scmp.ne.s32.totalorder %s8174_s2, %s10207_s9  ;;  %p7068_p6 = scmp.lt.s32.totalorder %s8182_s30, 2 }
 0x21a   : > { %s8789_s1 = scalar_select %p53_p7, %s8178_s6, %s55_s17  }
 0x21b   : > { %p64_p1 = por %p63_p0, %p62_p13  ;;  %p10209_p2 = scmp.ne.s32.totalorder %s10208_s11, 0 }
 0x21c   : > { %s860_s5 = sand.u32 1, %s8178_s6   ;;  %s6031_s0 = sshll.u32 %s8182_s30, 9 }
 0x21d   : > { %p8793_p4 = por %p10209_p2, %p68_p3  ;;  %s5766_s10 = sshll.u32 %s860_s5, 5 }
 0x21e   : > { %s10211_s26 = sld [smem:[#allocation47_spill]]  ;;  %s864_s9 = scalar_lea.vmem [#allocation2], %s5766_s10 }
 0x21f   : > { %s871_s28 = sshll.u32 %s864_s9, 4  ;;  %p8807_p5 = pnand %p7068_p6, %p64_p1  ;;  %s8805_s28 = int_to_ptr.vmem [resolvable:$true] %s871_s28 }
 0x220   : > { %s8811_s3 = scalar_lea.sflag [#allocation3], %s860_s5 }
 0x221   : > { %p8080_p9 = pneg %p8807_p5 }
 0x224   : > { %s8803_s15 = scalar_lea.hbm %s10211_s26, %s6031_s0  ;;  %s8083_s10 = scalar_lea.hbm %s10211_s26, 1024 }
 0x225   : > { %s8078_s29 = scalar_lea.hbm %s8803_s15, 512  ;;  %p8084_p12 = scmp.lt.u32.totalorder %s8803_s15, %s10211_s26 }
 0x226   : > { %p8079_p8 = scmp.ne.s32.totalorder %s8803_s15, %s8078_s29  ;;  %p8085_p7 = scmp.lt.u32.totalorder %s8083_s10, %s8078_s29 }
 0x227   : > { %p8087_p0 = scmp.lt.u32.totalorder %s8078_s29, %s8803_s15 }
 0x228   : > { %p8081_p10 = pnand %p8080_p9, %p8079_p8  ;;  %p8086_p13 = por %p8085_p7, %p8084_p12 }
 0x22a   : > { %p8082_p11 = pneg %p8081_p10  ;;  %p8088_p3 = por %p8087_p0, %p8086_p13 }
 0x22c   : > { %p8089_p1 = pnand %p8088_p3, %p8082_p11 }
 0x22e   : > { %8092 = shalt.err (!%p8089_p1)
}
 0x22f   : > { %s8093_s5 = scalar_lea.vmem %s8805_s28, 512  ;;  %s8209_s8 = smov [#allocation2]  }
 0x230   : > { %p8094_p2 = scmp.ne.s32.totalorder %s8805_s28, %s8093_s5  ;;  %s8098_s9 = sshll.u32 %s8209_s8, 4  ;;  %s8099_s9 = int_to_ptr.vmem [resolvable:$false] %s8098_s9 }
 0x231   : > { %s8100_s23 = scalar_lea.vmem %s8099_s9, 1024  ;;  %p8101_p10 = scmp.lt.s32.totalorder %s8805_s28, %s8099_s9 }
 0x232   : > { %p8096_p6 = pnand %p8094_p2, %p8080_p9  ;;  %p8102_p12 = scmp.lt.s32.totalorder %s8100_s23, %s8093_s5 }
 0x234   : > { %p8097_p8 = pneg %p8096_p6  ;;  %p8103_p7 = por %p8102_p12, %p8101_p10 }
 0x236   : > { %p8104_p13 = pnand %p8103_p7, %p8097_p8 }
 0x238   : > { %8107 = shalt.err (!%p8104_p13)
}
 0x239   : > { %s10213_s29 = smov 8   ;;  %s10214_s17 = smov 128  }
 0x23a   : > { %7048 = dma.hbm_to_vmem [thread:$0]  (!%p8807_p5), %s8803_s15, 512, %s8805_s28, %s8811_s3, %s10214_s17, %s10214_s17, %s10213_s29  }
 0x23b   : > { %s10215_s10 = sld [smem:[#allocation46_spill]] }
 0x241   : > { %p10216_p9 = scmp.ne.s32.totalorder %s10215_s10, 0 }
 0x242   : > { %s885_s0 = sand.u32 (!%p10216_p9), 1, %s8174_s2  }
 0x243   : > { %883 = sbr.rel (%p10216_p9) target bundleno = 5649 (0x1611), region = 120  ;;  %s5770_s22 = sshll.u32 (!%p10216_p9), %s885_s0, 5 }
 0x244   : > { %s886_s5 = scalar_lea.sflag (!%p10216_p9), [#allocation3], %s885_s0  ;;  %s8845_s8 = scalar_lea.vmem (!%p10216_p9), [#allocation2], %s5770_s22 }
 0x24a   : > { %8125 = dma.done.wait (%p8793_p4), %s886_s5, 512  }
 0x24b   : > { %8127 = vsyncadd (%p8793_p4), %s886_s5, 4294966784  ;;  %s10217_s11 = sld [smem:[#allocation45_spill]] }
 0x251   : > { %p10218_p11 = scmp.ne.s32.totalorder %s10217_s11, 0 }
 0x253   : > { %8129 = dma.done.wait (%p10218_p11), [#allocation5], 80  }
 0x254   : > { %8131 = vsyncadd (%p10218_p11), [#allocation5], 4294967216 }
 0x255   : > { %8133 = dma.done.wait (%p10218_p11), [#allocation8], 528  }
 0x256   : > { %8135 = vsyncadd (%p10218_p11), [#allocation8], 4294966768 }
 0x257   : > { %8137 = dma.done.wait (%p10218_p11), [#allocation11], 80  }
 0x258   : > { %8139 = vsyncadd (%p10218_p11), [#allocation11], 4294967216 }
 0x259   : > { %8141 = dma.done.wait (%p10218_p11), [#allocation14], 144  }
 0x25a   : > { %8143 = vsyncadd (%p10218_p11), [#allocation14], 4294967152 }
 0x25b   : > { %8145 = dma.done.wait (%p10218_p11), [#allocation17], 32  }
 0x25c   : > { %8147 = vsyncadd (%p10218_p11), [#allocation17], 4294967264 }
 0x25d   : > { %8149 = dma.done.wait (%p10218_p11), [#allocation20], 528  }
 0x25e   : > { %8151 = vsyncadd (%p10218_p11), [#allocation20], 4294966768 }
 0x25f   : > { %8153 = dma.done.wait (%p10218_p11), [#allocation23], 528  }
 0x260   : > { %8155 = vsyncadd (%p10218_p11), [#allocation23], 4294966768 }
 0x261   : > { %8157 = dma.done.wait (%p10218_p11), [#allocation26], 528  }
 0x262   : > { %8159 = vsyncadd (%p10218_p11), [#allocation26], 4294966768 }
 0x263   : > { %8161 = dma.done.wait (%p10218_p11), [#allocation29], 2080  }
 0x264   : > { %8163 = vsyncadd (%p10218_p11), [#allocation29], 4294965216 }
 0x265   : > { %8165 = dma.done.wait (%p10218_p11), [#allocation32], 6144  }
 0x266   : > { %8167 = vsyncadd (%p10218_p11), [#allocation32], 4294961152  ;;  %vm1091_vm0 = vcmask 1043456   ;;  %v1040_v0 = vld [vmem:[%s8845_s8] sm:$0xff]  ;;  %v5827_v1 = vld [vmem:[%s8845_s8 + $0x10] sm:$0xff]  ;;  %s10219_s28 = sld [smem:[#allocation50_spill]] }
 0x267   : > { %v1042_v2 = vpack.c.bf16 %v1040_v0, %v1040_v0  ;;  %v1755_v3 = vpack.c.bf16 %v5827_v1, %v5827_v1  ;;  %v1041_v4 = vld [vmem:[#allocation4] sm:$0xf]  ;;  %v5810_v8 = vld [vmem:[%s8845_s8 + $0x8] sm:$0xff]  ;;  %v5844_v9 = vld [vmem:[%s8845_s8 + $0x18] sm:$0xff]  ;;  %vm1066_vm1 = vcmask 64512   ;;  %vm1332_vm2 = vcmask 523264  }
 0x268   : > { %6897 = vmatprep.subr.msk.bf16.mxu0 %vm1091_vm0, %v1041_v4  ;;  %v8899_v6 = vsel %vm1091_vm0, %v1041_v4, 0  ;;  %v1411_v10 = vpack.c.bf16 %v5810_v8, %v5810_v8  ;;  %v2099_v11 = vpack.c.bf16 %v5844_v9, %v5844_v9  ;;  %v8984_v44 = vld [vmem:[#allocation6] ss:$0 sm:$0xff]  ;;  %v8986_v45 = vld [vmem:[#allocation7] ss:$0 sm:$0xff]  ;;  %vm8211_vm3 = vmmov 0  }
 0x269   : > { %1050 = vxpose.xlu0.c.b16.start.end [1/1] (short) %v1042_v2, 128  ;;  %1756 = vxpose.xlu1.c.b16.start.end [1/1] (short) %v1755_v3, 128  ;;  %vm2441_vm4 = vcmask 1040384   ;;  %vm2443_vm5 = vcmask 1041408   ;;  %vm2445_vm6 = vcmask 1042432   ;;  %vm2605_vm7 = vcmask 130048   ;;  %s10220_s23 = sld [smem:[#allocation58_spill]]  ;;  %s10221_s22 = sld [smem:[#allocation63_spill]] }
 0x26a   : > { %6294 = vmatpush3.bf16.msra.mxu0 %v8899_v6  ;;  %vm2674_vm8 = vcmask 261120   ;;  %s10222_s15 = sld [smem:[#allocation62_spill]]  ;;  %vm3549_vm9 = vcmask 1041409   ;;  %vm3552_vm10 = vcmask 1042434   ;;  %vm3555_vm11 = vcmask 1043459   ;;  %s10223_s4 = sld [smem:[#allocation64_spill]] }
 0x26b   : > { %6899 = vmatprep.subr.msk.bf16.mxu0 %vm1091_vm0, %v1041_v4  ;;  %vm3558_vm12 = vcmask 1044484   ;;  %vm3561_vm13 = vcmask 1045509   ;;  %vm3564_vm14 = vcmask 1046534   ;;  %vm3567_vm15 = vcmask 1047559   ;;  %s10225_s17 = sld [smem:[#allocation65_spill]] }
 0x26c   : > { %v1208_v5 = vld [vmem:[%s10219_s28] sm:$0xf] }
 0x26d   : > { %6898 = vmatprep.subr.msk.bf16.mxu1 %vm1091_vm0, %v1208_v5  ;;  %v8902_v7 = vsel %vm1091_vm0, %v1208_v5, 0 }
 0x26e   : > { %6312 = vmatpush3.bf16.msra.mxu1 %v8902_v7 }
 0x26f   : > { %6900 = vmatprep.subr.msk.bf16.mxu1 %vm1091_vm0, %v1208_v5 }
 0x286   : > { %1412 = vxpose.xlu0.c.b16.start.end [1/1] (short) %v1411_v10, 128  ;;  %2100 = vxpose.xlu1.c.b16.start.end [1/1] (short) %v2099_v11, 128 }
 0x2cf   : > { %v1058_v12 = vpop.trf.xlu0  ;;  %v1764_v20 = vpop.trf.xlu1 }
 0x2d0   : > { %6295 = vmatprep.mubr.msk.bf16.mxu0 %vm1066_vm1, %v1058_v12  ;;  %6313 = vmatprep.mubr.msk.bf16.mxu1 %vm1066_vm1, %v1058_v12 }
 0x2d3   : > { %v1059_v13 = vpop.trf.xlu0  ;;  %v1765_v23 = vpop.trf.xlu1 }
 0x2d4   : > { %6296 = vmatmul.mubr.msk.bf16.vlgmr.msra.gmra.mrb[0].mxu0 %vm1066_vm1, %v1059_v13  ;;  %6314 = vmatmul.mubr.msk.bf16.vlgmr.msra.gmra.mrb[0].mxu1 %vm1066_vm1, %v1059_v13 }
 0x2d5   : > { %6348 = vmatpush3.bf16.msra.mxu1 %v8902_v7  ;;  %6330 = vmatpush3.bf16.msra.mxu0 %v8899_v6 }
 0x2d6   : > { %6902 = vmatprep.subr.msk.bf16.mxu1 %vm1091_vm0, %v1208_v5  ;;  %6901 = vmatprep.subr.msk.bf16.mxu0 %vm1091_vm0, %v1041_v4 }
 0x2d7   : > { %v1060_v14 = vpop.trf.xlu0  ;;  %v1766_v25 = vpop.trf.xlu1 }
 0x2d8   : > { %6299 = vmatprep.mubr.msk.bf16.mxu0 %vm1066_vm1, %v1060_v14  ;;  %6317 = vmatprep.mubr.msk.bf16.mxu1 %vm1066_vm1, %v1060_v14 }
 0x2db   : > { %v1061_v15 = vpop.trf.xlu0  ;;  %v1767_v28 = vpop.trf.xlu1 }
 0x2dc   : > { %6300 = vmatmul.mubr.msk.bf16.gmra.mrb[4].mxu0 %vm1066_vm1, %v1061_v15  ;;  %6318 = vmatmul.mubr.msk.bf16.gmra.mrb[4].mxu1 %vm1066_vm1, %v1061_v15 }
 0x2df   : > { %v1062_v16 = vpop.trf.xlu0  ;;  %v1768_v30 = vpop.trf.xlu1 }
 0x2e0   : > { %6303 = vmatprep.mubr.msk.bf16.mxu0 %vm1066_vm1, %v1062_v16  ;;  %6321 = vmatprep.mubr.msk.bf16.mxu1 %vm1066_vm1, %v1062_v16 }
 0x2e3   : > { %v1063_v17 = vpop.trf.xlu0  ;;  %v1769_v33 = vpop.trf.xlu1 }
 0x2e4   : > { %6304 = vmatmul.mubr.msk.bf16.gmra.mrb[8].mxu0 %vm1066_vm1, %v1063_v17  ;;  %6322 = vmatmul.mubr.msk.bf16.gmra.mrb[8].mxu1 %vm1066_vm1, %v1063_v17 }
 0x2e7   : > { %v1064_v18 = vpop.trf.xlu0  ;;  %v1770_v34 = vpop.trf.xlu1 }
 0x2e8   : > { %6307 = vmatprep.mubr.msk.bf16.mxu0 %vm1066_vm1, %v1064_v18  ;;  %6325 = vmatprep.mubr.msk.bf16.mxu1 %vm1066_vm1, %v1064_v18 }
 0x2eb   : > { %v1065_v19 = vpop.trf.xlu0  ;;  %v1771_v35 = vpop.trf.xlu1 }
 0x2ec   : > { %6308 = vmatmul.mubr.msk.bf16.gmra.mrb[12].mxu0 %vm1066_vm1, %v1065_v19  ;;  %6326 = vmatmul.mubr.msk.bf16.gmra.mrb[12].mxu1 %vm1066_vm1, %v1065_v19 }
 0x2ef   : > { %v1420_v21 = vpop.trf.xlu0  ;;  %v2108_v36 = vpop.trf.xlu1 }
 0x2f0   : > { %6331 = vmatprep.mubr.msk.bf16.mxu0 %vm1066_vm1, %v1420_v21  ;;  %6349 = vmatprep.mubr.msk.bf16.mxu1 %vm1066_vm1, %v1420_v21 }
 0x2f3   : > { %v1421_v22 = vpop.trf.xlu0  ;;  %v2109_v37 = vpop.trf.xlu1 }
 0x2f4   : > { %6332 = vmatmul.mubr.msk.bf16.vlgmr.msra.gmra.mrb[16].mxu0 %vm1066_vm1, %v1421_v22  ;;  %6350 = vmatmul.mubr.msk.bf16.vlgmr.msra.gmra.mrb[16].mxu1 %vm1066_vm1, %v1421_v22 }
 0x2f5   : > { %6384 = vmatpush3.bf16.msra.mxu1 %v8902_v7  ;;  %6366 = vmatpush3.bf16.msra.mxu0 %v8899_v6 }
 0x2f6   : > { %6904 = vmatprep.subr.msk.bf16.mxu1 %vm1091_vm0, %v1208_v5  ;;  %6903 = vmatprep.subr.msk.bf16.mxu0 %vm1091_vm0, %v1041_v4 }
 0x2f7   : > { %v1422_v24 = vpop.trf.xlu0  ;;  %v2110_v38 = vpop.trf.xlu1 }
 0x2f8   : > { %6335 = vmatprep.mubr.msk.bf16.mxu0 %vm1066_vm1, %v1422_v24  ;;  %6353 = vmatprep.mubr.msk.bf16.mxu1 %vm1066_vm1, %v1422_v24 }
 0x2fb   : > { %v1423_v26 = vpop.trf.xlu0  ;;  %v2111_v39 = vpop.trf.xlu1 }
 0x2fc   : > { %6336 = vmatmul.mubr.msk.bf16.gmra.mrb[20].mxu0 %vm1066_vm1, %v1423_v26  ;;  %6354 = vmatmul.mubr.msk.bf16.gmra.mrb[20].mxu1 %vm1066_vm1, %v1423_v26 }
 0x2ff   : > { %v1424_v27 = vpop.trf.xlu0  ;;  %v2112_v40 = vpop.trf.xlu1 }
 0x300   : > { %6339 = vmatprep.mubr.msk.bf16.mxu0 %vm1066_vm1, %v1424_v27  ;;  %6357 = vmatprep.mubr.msk.bf16.mxu1 %vm1066_vm1, %v1424_v27 }
 0x303   : > { %v1425_v29 = vpop.trf.xlu0  ;;  %v2113_v41 = vpop.trf.xlu1 }
 0x304   : > { %6340 = vmatmul.mubr.msk.bf16.gmra.mrb[24].mxu0 %vm1066_vm1, %v1425_v29  ;;  %6358 = vmatmul.mubr.msk.bf16.gmra.mrb[24].mxu1 %vm1066_vm1, %v1425_v29 }
 0x307   : > { %v1426_v31 = vpop.trf.xlu0  ;;  %v2114_v42 = vpop.trf.xlu1 }
 0x308   : > { %6343 = vmatprep.mubr.msk.bf16.mxu0 %vm1066_vm1, %v1426_v31  ;;  %6361 = vmatprep.mubr.msk.bf16.mxu1 %vm1066_vm1, %v1426_v31 }
 0x30b   : > { %v1427_v32 = vpop.trf.xlu0  ;;  %v2115_v43 = vpop.trf.xlu1 }
 0x30c   : > { %6344 = vmatmul.mubr.msk.bf16.gmra.mrb[28].mxu0 %vm1066_vm1, %v1427_v32  ;;  %6362 = vmatmul.mubr.msk.bf16.gmra.mrb[28].mxu1 %vm1066_vm1, %v1427_v32 }
 0x30d   : > { %6367 = vmatprep.mubr.msk.bf16.mxu0 %vm1066_vm1, %v1764_v20  ;;  %6385 = vmatprep.mubr.msk.bf16.mxu1 %vm1066_vm1, %v1764_v20 }
 0x314   : > { %6368 = vmatmul.mubr.msk.bf16.vlgmr.msra.gmra.mrb[32].mxu0 %vm1066_vm1, %v1765_v23  ;;  %6386 = vmatmul.mubr.msk.bf16.vlgmr.msra.gmra.mrb[32].mxu1 %vm1066_vm1, %v1765_v23 }
 0x315   : > { %6371 = vmatprep.mubr.msk.bf16.mxu0 %vm1066_vm1, %v1766_v25  ;;  %6389 = vmatprep.mubr.msk.bf16.mxu1 %vm1066_vm1, %v1766_v25 }
 0x316   : > { %6420 = vmatpush3.bf16.msra.mxu1 %v8902_v7  ;;  %6402 = vmatpush3.bf16.msra.mxu0 %v8899_v6 }
 0x31c   : > { %6372 = vmatmul.mubr.msk.bf16.gmra.mrb[36].mxu0 %vm1066_vm1, %v1767_v28  ;;  %6390 = vmatmul.mubr.msk.bf16.gmra.mrb[36].mxu1 %vm1066_vm1, %v1767_v28 }
 0x31d   : > { %6375 = vmatprep.mubr.msk.bf16.mxu0 %vm1066_vm1, %v1768_v30  ;;  %6393 = vmatprep.mubr.msk.bf16.mxu1 %vm1066_vm1, %v1768_v30 }
 0x324   : > { %6376 = vmatmul.mubr.msk.bf16.gmra.mrb[40].mxu0 %vm1066_vm1, %v1769_v33  ;;  %6394 = vmatmul.mubr.msk.bf16.gmra.mrb[40].mxu1 %vm1066_vm1, %v1769_v33 }
 0x325   : > { %6379 = vmatprep.mubr.msk.bf16.mxu0 %vm1066_vm1, %v1770_v34  ;;  %6397 = vmatprep.mubr.msk.bf16.mxu1 %vm1066_vm1, %v1770_v34 }
 0x32c   : > { %6380 = vmatmul.mubr.msk.bf16.gmra.mrb[44].mxu0 %vm1066_vm1, %v1771_v35  ;;  %6398 = vmatmul.mubr.msk.bf16.gmra.mrb[44].mxu1 %vm1066_vm1, %v1771_v35 }
 0x32d   : > { %6403 = vmatprep.mubr.msk.bf16.mxu0 %vm1066_vm1, %v2108_v36  ;;  %6421 = vmatprep.mubr.msk.bf16.mxu1 %vm1066_vm1, %v2108_v36 }
 0x334   : > { %6404 = vmatmul.mubr.msk.bf16.vlgmr.msra.gmra.mrb[48].mxu0 %vm1066_vm1, %v2109_v37  ;;  %6422 = vmatmul.mubr.msk.bf16.vlgmr.msra.gmra.mrb[48].mxu1 %vm1066_vm1, %v2109_v37 }
 0x335   : > { %6407 = vmatprep.mubr.msk.bf16.mxu0 %vm1066_vm1, %v2110_v38  ;;  %6425 = vmatprep.mubr.msk.bf16.mxu1 %vm1066_vm1, %v2110_v38 }
 0x33c   : > { %6408 = vmatmul.mubr.msk.bf16.gmra.mrb[52].mxu0 %vm1066_vm1, %v2111_v39  ;;  %6426 = vmatmul.mubr.msk.bf16.gmra.mrb[52].mxu1 %vm1066_vm1, %v2111_v39 }
 0x33d   : > { %6411 = vmatprep.mubr.msk.bf16.mxu0 %vm1066_vm1, %v2112_v40  ;;  %6429 = vmatprep.mubr.msk.bf16.mxu1 %vm1066_vm1, %v2112_v40 }
 0x344   : > { %6412 = vmatmul.mubr.msk.bf16.gmra.mrb[56].mxu0 %vm1066_vm1, %v2113_v41  ;;  %6430 = vmatmul.mubr.msk.bf16.gmra.mrb[56].mxu1 %vm1066_vm1, %v2113_v41 }
 0x345   : > { %6415 = vmatprep.mubr.msk.bf16.mxu0 %vm1066_vm1, %v2114_v42  ;;  %6433 = vmatprep.mubr.msk.bf16.mxu1 %vm1066_vm1, %v2114_v42 }
 0x34c   : > { %6416 = vmatmul.mubr.msk.bf16.gmra.mrb[60].mxu0 %vm1066_vm1, %v2115_v43  ;;  %6434 = vmatmul.mubr.msk.bf16.gmra.mrb[60].mxu1 %vm1066_vm1, %v2115_v43 }
 0x3a7   : > { %v6297_v46 = vpop.f32.mrb[0].mxu0  ;;  %v6315_v47 = vpop.f32.mrb[0].mxu1 }
 0x3a8   : > { %v1138_v48 = vadd.f32 %v6297_v46, %v8984_v44  ;;  %v1262_v49 = vadd.f32 %v6315_v47, %v8986_v45  ;;  %v1129_v50 = vpop.f32.mrb[1].mxu0  ;;  %v1253_v51 = vpop.f32.mrb[1].mxu1 }
 0x3a9   : > { %v1130_v52 = vadd.f32 %v8984_v44, %v1129_v50  ;;  %v1254_v53 = vadd.f32 %v8986_v45, %v1253_v51  ;;  %v6298_v54 = vpop.f32.mrb[2].mxu0  ;;  %v6316_v55 = vpop.f32.mrb[2].mxu1 }
 0x3aa   : > { %v1141_v56 = vadd.f32 %v6298_v54, %v8984_v44  ;;  %v1132_v57 = vpop.f32.mrb[3].mxu0  ;;  %v1256_v58 = vpop.f32.mrb[3].mxu1  ;;  %v1194_v59 = vmax.f32 %v1138_v48, 0.0  ;;  %v1265_v61 = vadd.f32 %v6316_v55, %v8986_v45  ;;  %v1318_v63 = vmax.f32 %v1262_v49, 0.0 }
 0x3ab   : > { %v1316_v60 = vmax.f32 %v1254_v53, 0.0  ;;  %v1257_v62 = vadd.f32 %v8986_v45, %v1256_v58  ;;  %v1192_v0 = vmax.f32 %v1130_v52, 0.0  ;;  %v1133_v1 = vadd.f32 %v8984_v44, %v1132_v57 }
 0x3ac   : > { %v1195_v3 = vmax.f32 %v1141_v56, 0.0  ;;  %v8997_v4 = vsel %vm1332_vm2, %v1194_v59, -inf  ;;  %v1319_v6 = vmax.f32 %v1265_v61, 0.0  ;;  %v1373_v10 = vsel %vm1066_vm1, %v1318_v63, 0.0 }
 0x3ad   : > { %v1317_v2 = vmax.f32 %v1257_v62, 0.0  ;;  %v1370_v5 = vsel %vm1066_vm1, %v1316_v60, 0.0  ;;  %v9003_v11 = vsel %vm1332_vm2, %v1192_v0, -inf  ;;  %v1193_v16 = vmax.f32 %v1133_v1, 0.0 }
 0x3ae   : > { %v9010_v22 = vsel %vm1332_vm2, %v1195_v3, -inf  ;;  %v1375_v28 = vsel %vm1066_vm1, %v1319_v6, 0.0 }
 0x3af   : > { %v1371_v7 = vsel %vm1066_vm1, %v1317_v2, 0.0  ;;  %v6301_v8 = vpop.f32.mrb[4].mxu0  ;;  %v6319_v9 = vpop.f32.mrb[4].mxu1  ;;  %v1334_v46 = vsel %vm1332_vm2, %v1193_v16, -inf }
 0x3b0   : > { %v1372_v12 = vadd.f32 %v1371_v7, %v1370_v5  ;;  %v1154_v13 = vadd.f32 %v6301_v8, %v8984_v44  ;;  %v1145_v14 = vpop.f32.mrb[5].mxu0  ;;  %v1269_v15 = vpop.f32.mrb[5].mxu1  ;;  %v1278_v17 = vadd.f32 %v6319_v9, %v8986_v45 }
 0x3b1   : > { %v1146_v18 = vadd.f32 %v8984_v44, %v1145_v14  ;;  %v1270_v19 = vadd.f32 %v8986_v45, %v1269_v15  ;;  %v6302_v20 = vpop.f32.mrb[6].mxu0  ;;  %v6320_v21 = vpop.f32.mrb[6].mxu1 }
 0x3b2   : > { %v1374_v23 = vadd.f32 %v1373_v10, %v1372_v12  ;;  %v1198_v24 = vmax.f32 %v1154_v13, 0.0  ;;  %v1157_v25 = vadd.f32 %v6302_v20, %v8984_v44  ;;  %v1148_v26 = vpop.f32.mrb[7].mxu0  ;;  %v1272_v27 = vpop.f32.mrb[7].mxu1  ;;  %v1281_v35 = vadd.f32 %v6320_v21, %v8986_v45 }
 0x3b3   : > { %v1196_v29 = vmax.f32 %v1146_v18, 0.0  ;;  %v1320_v30 = vmax.f32 %v1270_v19, 0.0  ;;  %v1149_v31 = vadd.f32 %v8984_v44, %v1148_v26  ;;  %v1322_v37 = vmax.f32 %v1278_v17, 0.0  ;;  %v7149_v17 = vld [vmem:[#allocation9] sm:$0xff]  }
 0x3b4   : > { %v1341_v32 = vsel %vm1332_vm2, %v1198_v24, -inf  ;;  %v1376_v33 = vadd.f32 %v1375_v28, %v1374_v23  ;;  %v1199_v34 = vmax.f32 %v1157_v25, 0.0  ;;  %v1273_v48 = vadd.f32 %v8986_v45, %v1272_v27 }
 0x3b5   : > { %v1342_v36 = vmax.f32 %v8997_v4, %v1341_v32  ;;  %v1337_v38 = vsel %vm1332_vm2, %v1196_v29, -inf  ;;  %v1377_v39 = vsel %vm1066_vm1, %v1320_v30, 0.0  ;;  %v1197_v43 = vmax.f32 %v1149_v31, 0.0 }
 0x3b6   : > { %v1338_v40 = vmax.f32 %v9003_v11, %v1337_v38  ;;  %v1378_v41 = vadd.f32 %v1377_v39, %v1376_v33  ;;  %v1343_v42 = vsel %vm1332_vm2, %v1199_v34, -inf  ;;  %v1323_v51 = vmax.f32 %v1281_v35, 0.0 }
 0x3b7   : > { %v1344_v47 = vmax.f32 %v9010_v22, %v1343_v42  ;;  %v6305_v49 = vpop.f32.mrb[8].mxu0  ;;  %v6323_v50 = vpop.f32.mrb[8].mxu1  ;;  %v1339_v52 = vsel %vm1332_vm2, %v1197_v43, -inf  ;;  %v1321_v58 = vmax.f32 %v1273_v48, 0.0  ;;  %v1381_v63 = vsel %vm1066_vm1, %v1322_v37, 0.0 }
 0x3b8   : > { %v1170_v53 = vadd.f32 %v6305_v49, %v8984_v44  ;;  %v9028_v54 = vadd.f32 %v6323_v50, %v8986_v45  ;;  %v1161_v55 = vpop.f32.mrb[9].mxu0  ;;  %v1285_v56 = vpop.f32.mrb[9].mxu1  ;;  %v1340_v57 = vmax.f32 %v1334_v46, %v1339_v52  ;;  %v1383_v9 = vsel %vm1066_vm1, %v1323_v51, 0.0 }
 0x3b9   : > { %v1162_v59 = vadd.f32 %v8984_v44, %v1161_v55  ;;  %v1286_v60 = vadd.f32 %v8986_v45, %v1285_v56  ;;  %v6306_v61 = vpop.f32.mrb[10].mxu0  ;;  %v6324_v62 = vpop.f32.mrb[10].mxu1  ;;  %v1379_v5 = vsel %vm1066_vm1, %v1321_v58, 0.0  ;;  %v8210_v33 = vmov 0.0  }
 0x3ba   : > { %v1202_v0 = vmax.f32 %v1170_v53, 0.0  ;;  %v1173_v1 = vadd.f32 %v6306_v61, %v8984_v44  ;;  %v1297_v2 = vadd.f32 %v6324_v62, %v8986_v45  ;;  %v1164_v3 = vpop.f32.mrb[11].mxu0  ;;  %v1288_v4 = vpop.f32.mrb[11].mxu1  ;;  %v1380_v10 = vadd.f32 %v1379_v5, %v1378_v41  ;;  %6449 = vmatprep.subr.bf16.mxu1 %v8210_v33  ;;  %6437 = vmatprep.subr.bf16.mxu0 %v8210_v33 }
 0x3bb   : > { %v1200_v6 = vmax.f32 %v1162_v59, 0.0  ;;  %v1324_v7 = vmax.f32 %v1286_v60, 0.0  ;;  %v1165_v8 = vadd.f32 %v8984_v44, %v1164_v3  ;;  %v1326_v14 = vmax.f32 %v9028_v54, 0.0  ;;  %6438 = vmatpush3.bf16.msra.mxu0 %v7149_v17  ;;  %v7151_v60 = vld [vmem:[#allocation9 + $0x10] sm:$0xff]   ;;  %6445 = vmatprep.mubr.msk.bf16.mxu0 %vm8211_vm3, %v8210_v33 }
 0x3bc   : > { %v1349_v11 = vsel %vm1332_vm2, %v1202_v0, -inf  ;;  %v1203_v12 = vmax.f32 %v1173_v1, 0.0  ;;  %v1382_v18 = vadd.f32 %v1381_v63, %v1380_v10  ;;  %v1327_v23 = vmax.f32 %v1297_v2, 0.0  ;;  %6439 = vmatprep.subr.bf16.mxu0 %v8210_v33  ;;  %6451 = vmatprep.mubr.msk.bf16.mxu1 %vm8211_vm3, %v8210_v33 }
 0x3bd   : > { %v9039_v13 = vmax.f32 %v1342_v36, %v1349_v11  ;;  %v1345_v15 = vsel %vm1332_vm2, %v1200_v6, -inf  ;;  %v1385_v16 = vsel %vm1066_vm1, %v1324_v7, 0.0  ;;  %v1201_v21 = vmax.f32 %v1165_v8, 0.0 }
 0x3be   : > { %v9044_v19 = vmax.f32 %v1338_v40, %v1345_v15  ;;  %v1351_v20 = vsel %vm1332_vm2, %v1203_v12, -inf  ;;  %v1289_v24 = vadd.f32 %v8986_v45, %v1288_v4  ;;  %v1384_v27 = vadd.f32 %v1383_v9, %v1382_v18  ;;  %v7150_v40 = vld [vmem:[#allocation9 + $0x8] sm:$0xff]  }
 0x3bf   : > { %v1352_v22 = vmax.f32 %v1344_v47, %v1351_v20  ;;  %v6309_v25 = vpop.f32.mrb[12].mxu0  ;;  %v6327_v26 = vpop.f32.mrb[12].mxu1  ;;  %v1347_v28 = vsel %vm1332_vm2, %v1201_v21, -inf  ;;  %v1389_v52 = vsel %vm1066_vm1, %v1326_v14, 0.0  ;;  %v1391_v56 = vsel %vm1066_vm1, %v1327_v23, 0.0  ;;  %6440 = vmatpush3.bf16.msra.mxu0 %v7150_v40 }
 0x3c0   : > { %v1186_v29 = vadd.f32 %v6309_v25, %v8984_v44  ;;  %v9051_v30 = vadd.f32 %v6327_v26, %v8986_v45  ;;  %v1177_v31 = vpop.f32.mrb[13].mxu0  ;;  %v1301_v32 = vpop.f32.mrb[13].mxu1  ;;  %v9055_v34 = vmax.f32 %v1340_v57, %v1347_v28  ;;  %v1325_v35 = vmax.f32 %v1289_v24, 0.0  ;;  %6441 = vmatprep.subr.bf16.mxu0 %v8210_v33 }
 0x3c1   : > { %v1178_v36 = vadd.f32 %v8984_v44, %v1177_v31  ;;  %v1302_v37 = vadd.f32 %v8986_v45, %v1301_v32  ;;  %v6310_v38 = vpop.f32.mrb[14].mxu0  ;;  %v6328_v39 = vpop.f32.mrb[14].mxu1  ;;  %v1386_v41 = vadd.f32 %v1385_v16, %v1384_v27 }
 0x3c2   : > { %v1206_v42 = vmax.f32 %v1186_v29, 0.0  ;;  %v1189_v43 = vadd.f32 %v6310_v38, %v8984_v44  ;;  %v1180_v46 = vpop.f32.mrb[15].mxu0  ;;  %v1304_v47 = vpop.f32.mrb[15].mxu1  ;;  %v1387_v48 = vsel %vm1066_vm1, %v1325_v35, 0.0  ;;  %v1313_v51 = vadd.f32 %v6328_v39, %v8986_v45 }
 0x3c3   : > { %v1204_v49 = vmax.f32 %v1178_v36, 0.0  ;;  %v1328_v50 = vmax.f32 %v1302_v37, 0.0  ;;  %v1388_v53 = vadd.f32 %v1387_v48, %v1386_v41  ;;  %v1330_v58 = vmax.f32 %v9051_v30, 0.0  ;;  %6442 = vmatpush3.bf16.msra.mxu0 %v7151_v60  ;;  %v2533_v36 = vld [vmem:[#allocation12] sm:$0xf] }
 0x3c4   : > { %v1357_v54 = vsel %vm1332_vm2, %v1206_v42, -inf  ;;  %v1207_v55 = vmax.f32 %v1189_v43, 0.0  ;;  %v1181_v0 = vadd.f32 %v8984_v44, %v1180_v46  ;;  %v1331_v3 = vmax.f32 %v1313_v51, 0.0  ;;  %6443 = vmatprep.subr.bf16.mxu0 %v8210_v33 }
 0x3c5   : > { %v1358_v57 = vmax.f32 %v9039_v13, %v1357_v54  ;;  %v1353_v59 = vsel %vm1332_vm2, %v1204_v49, -inf  ;;  %v1390_v61 = vadd.f32 %v1389_v52, %v1388_v53  ;;  %v1393_v1 = vsel %vm1066_vm1, %v1328_v50, 0.0 }
 0x3c6   : > { %v1354_v62 = vmax.f32 %v9044_v19, %v1353_v59  ;;  %v1359_v63 = vsel %vm1332_vm2, %v1207_v55, -inf  ;;  %v1305_v4 = vadd.f32 %v8986_v45, %v1304_v47  ;;  %v1205_v8 = vmax.f32 %v1181_v0, 0.0  ;;  %v7152_v19 = vld [vmem:[#allocation9 + $0x18] sm:$0xff]  }
 0x3c7   : > { %v1360_v2 = vmax.f32 %v1352_v22, %v1359_v63  ;;  %v6333_v5 = vpop.f32.mrb[16].mxu0  ;;  %v6351_v6 = vpop.f32.mrb[16].mxu1  ;;  %v1392_v7 = vadd.f32 %v1391_v56, %v1390_v61  ;;  %v1397_v26 = vsel %vm1066_vm1, %v1330_v58, 0.0  ;;  %v1399_v27 = vsel %vm1066_vm1, %v1331_v3, 0.0  ;;  %6444 = vmatpush3.bf16.msra.mxu0 %v7152_v19 }
 0x3c8   : > { %v1495_v9 = vadd.f32 %v6333_v5, %v8984_v44  ;;  %v1608_v10 = vadd.f32 %v6351_v6, %v8986_v45  ;;  %v1486_v11 = vpop.f32.mrb[17].mxu0  ;;  %v1599_v12 = vpop.f32.mrb[17].mxu1  ;;  %v1329_v14 = vmax.f32 %v1305_v4, 0.0  ;;  %v1355_v21 = vsel %vm1332_vm2, %v1205_v8, -inf  ;;  %6455 = vmatprep.subr.bf16.mxu0 %v8210_v33 }
 0x3c9   : > { %v1362_v13 = vmax.f32 %v1358_v57, %v1360_v2  ;;  %v1487_v15 = vadd.f32 %v8984_v44, %v1486_v11  ;;  %v1600_v16 = vadd.f32 %v8986_v45, %v1599_v12  ;;  %v6334_v17 = vpop.f32.mrb[18].mxu0  ;;  %v6352_v18 = vpop.f32.mrb[18].mxu1  ;;  %v1394_v20 = vadd.f32 %v1393_v1, %v1392_v7 }
 0x3ca   : > { %v1551_v22 = vmax.f32 %v1495_v9, 0.0  ;;  %v1664_v23 = vmax.f32 %v1608_v10, 0.0  ;;  %v1489_v24 = vpop.f32.mrb[19].mxu0  ;;  %v1602_v25 = vpop.f32.mrb[19].mxu1  ;;  %v1356_v28 = vmax.f32 %v9055_v34, %v1355_v21  ;;  %v1395_v29 = vsel %vm1066_vm1, %v1329_v14, 0.0 }
 0x3cb   : > { %v1396_v30 = vadd.f32 %v1395_v29, %v1394_v20  ;;  %v1549_v31 = vmax.f32 %v1487_v15, 0.0  ;;  %v1662_v32 = vmax.f32 %v1600_v16, 0.0  ;;  %v1498_v35 = vadd.f32 %v6334_v17, %v8984_v44 }
 0x3cc   : > { %v1361_v37 = vmax.f32 %v1354_v62, %v1356_v28  ;;  %v9087_v38 = vsel %vm1332_vm2, %v1551_v22, -inf  ;;  %v1718_v39 = vsel %vm1066_vm1, %v1664_v23, 0.0  ;;  %v1611_v40 = vadd.f32 %v6352_v18, %v8986_v45 }
 0x3cd   : > { %v1398_v41 = vadd.f32 %v1397_v26, %v1396_v30  ;;  %v1552_v42 = vmax.f32 %v1498_v35, 0.0  ;;  %v9092_v34 = vadd.f32 %v8984_v44, %v1489_v24  ;;  %v1603_v43 = vadd.f32 %v8986_v45, %v1602_v25 }
 0x3ce   : > { %v1363_v46 = vmax.f32 %v1361_v37, %v1362_v13  ;;  %v1665_v47 = vmax.f32 %v1611_v40, 0.0  ;;  %v2546_v50 = vsel %vm1091_vm0, %v2533_v36, 0  ;;  %v9098_v52 = vsel %vm1332_vm2, %v1549_v31, -inf }
 0x3cf   : > { %v6337_v48 = vpop.f32.mrb[20].mxu0  ;;  %v6355_v49 = vpop.f32.mrb[20].mxu1  ;;  %v1400_v51 = vadd.f32 %v1399_v27, %v1398_v41  ;;  %v1715_v53 = vsel %vm1066_vm1, %v1662_v32, 0.0  ;;  %v1663_v54 = vmax.f32 %v1603_v43, 0.0  ;;  %6450 = vmatpush3.bf16.msra.mxu1 %v2546_v50  ;;  %v9104_v58 = vsel %vm1332_vm2, %v1552_v42, -inf }
 0x3d0   : > { %v1502_v55 = vpop.f32.mrb[21].mxu0  ;;  %v1615_v56 = vpop.f32.mrb[21].mxu1  ;;  %v1364_v57 = vrot.slane %v1363_v46, 4  ;;  %v1511_v59 = vadd.f32 %v6337_v48, %v8984_v44  ;;  %v1624_v60 = vadd.f32 %v6355_v49, %v8986_v45  ;;  %6461 = vmatprep.subr.bf16.mxu1 %v8210_v33  ;;  %v1550_v0 = vmax.f32 %v9092_v34, 0.0 }
 0x3d1   : > { %v6338_v61 = vpop.f32.mrb[22].mxu0  ;;  %v6356_v62 = vpop.f32.mrb[22].mxu1  ;;  %v1401_v63 = vrot.slane %v1400_v51, 4  ;;  %v1716_v1 = vsel %vm1066_vm1, %v1663_v54, 0.0  ;;  %v1503_v2 = vadd.f32 %v8984_v44, %v1502_v55  ;;  %v1720_v6 = vsel %vm1066_vm1, %v1665_v47, 0.0 }
 0x3d2   : > { %v1505_v3 = vpop.f32.mrb[23].mxu0  ;;  %v1618_v4 = vpop.f32.mrb[23].mxu1  ;;  %v1365_v5 = vmax.f32 %v1363_v46, %v1364_v57  ;;  %v1717_v7 = vadd.f32 %v1716_v1, %v1715_v53  ;;  %v1555_v8 = vmax.f32 %v1511_v59, 0.0  ;;  %v1616_v11 = vadd.f32 %v8986_v45, %v1615_v56 }
 0x3d3   : > { %v1402_v9 = vadd.f32 %v1401_v63, %v1400_v51  ;;  %v1553_v10 = vmax.f32 %v1503_v2, 0.0  ;;  %v1514_v12 = vadd.f32 %v6338_v61, %v8984_v44  ;;  %v1668_v16 = vmax.f32 %v1624_v60, 0.0 }
 0x3d4   : > { %v1366_v13 = vrot.slane %v1365_v5, 2  ;;  %v1719_v14 = vadd.f32 %v1718_v39, %v1717_v7  ;;  %v1686_v15 = vsel %vm1332_vm2, %v1555_v8, -inf  ;;  %v1666_v20 = vmax.f32 %v1616_v11, 0.0 }
 0x3d5   : > { %v1403_v17 = vrot.slane %v1402_v9, 2  ;;  %v1687_v18 = vmax.f32 %v9087_v38, %v1686_v15  ;;  %v1682_v19 = vsel %vm1332_vm2, %v1553_v10, -inf  ;;  %v1556_v24 = vmax.f32 %v1514_v12, 0.0 }
 0x3d6   : > { %v1367_v21 = vmax.f32 %v1365_v5, %v1366_v13  ;;  %v1683_v22 = vmax.f32 %v9098_v52, %v1682_v19  ;;  %v1721_v23 = vadd.f32 %v1720_v6, %v1719_v14  ;;  %v1722_v28 = vsel %vm1066_vm1, %v1666_v20, 0.0 }
 0x3d7   : > { %v6341_v25 = vpop.f32.mrb[24].mxu0  ;;  %v6359_v26 = vpop.f32.mrb[24].mxu1  ;;  %v1404_v27 = vadd.f32 %v1403_v17, %v1402_v9  ;;  %v1627_v29 = vadd.f32 %v6356_v62, %v8986_v45  ;;  %v1506_v30 = vadd.f32 %v8984_v44, %v1505_v3  ;;  %v1688_v37 = vsel %vm1332_vm2, %v1556_v24, -inf }
 0x3d8   : > { %v1518_v31 = vpop.f32.mrb[25].mxu0  ;;  %v1631_v32 = vpop.f32.mrb[25].mxu1  ;;  %v1368_v35 = vrot.slane %v1367_v21, 1  ;;  %v1723_v36 = vadd.f32 %v1722_v28, %v1721_v23  ;;  %v1619_v38 = vadd.f32 %v8986_v45, %v1618_v4  ;;  %v1689_v42 = vmax.f32 %v9104_v58, %v1688_v37 }
 0x3d9   : > { %v6342_v39 = vpop.f32.mrb[26].mxu0  ;;  %v6360_v40 = vpop.f32.mrb[26].mxu1  ;;  %v1405_v41 = vrot.slane %v1404_v27, 1  ;;  %v1669_v34 = vmax.f32 %v1627_v29, 0.0  ;;  %v1554_v43 = vmax.f32 %v1506_v30, 0.0  ;;  %v1679_v48 = vsel %vm1332_vm2, %v1550_v0, -inf }
 0x3da   : > { %v1521_v46 = vpop.f32.mrb[27].mxu0  ;;  %v1634_v47 = vpop.f32.mrb[27].mxu1  ;;  %v1667_v49 = vmax.f32 %v1619_v38, 0.0  ;;  %v1527_v50 = vadd.f32 %v6341_v25, %v8984_v44  ;;  %v1640_v51 = vadd.f32 %v6359_v26, %v8986_v45  ;;  %v9130_v52 = vmax.f32 %v1367_v21, %v1368_v35 }
 0x3db   : > { %v1726_v53 = vsel %vm1066_vm1, %v1668_v16, 0.0  ;;  %v1684_v54 = vsel %vm1332_vm2, %v1554_v43, -inf  ;;  %v1519_v55 = vadd.f32 %v8984_v44, %v1518_v31  ;;  %v1406_v56 = vadd.f32 %v1405_v41, %v1404_v27 }
 0x3dc   : > { %v1685_v57 = vmax.f32 %v1679_v48, %v1684_v54  ;;  %v1724_v58 = vsel %vm1066_vm1, %v1667_v49, 0.0  ;;  %v1559_v59 = vmax.f32 %v1527_v50, 0.0  ;;  %v1728_v60 = vsel %vm1066_vm1, %v1669_v34, 0.0 }
 0x3dd   : > { %v1725_v61 = vadd.f32 %v1724_v58, %v1723_v36  ;;  %v1557_v62 = vmax.f32 %v1519_v55, 0.0  ;;  %v1632_v63 = vadd.f32 %v8986_v45, %v1631_v32  ;;  %v1672_v1 = vmax.f32 %v1640_v51, 0.0 }
 0x3de   : > { %v1694_v0 = vsel %vm1332_vm2, %v1559_v59, -inf  ;;  %v1530_v2 = vadd.f32 %v6342_v39, %v8984_v44  ;;  %v1643_v3 = vadd.f32 %v6360_v40, %v8986_v45  ;;  %v9144_v12 = vmul.f32 0.0078125, %v1406_v56 }
 0x3df   : > { %v6345_v4 = vpop.f32.mrb[28].mxu0  ;;  %v6363_v5 = vpop.f32.mrb[28].mxu1  ;;  %v1727_v6 = vadd.f32 %v1726_v53, %v1725_v61  ;;  %v9141_v7 = vmax.f32 %v1687_v18, %v1694_v0  ;;  %v1690_v8 = vsel %vm1332_vm2, %v1557_v62, -inf  ;;  %v1670_v9 = vmax.f32 %v1632_v63, 0.0 }
 0x3e0   : > { %v1534_v10 = vpop.f32.mrb[29].mxu0  ;;  %v1647_v11 = vpop.f32.mrb[29].mxu1  ;;  %v9146_v13 = vmax.f32 %v1683_v22, %v1690_v8  ;;  %v1560_v14 = vmax.f32 %v1530_v2, 0.0  ;;  %v1522_v15 = vadd.f32 %v8984_v44, %v1521_v46  ;;  %v1635_v18 = vadd.f32 %v8986_v45, %v1634_v47 }
 0x3e1   : > { %v6346_v16 = vpop.f32.mrb[30].mxu0  ;;  %v6364_v17 = vpop.f32.mrb[30].mxu1  ;;  %v1729_v19 = vadd.f32 %v1728_v60, %v1727_v6  ;;  %v1730_v20 = vsel %vm1066_vm1, %v1670_v9, 0.0  ;;  %v1543_v21 = vadd.f32 %v6345_v4, %v8984_v44  ;;  %v1734_v25 = vsel %vm1066_vm1, %v1672_v1, 0.0 }
 0x3e2   : > { %v1537_v23 = vpop.f32.mrb[31].mxu0  ;;  %v1650_v24 = vpop.f32.mrb[31].mxu1  ;;  %v1696_v26 = vsel %vm1332_vm2, %v1560_v14, -inf  ;;  %v1673_v22 = vmax.f32 %v1643_v3, 0.0  ;;  %v1558_v27 = vmax.f32 %v1522_v15, 0.0  ;;  %v1671_v30 = vmax.f32 %v1635_v18, 0.0 }
 0x3e3   : > { %v1731_v28 = vadd.f32 %v1730_v20, %v1729_v19  ;;  %v1697_v29 = vmax.f32 %v1689_v42, %v1696_v26  ;;  %v1563_v31 = vmax.f32 %v1543_v21, 0.0  ;;  %v1656_v35 = vadd.f32 %v6363_v5, %v8986_v45 }
 0x3e4   : > { %v1692_v32 = vsel %vm1332_vm2, %v1558_v27, -inf  ;;  %v1535_v36 = vadd.f32 %v8984_v44, %v1534_v10  ;;  %v1648_v37 = vadd.f32 %v8986_v45, %v1647_v11  ;;  %v1732_v39 = vsel %vm1066_vm1, %v1671_v30, 0.0 }
 0x3e5   : > { %v1693_v38 = vmax.f32 %v1685_v57, %v1692_v32  ;;  %v1702_v40 = vsel %vm1332_vm2, %v1563_v31, -inf  ;;  %v1546_v41 = vadd.f32 %v6346_v16, %v8984_v44  ;;  %v1736_v34 = vsel %vm1066_vm1, %v1673_v22, 0.0 }
 0x3e6   : > { %v1733_v42 = vadd.f32 %v1732_v39, %v1731_v28  ;;  %v1703_v43 = vmax.f32 %v9141_v7, %v1702_v40  ;;  %v1561_v46 = vmax.f32 %v1535_v36, 0.0  ;;  %v1674_v49 = vmax.f32 %v1648_v37, 0.0 }
 0x3e7   : > { %v6369_v47 = vpop.f32.mrb[32].mxu0  ;;  %v6387_v48 = vpop.f32.mrb[32].mxu1  ;;  %v1564_v50 = vmax.f32 %v1546_v41, 0.0  ;;  %v1659_v51 = vadd.f32 %v6364_v17, %v8986_v45  ;;  %v1538_v53 = vadd.f32 %v8984_v44, %v1537_v23  ;;  %v1651_v58 = vadd.f32 %v8986_v45, %v1650_v24 }
 0x3e8   : > { %v1830_v54 = vpop.f32.mrb[33].mxu0  ;;  %v1943_v55 = vpop.f32.mrb[33].mxu1  ;;  %v1735_v56 = vadd.f32 %v1734_v25, %v1733_v42  ;;  %v1698_v57 = vsel %vm1332_vm2, %v1561_v46, -inf  ;;  %v1839_v59 = vadd.f32 %v6369_v47, %v8984_v44  ;;  %v1676_v62 = vmax.f32 %v1656_v35, 0.0 }
 0x3e9   : > { %v6370_v60 = vpop.f32.mrb[34].mxu0  ;;  %v6388_v61 = vpop.f32.mrb[34].mxu1  ;;  %v1699_v63 = vmax.f32 %v9146_v13, %v1698_v57  ;;  %v1738_v0 = vsel %vm1066_vm1, %v1674_v49, 0.0  ;;  %v1704_v1 = vsel %vm1332_vm2, %v1564_v50, -inf  ;;  %v1562_v6 = vmax.f32 %v1538_v53, 0.0 }
 0x3ea   : > { %v1833_v2 = vpop.f32.mrb[35].mxu0  ;;  %v1946_v3 = vpop.f32.mrb[35].mxu1  ;;  %v1737_v4 = vadd.f32 %v1736_v34, %v1735_v56  ;;  %v1705_v5 = vmax.f32 %v1697_v29, %v1704_v1  ;;  %v1675_v7 = vmax.f32 %v1651_v58, 0.0  ;;  %v1677_v8 = vmax.f32 %v1659_v51, 0.0 }
 0x3eb   : > { %v1895_v9 = vmax.f32 %v1839_v59, 0.0  ;;  %v1952_v10 = vadd.f32 %v6387_v48, %v8986_v45  ;;  %v1831_v11 = vadd.f32 %v8984_v44, %v1830_v54  ;;  %v1700_v13 = vsel %vm1332_vm2, %v1562_v6, -inf }
 0x3ec   : > { %v1739_v14 = vadd.f32 %v1738_v0, %v1737_v4  ;;  %v1707_v15 = vmax.f32 %v1703_v43, %v1705_v5  ;;  %v1740_v16 = vsel %vm1066_vm1, %v1675_v7, 0.0  ;;  %v1742_v17 = vsel %vm1066_vm1, %v1676_v62, 0.0 }
 0x3ed   : > { %v1701_v19 = vmax.f32 %v1693_v38, %v1700_v13  ;;  %v2008_v20 = vmax.f32 %v1952_v10, 0.0  ;;  %v1893_v18 = vmax.f32 %v1831_v11, 0.0  ;;  %v1944_v23 = vadd.f32 %v8986_v45, %v1943_v55 }
 0x3ee   : > { %v1741_v21 = vadd.f32 %v1740_v16, %v1739_v14  ;;  %v1842_v24 = vadd.f32 %v6370_v60, %v8984_v44  ;;  %v1955_v25 = vadd.f32 %v6388_v61, %v8986_v45  ;;  %v1744_v27 = vsel %vm1066_vm1, %v1677_v8, 0.0 }
 0x3ef   : > { %v6373_v26 = vpop.f32.mrb[36].mxu0  ;;  %v6391_v22 = vpop.f32.mrb[36].mxu1  ;;  %v1706_v28 = vmax.f32 %v1699_v63, %v1701_v19  ;;  %v9181_v29 = vsel %vm1332_vm2, %v1895_v9, -inf  ;;  %v1834_v30 = vadd.f32 %v8984_v44, %v1833_v2  ;;  %v2062_v36 = vsel %vm1066_vm1, %v2008_v20, 0.0 }
 0x3f0   : > { %v1846_v31 = vpop.f32.mrb[37].mxu0  ;;  %v1959_v32 = vpop.f32.mrb[37].mxu1  ;;  %v1743_v35 = vadd.f32 %v1742_v17, %v1741_v21  ;;  %v2006_v37 = vmax.f32 %v1944_v23, 0.0  ;;  %v1896_v38 = vmax.f32 %v1842_v24, 0.0  ;;  %v9186_v34 = vsel %vm1332_vm2, %v1893_v18, -inf }
 0x3f1   : > { %v6374_v39 = vpop.f32.mrb[38].mxu0  ;;  %v6392_v40 = vpop.f32.mrb[38].mxu1  ;;  %v1708_v41 = vmax.f32 %v1706_v28, %v1707_v15  ;;  %v1947_v42 = vadd.f32 %v8986_v45, %v1946_v3  ;;  %v1855_v43 = vadd.f32 %v6373_v26, %v8984_v44  ;;  %v2009_v50 = vmax.f32 %v1955_v25, 0.0 }
 0x3f2   : > { %v1849_v46 = vpop.f32.mrb[39].mxu0  ;;  %v1962_v47 = vpop.f32.mrb[39].mxu1  ;;  %v1745_v48 = vadd.f32 %v1744_v27, %v1743_v35  ;;  %v2059_v49 = vsel %vm1066_vm1, %v2006_v37, 0.0  ;;  %v1894_v51 = vmax.f32 %v1834_v30, 0.0  ;;  %v9192_v54 = vsel %vm1332_vm2, %v1896_v38, -inf }
 0x3f3   : > { %v1709_v53 = vrot.slane %v1708_v41, 4  ;;  %v2007_v55 = vmax.f32 %v1947_v42, 0.0  ;;  %v1899_v56 = vmax.f32 %v1855_v43, 0.0  ;;  %v1968_v58 = vadd.f32 %v6391_v22, %v8986_v45 }
 0x3f4   : > { %v1746_v57 = vrot.slane %v1745_v48, 4  ;;  %v1847_v59 = vadd.f32 %v8984_v44, %v1846_v31  ;;  %v1960_v60 = vadd.f32 %v8986_v45, %v1959_v32  ;;  %v1858_v0 = vadd.f32 %v6374_v39, %v8984_v44 }
 0x3f5   : > { %v1710_v61 = vmax.f32 %v1708_v41, %v1709_v53  ;;  %v2060_v62 = vsel %vm1066_vm1, %v2007_v55, 0.0  ;;  %v2030_v63 = vsel %vm1332_vm2, %v1899_v56, -inf  ;;  %v2064_v2 = vsel %vm1066_vm1, %v2009_v50, 0.0 }
 0x3f6   : > { %v1747_v1 = vadd.f32 %v1746_v57, %v1745_v48  ;;  %v2061_v3 = vadd.f32 %v2060_v62, %v2059_v49  ;;  %v2031_v4 = vmax.f32 %v9181_v29, %v2030_v63  ;;  %v1897_v8 = vmax.f32 %v1847_v59, 0.0 }
 0x3f7   : > { %v6377_v5 = vpop.f32.mrb[40].mxu0  ;;  %v6395_v6 = vpop.f32.mrb[40].mxu1  ;;  %v1711_v7 = vrot.slane %v1710_v61, 2  ;;  %v2010_v9 = vmax.f32 %v1960_v60, 0.0  ;;  %v1900_v10 = vmax.f32 %v1858_v0, 0.0  ;;  %v2012_v16 = vmax.f32 %v1968_v58, 0.0 }
 0x3f8   : > { %v1862_v11 = vpop.f32.mrb[41].mxu0  ;;  %v1975_v14 = vpop.f32.mrb[41].mxu1  ;;  %v1748_v15 = vrot.slane %v1747_v1, 2  ;;  %v2063_v13 = vadd.f32 %v2062_v36, %v2061_v3  ;;  %v1971_v17 = vadd.f32 %v6392_v40, %v8986_v45  ;;  %v2026_v21 = vsel %vm1332_vm2, %v1897_v8, -inf }
 0x3f9   : > { %v6378_v19 = vpop.f32.mrb[42].mxu0  ;;  %v6396_v20 = vpop.f32.mrb[42].mxu1  ;;  %v1712_v18 = vmax.f32 %v1710_v61, %v1711_v7  ;;  %v2066_v23 = vsel %vm1066_vm1, %v2010_v9, 0.0  ;;  %v9206_v24 = vsel %vm1332_vm2, %v1900_v10, -inf  ;;  %v2027_v27 = vmax.f32 %v9186_v34, %v2026_v21 }
 0x3fa   : > { %v1865_v25 = vpop.f32.mrb[43].mxu0  ;;  %v1978_v26 = vpop.f32.mrb[43].mxu1  ;;  %v1749_v22 = vadd.f32 %v1748_v15, %v1747_v1  ;;  %v2065_v28 = vadd.f32 %v2064_v2, %v2063_v13  ;;  %v2033_v29 = vmax.f32 %v9192_v54, %v9206_v24  ;;  %v9212_v31 = vsel %vm1332_vm2, %v1894_v51, -inf }
 0x3fb   : > { %v1713_v30 = vrot.slane %v1712_v18, 1  ;;  %v1850_v32 = vadd.f32 %v8984_v44, %v1849_v46  ;;  %v1963_v35 = vadd.f32 %v8986_v45, %v1962_v47  ;;  %v2070_v37 = vsel %vm1066_vm1, %v2012_v16, 0.0 }
 0x3fc   : > { %v1750_v36 = vrot.slane %v1749_v22, 1  ;;  %v2067_v38 = vadd.f32 %v2066_v23, %v2065_v28  ;;  %v1871_v39 = vadd.f32 %v6377_v5, %v8984_v44  ;;  %v2013_v41 = vmax.f32 %v1971_v17, 0.0 }
 0x3fd   : > { %v1714_v40 = vmax.f32 %v1712_v18, %v1713_v30  ;;  %v1898_v34 = vmax.f32 %v1850_v32, 0.0  ;;  %v2011_v42 = vmax.f32 %v1963_v35, 0.0  ;;  %v1984_v49 = vadd.f32 %v6395_v6, %v8986_v45 }
 0x3fe   : > { %v1751_v43 = vadd.f32 %v1750_v36, %v1749_v22  ;;  %v1903_v48 = vmax.f32 %v1871_v39, 0.0  ;;  %v1863_v50 = vadd.f32 %v8984_v44, %v1862_v11  ;;  %v1976_v55 = vadd.f32 %v8986_v45, %v1975_v14 }
 0x3ff   : > { %v6381_v51 = vpop.f32.mrb[44].mxu0  ;;  %v6399_v46 = vpop.f32.mrb[44].mxu1  ;;  %v9222_v47 = vsel %vm2441_vm4, %v9130_v52, %v1714_v40  ;;  %v2028_v53 = vsel %vm1332_vm2, %v1898_v34, -inf  ;;  %v2068_v54 = vsel %vm1066_vm1, %v2011_v42, 0.0  ;;  %v2072_v0 = vsel %vm1066_vm1, %v2013_v41, 0.0 }
 0x400   : > { %v1878_v56 = vpop.f32.mrb[45].mxu0  ;;  %v1991_v57 = vpop.f32.mrb[45].mxu1  ;;  %v1752_v58 = vmul.f32 0.0078125, %v1751_v43  ;;  %v2029_v59 = vmax.f32 %v9212_v31, %v2028_v53  ;;  %v2069_v60 = vadd.f32 %v2068_v54, %v2067_v38  ;;  %v2038_v61 = vsel %vm1332_vm2, %v1903_v48, -inf }
 0x401   : > { %v6382_v62 = vpop.f32.mrb[46].mxu0  ;;  %v6400_v63 = vpop.f32.mrb[46].mxu1  ;;  %v9230_v52 = vmax.f32 %v2031_v4, %v2038_v61  ;;  %v1901_v1 = vmax.f32 %v1863_v50, 0.0  ;;  %v2014_v2 = vmax.f32 %v1976_v55, 0.0  ;;  %v1874_v8 = vadd.f32 %v6378_v19, %v8984_v44 }
 0x402   : > { %v1881_v3 = vpop.f32.mrb[47].mxu0  ;;  %v1994_v5 = vpop.f32.mrb[47].mxu1  ;;  %v9234_v6 = vsel %vm2441_vm4, %v9144_v12, %v1752_v58  ;;  %v2071_v7 = vadd.f32 %v2070_v37, %v2069_v60  ;;  %v1987_v9 = vadd.f32 %v6396_v20, %v8986_v45  ;;  %v1866_v4 = vadd.f32 %v8984_v44, %v1865_v25 }
 0x403   : > { %v2034_v10 = vsel %vm1332_vm2, %v1901_v1, -inf  ;;  %v2074_v11 = vsel %vm1066_vm1, %v2014_v2, 0.0  ;;  %v1979_v14 = vadd.f32 %v8986_v45, %v1978_v26  ;;  %v2016_v15 = vmax.f32 %v1984_v49, 0.0 }
 0x404   : > { %v9242_v13 = vmax.f32 %v2027_v27, %v2034_v10  ;;  %v2073_v16 = vadd.f32 %v2072_v0, %v2071_v7  ;;  %v1904_v17 = vmax.f32 %v1874_v8, 0.0  ;;  %v2017_v12 = vmax.f32 %v1987_v9, 0.0 }
 0x405   : > { %v1902_v18 = vmax.f32 %v1866_v4, 0.0  ;;  %v2015_v21 = vmax.f32 %v1979_v14, 0.0  ;;  %v1887_v19 = vadd.f32 %v6381_v51, %v8984_v44  ;;  %v2000_v24 = vadd.f32 %v6399_v46, %v8986_v45 }
 0x406   : > { %v2075_v23 = vadd.f32 %v2074_v11, %v2073_v16  ;;  %v2040_v20 = vsel %vm1332_vm2, %v1904_v17, -inf  ;;  %v1879_v22 = vadd.f32 %v8984_v44, %v1878_v56  ;;  %v2078_v36 = vsel %vm1066_vm1, %v2016_v15, 0.0 }
 0x407   : > { %v6405_v25 = vpop.f32.mrb[48].mxu0  ;;  %v6423_v28 = vpop.f32.mrb[48].mxu1  ;;  %v2041_v26 = vmax.f32 %v2033_v29, %v2040_v20  ;;  %v2036_v27 = vsel %vm1332_vm2, %v1902_v18, -inf  ;;  %v2076_v30 = vsel %vm1066_vm1, %v2015_v21, 0.0  ;;  %v1907_v31 = vmax.f32 %v1887_v19, 0.0 }
 0x408   : > { %v2174_v32 = vpop.f32.mrb[49].mxu0  ;;  %v2287_v35 = vpop.f32.mrb[49].mxu1  ;;  %v2037_v37 = vmax.f32 %v2029_v59, %v2036_v27  ;;  %v2077_v38 = vadd.f32 %v2076_v30, %v2075_v23  ;;  %v1905_v39 = vmax.f32 %v1879_v22, 0.0  ;;  %v1992_v42 = vadd.f32 %v8986_v45, %v1991_v57  ;;  %v9259_v57 = vld [vmem:[#allocation6] ss:$0 sm:$0xff] }
 0x409   : > { %v6406_v40 = vpop.f32.mrb[50].mxu0  ;;  %v6424_v41 = vpop.f32.mrb[50].mxu1  ;;  %v2046_v34 = vsel %vm1332_vm2, %v1907_v31, -inf  ;;  %v1890_v29 = vadd.f32 %v6382_v62, %v8984_v44  ;;  %v2003_v43 = vadd.f32 %v6400_v63, %v8986_v45  ;;  %v2080_v50 = vsel %vm1066_vm1, %v2017_v12, 0.0  ;;  %v9262_v45 = vld [vmem:[#allocation7] ss:$0 sm:$0xff] }
 0x40a   : > { %v2177_v48 = vpop.f32.mrb[51].mxu0  ;;  %v2290_v49 = vpop.f32.mrb[51].mxu1  ;;  %v2079_v51 = vadd.f32 %v2078_v36, %v2077_v38  ;;  %v2047_v46 = vmax.f32 %v9230_v52, %v2046_v34  ;;  %v2042_v53 = vsel %vm1332_vm2, %v1905_v39, -inf  ;;  %v2020_v54 = vmax.f32 %v2000_v24, 0.0 }
 0x40b   : > { %v2043_v55 = vmax.f32 %v9242_v13, %v2042_v53  ;;  %v2018_v56 = vmax.f32 %v1992_v42, 0.0  ;;  %v1908_v58 = vmax.f32 %v1890_v29, 0.0  ;;  %v1882_v44 = vadd.f32 %v9259_v57, %v1881_v3 }
 0x40c   : > { %v2081_v59 = vadd.f32 %v2080_v50, %v2079_v51  ;;  %v1995_v60 = vadd.f32 %v9262_v45, %v1994_v5  ;;  %v2183_v61 = vadd.f32 %v9259_v57, %v6405_v25  ;;  %v2021_v0 = vmax.f32 %v2003_v43, 0.0 }
 0x40d   : > { %v2082_v62 = vsel %vm1066_vm1, %v2018_v56, 0.0  ;;  %v2048_v63 = vsel %vm1332_vm2, %v1908_v58, -inf  ;;  %v2296_v52 = vadd.f32 %v9262_v45, %v6423_v28  ;;  %v1906_v7 = vmax.f32 %v1882_v44, 0.0 }
 0x40e   : > { %v2083_v1 = vadd.f32 %v2082_v62, %v2081_v59  ;;  %v2049_v2 = vmax.f32 %v2041_v26, %v2048_v63  ;;  %v2019_v8 = vmax.f32 %v1995_v60, 0.0  ;;  %v2239_v3 = vmax.f32 %v2183_v61, 0.0 }
 0x40f   : > { %v6409_v9 = vpop.f32.mrb[52].mxu0  ;;  %v6427_v10 = vpop.f32.mrb[52].mxu1  ;;  %v2352_v11 = vmax.f32 %v2296_v52, 0.0  ;;  %v2175_v4 = vadd.f32 %v9259_v57, %v2174_v32  ;;  %v2288_v5 = vadd.f32 %v9262_v45, %v2287_v35  ;;  %v2044_v16 = vsel %vm1332_vm2, %v1906_v7, -inf }
 0x410   : > { %v2190_v14 = vpop.f32.mrb[53].mxu0  ;;  %v2303_v15 = vpop.f32.mrb[53].mxu1  ;;  %v2051_v13 = vmax.f32 %v2047_v46, %v2049_v2  ;;  %v2084_v17 = vsel %vm1066_vm1, %v2019_v8, 0.0  ;;  %v2186_v12 = vadd.f32 %v9259_v57, %v6406_v40  ;;  %v2086_v19 = vsel %vm1066_vm1, %v2020_v54, 0.0 }
 0x411   : > { %v6410_v18 = vpop.f32.mrb[54].mxu0  ;;  %v6428_v21 = vpop.f32.mrb[54].mxu1  ;;  %v2045_v23 = vmax.f32 %v2037_v37, %v2044_v16  ;;  %v2085_v20 = vadd.f32 %v2084_v17, %v2083_v1  ;;  %v2237_v25 = vmax.f32 %v2175_v4, 0.0  ;;  %v2350_v28 = vmax.f32 %v2288_v5, 0.0 }
 0x412   : > { %v2193_v24 = vpop.f32.mrb[55].mxu0  ;;  %v2306_v22 = vpop.f32.mrb[55].mxu1  ;;  %v2240_v26 = vmax.f32 %v2186_v12, 0.0  ;;  %v2299_v27 = vadd.f32 %v9262_v45, %v6424_v41  ;;  %v2178_v32 = vadd.f32 %v9259_v57, %v2177_v48  ;;  %v2291_v35 = vadd.f32 %v9262_v45, %v2290_v49 }
 0x413   : > { %v2050_v30 = vmax.f32 %v2043_v55, %v2045_v23  ;;  %v2087_v31 = vadd.f32 %v2086_v19, %v2085_v20  ;;  %v2088_v36 = vsel %vm1066_vm1, %v2021_v0, 0.0  ;;  %v9280_v38 = vsel %vm1332_vm2, %v2239_v3, -inf }
 0x414   : > { %v2406_v37 = vsel %vm1066_vm1, %v2352_v11, 0.0  ;;  %v2353_v39 = vmax.f32 %v2299_v27, 0.0  ;;  %v9284_v42 = vsel %vm1332_vm2, %v2237_v25, -inf  ;;  %v2351_v41 = vmax.f32 %v2291_v35, 0.0 }
 0x415   : > { %v2052_v40 = vmax.f32 %v2050_v30, %v2051_v13  ;;  %v2089_v34 = vadd.f32 %v2088_v36, %v2087_v31  ;;  %v2403_v29 = vsel %vm1066_vm1, %v2350_v28, 0.0  ;;  %v9288_v43 = vsel %vm1332_vm2, %v2240_v26, -inf }
 0x416   : > { %v2199_v48 = vadd.f32 %v9259_v57, %v6409_v9  ;;  %v2191_v49 = vadd.f32 %v9259_v57, %v2190_v14  ;;  %v2238_v54 = vmax.f32 %v2178_v32, 0.0  ;;  %v2404_v55 = vsel %vm1066_vm1, %v2351_v41, 0.0 }
 0x417   : > { %v6413_v50 = vpop.f32.mrb[56].mxu0  ;;  %v9292_v51 = vpop.f32.mrb[56].mxu1  ;;  %v2053_v46 = vrot.slane %v2052_v40, 4  ;;  %v2090_v53 = vrot.slane %v2089_v34, 4  ;;  %v2408_v59 = vsel %vm1066_vm1, %v2353_v39, 0.0  ;;  %v2405_v44 = vadd.f32 %v2404_v55, %v2403_v29 }
 0x418   : > { %v2206_v56 = vpop.f32.mrb[57].mxu0  ;;  %v2319_v58 = vpop.f32.mrb[57].mxu1  ;;  %v2243_v60 = vmax.f32 %v2199_v48, 0.0  ;;  %v2241_v61 = vmax.f32 %v2191_v49, 0.0  ;;  %v2304_v1 = vadd.f32 %v9262_v45, %v2303_v15  ;;  %v2202_v2 = vadd.f32 %v9259_v57, %v6410_v18 }
 0x419   : > { %v9296_v62 = vpop.f32.mrb[58].mxu0  ;;  %v9298_v63 = vpop.f32.mrb[58].mxu1  ;;  %v2054_v0 = vmax.f32 %v2052_v40, %v2053_v46  ;;  %v2091_v52 = vadd.f32 %v2090_v53, %v2089_v34  ;;  %v2407_v9 = vadd.f32 %v2406_v37, %v2405_v44  ;;  %v2312_v11 = vadd.f32 %v9262_v45, %v6427_v10 }
 0x41a   : > { %v2209_v7 = vpop.f32.mrb[59].mxu0  ;;  %v9302_v8 = vpop.f32.mrb[59].mxu1  ;;  %v2374_v3 = vsel %vm1332_vm2, %v2243_v60, -inf  ;;  %v2370_v4 = vsel %vm1332_vm2, %v2241_v61, -inf  ;;  %v2354_v17 = vmax.f32 %v2304_v1, 0.0  ;;  %v2244_v12 = vmax.f32 %v2202_v2, 0.0 }
 0x41b   : > { %v2055_v5 = vrot.slane %v2054_v0, 2  ;;  %v2092_v14 = vrot.slane %v2091_v52, 2  ;;  %v2375_v13 = vmax.f32 %v9280_v38, %v2374_v3  ;;  %v2371_v16 = vmax.f32 %v9284_v42, %v2370_v4 }
 0x41c   : > { %v2409_v15 = vadd.f32 %v2408_v59, %v2407_v9  ;;  %v2315_v18 = vadd.f32 %v9262_v45, %v6428_v21  ;;  %v2194_v20 = vadd.f32 %v9259_v57, %v2193_v24  ;;  %v2307_v25 = vadd.f32 %v9262_v45, %v2306_v22 }
 0x41d   : > { %v2056_v19 = vmax.f32 %v2054_v0, %v2055_v5  ;;  %v2093_v23 = vadd.f32 %v2092_v14, %v2091_v52  ;;  %v2367_v10 = vsel %vm1332_vm2, %v2238_v54, -inf  ;;  %v2410_v28 = vsel %vm1066_vm1, %v2354_v17, 0.0 }
 0x41e   : > { %v2376_v26 = vsel %vm1332_vm2, %v2244_v12, -inf  ;;  %v2215_v27 = vadd.f32 %v9259_v57, %v6413_v50  ;;  %v2411_v21 = vadd.f32 %v2410_v28, %v2409_v15  ;;  %v2356_v37 = vmax.f32 %v2312_v11, 0.0 }
 0x41f   : > { %v6417_v30 = vpop.f32.mrb[60].mxu0  ;;  %v9316_v31 = vpop.f32.mrb[60].mxu1  ;;  %v2057_v32 = vrot.slane %v2056_v19, 1  ;;  %v2094_v35 = vrot.slane %v2093_v23, 1  ;;  %v2377_v36 = vmax.f32 %v9288_v43, %v2376_v26  ;;  %v2242_v22 = vmax.f32 %v2194_v20, 0.0 }
 0x420   : > { %v2222_v38 = vpop.f32.mrb[61].mxu0  ;;  %v2335_v24 = vpop.f32.mrb[61].mxu1  ;;  %v2355_v39 = vmax.f32 %v2307_v25, 0.0  ;;  %v2247_v40 = vmax.f32 %v2215_v27, 0.0  ;;  %v2357_v48 = vmax.f32 %v2315_v18, 0.0  ;;  %v2207_v49 = vadd.f32 %v9259_v57, %v2206_v56 }
 0x421   : > { %v6418_v34 = vpop.f32.mrb[62].mxu0  ;;  %v9319_v42 = vpop.f32.mrb[62].mxu1  ;;  %v2058_v41 = vmax.f32 %v2056_v19, %v2057_v32  ;;  %v2095_v29 = vadd.f32 %v2094_v35, %v2093_v23  ;;  %v2372_v53 = vsel %vm1332_vm2, %v2242_v22, -inf  ;;  %v2320_v55 = vadd.f32 %v9262_v45, %v2319_v58 }
 0x422   : > { %v2225_v50 = vpop.f32.mrb[63].mxu0  ;;  %v2338_v46 = vpop.f32.mrb[63].mxu1  ;;  %v2412_v43 = vsel %vm1066_vm1, %v2355_v39, 0.0  ;;  %v2382_v54 = vsel %vm1332_vm2, %v2247_v40, -inf  ;;  %v2373_v60 = vmax.f32 %v2367_v10, %v2372_v53  ;;  %v2414_v0 = vsel %vm1066_vm1, %v2356_v37, 0.0 }
 0x423   : > { %v9328_v59 = vsel %vm2443_vm5, %v9222_v47, %v2058_v41  ;;  %v2096_v44 = vmul.f32 0.0078125, %v2095_v29  ;;  %v2413_v61 = vadd.f32 %v2412_v43, %v2411_v21  ;;  %v2383_v56 = vmax.f32 %v2375_v13, %v2382_v54 }
 0x424   : > { %v2245_v52 = vmax.f32 %v2207_v49, 0.0  ;;  %v2358_v1 = vmax.f32 %v2320_v55, 0.0  ;;  %v2328_v58 = vadd.f32 %v9262_v45, %v9292_v51  ;;  %v2218_v47 = vadd.f32 %v9259_v57, %v9296_v62 }
 0x425   : > { %v9333_v2 = vsel %vm2443_vm5, %v9234_v6, %v2096_v44  ;;  %v2415_v9 = vadd.f32 %v2414_v0, %v2413_v61  ;;  %v2416_v3 = vsel %vm1066_vm1, %v2357_v48, 0.0  ;;  %v2210_v5 = vadd.f32 %v9259_v57, %v2209_v7 }
 0x426   : > { %v2378_v11 = vsel %vm1332_vm2, %v2245_v52, -inf  ;;  %v2418_v4 = vsel %vm1066_vm1, %v2358_v1, 0.0  ;;  %v2248_v17 = vmax.f32 %v2218_v47, 0.0  ;;  %v2331_v6 = vadd.f32 %v9262_v45, %v9298_v63 }
 0x427   : > { %v2379_v14 = vmax.f32 %v2371_v16, %v2378_v11  ;;  %v2417_v13 = vadd.f32 %v2416_v3, %v2415_v9  ;;  %v2246_v15 = vmax.f32 %v2210_v5, 0.0  ;;  %v2323_v51 = vadd.f32 %v9262_v45, %v9302_v8 }
 0x428   : > { %v2231_v62 = vadd.f32 %v9259_v57, %v6417_v30  ;;  %v2360_v12 = vmax.f32 %v2328_v58, 0.0  ;;  %v2384_v19 = vsel %vm1332_vm2, %v2248_v17, -inf  ;;  %v2223_v23 = vadd.f32 %v9259_v57, %v2222_v38 }
 0x429   : > { %v2419_v18 = vadd.f32 %v2418_v4, %v2417_v13  ;;  %v2385_v20 = vmax.f32 %v2377_v36, %v2384_v19  ;;  %v2380_v7 = vsel %vm1332_vm2, %v2246_v15, -inf  ;;  %v2359_v16 = vmax.f32 %v2323_v51, 0.0 }
 0x42a   : > { %v2251_v25 = vmax.f32 %v2231_v62, 0.0  ;;  %v2381_v10 = vmax.f32 %v2373_v60, %v2380_v7  ;;  %v2249_v28 = vmax.f32 %v2223_v23, 0.0  ;;  %v2336_v63 = vadd.f32 %v9262_v45, %v2335_v24 }
 0x42b   : > { %v2361_v26 = vmax.f32 %v2331_v6, 0.0  ;;  %v2420_v8 = vsel %vm1066_vm1, %v2359_v16, 0.0  ;;  %v2234_v30 = vadd.f32 %v9259_v57, %v6418_v34  ;;  %v2422_v32 = vsel %vm1066_vm1, %v2360_v12, 0.0  ;;  %v5867_v16 = vld [vmem:[#allocation13] ss:$0 sm:$0xff] }
 0x42c   : > { %v2390_v27 = vsel %vm1332_vm2, %v2251_v25, -inf  ;;  %v2421_v35 = vadd.f32 %v2420_v8, %v2419_v18  ;;  %v2386_v36 = vsel %vm1332_vm2, %v2249_v28, -inf  ;;  %v2344_v38 = vadd.f32 %v9262_v45, %v9316_v31 }
 0x42d   : > { %v2391_v21 = vmax.f32 %v2383_v56, %v2390_v27  ;;  %v2387_v37 = vmax.f32 %v2379_v14, %v2386_v36  ;;  %v2362_v22 = vmax.f32 %v2336_v63, 0.0  ;;  %v2252_v39 = vmax.f32 %v2234_v30, 0.0  ;;  %v7157_v36 = vld [vmem:[#allocation19 + $0x8] sm:$0xff]  }
 0x42e   : > { %v2423_v24 = vadd.f32 %v2422_v32, %v2421_v35  ;;  %v2226_v40 = vadd.f32 %v9259_v57, %v2225_v50  ;;  %v2339_v41 = vadd.f32 %v9262_v45, %v2338_v46  ;;  %v2424_v29 = vsel %vm1066_vm1, %v2361_v26, 0.0  ;;  %v7154_v32 = vld [vmem:[%s10220_s23] sm:$0xff]   ;;  %v7155_v35 = vld [vmem:[%s10220_s23 + $0x8] sm:$0xff]  }
 0x42f   : > { %v2426_v34 = vsel %vm1066_vm1, %v2362_v22, 0.0  ;;  %v2392_v48 = vsel %vm1332_vm2, %v2252_v39, -inf  ;;  %v2347_v49 = vadd.f32 %v9262_v45, %v9319_v42  ;;  %v2364_v55 = vmax.f32 %v2344_v38, 0.0  ;;  %v5869_v38 = vld [vmem:[#allocation16] ss:$0 sm:$0xff] }
 0x430   : > { %v2425_v53 = vadd.f32 %v2424_v29, %v2423_v24  ;;  %v2393_v43 = vmax.f32 %v2385_v20, %v2392_v48  ;;  %v2250_v31 = vmax.f32 %v2226_v40, 0.0  ;;  %v2363_v54 = vmax.f32 %v2339_v41, 0.0  ;;  %v7153_v20 = vld [vmem:[#allocation15] sm:$0xff]  }
 0x431   : > { %v2365_v46 = vmax.f32 %v2347_v49, 0.0  ;;  %v2430_v56 = vsel %vm1066_vm1, %v2364_v55, 0.0  ;;  %v7159_v48 = vld [vmem:[#allocation19 + $0x18] sm:$0xff]   ;;  %v7160_v49 = vld [vmem:[#allocation22] sm:$0xff]  }
 0x432   : > { %v2427_v44 = vadd.f32 %v2426_v34, %v2425_v53  ;;  %v2395_v60 = vmax.f32 %v2391_v21, %v2393_v43  ;;  %v2388_v57 = vsel %vm1332_vm2, %v2250_v31, -inf  ;;  %v2428_v50 = vsel %vm1066_vm1, %v2363_v54, 0.0  ;;  %v7156_v21 = vld [vmem:[#allocation19] sm:$0xff]   ;;  %v7158_v34 = vld [vmem:[#allocation19 + $0x10] sm:$0xff]   ;;  %v5872_v43 = vld [vmem:[#allocation18] ss:$0 sm:$0xff] }
 0x433   : > { %v2389_v61 = vmax.f32 %v2381_v10, %v2388_v57  ;;  %v2432_v45 = vsel %vm1066_vm1, %v2365_v46, 0.0  ;;  %v7161_v53 = vld [vmem:[#allocation22 + $0x8] sm:$0xff]   ;;  %v7162_v46 = vld [vmem:[#allocation22 + $0x10] sm:$0xff]  }
 0x434   : > { %v2429_v0 = vadd.f32 %v2428_v50, %v2427_v44 }
 0x435   : > { %v2394_v52 = vmax.f32 %v2387_v37, %v2389_v61  ;;  %v7163_v61 = vld [vmem:[#allocation22 + $0x18] sm:$0xff]  }
 0x436   : > { %v2431_v1 = vadd.f32 %v2430_v56, %v2429_v0  ;;  %v7164_v0 = vld [vmem:[#allocation25] sm:$0xff]   ;;  %v7165_v56 = vld [vmem:[#allocation25 + $0x8] sm:$0xff]  }
 0x437   : > { %v2396_v42 = vmax.f32 %v2394_v52, %v2395_v60  ;;  %v5861_v52 = vld [vmem:[#allocation10] ss:$0 sm:$0xff] }
 0x438   : > { %v2433_v9 = vadd.f32 %v2432_v45, %v2431_v1  ;;  %v5876_v1 = vld [vmem:[#allocation21] ss:$0 sm:$0xff] }
 0x439   : > { %v2397_v58 = vrot.slane %v2396_v42, 4 }
 0x43a   : > { %v2434_v47 = vrot.slane %v2433_v9, 4 }
 0x43b   : > { %v2398_v3 = vmax.f32 %v2396_v42, %v2397_v58 }
 0x43c   : > { %v2435_v11 = vadd.f32 %v2434_v47, %v2433_v9 }
 0x43d   : > { %v2399_v4 = vrot.slane %v2398_v3, 2 }
 0x43e   : > { %v2436_v5 = vrot.slane %v2435_v11, 2 }
 0x43f   : > { %v2400_v14 = vmax.f32 %v2398_v3, %v2399_v4 }
 0x440   : > { %v2437_v13 = vadd.f32 %v2436_v5, %v2435_v11 }
 0x441   : > { %v2401_v17 = vrot.slane %v2400_v14, 1 }
 0x442   : > { %v2438_v6 = vrot.slane %v2437_v13, 1 }
 0x443   : > { %v2402_v15 = vmax.f32 %v2400_v14, %v2401_v17  ;;  %v7167_v17 = vld [vmem:[#allocation25 + $0x18] sm:$0xff]  }
 0x444   : > { %v2439_v51 = vadd.f32 %v2438_v6, %v2437_v13  ;;  %v7166_v13 = vld [vmem:[#allocation25 + $0x10] sm:$0xff]   ;;  %v7168_v6 = vld [vmem:[#allocation28] ss:$8 sps:$4 sm:$0xff]  }
 0x445   : > { %v2446_v62 = vsel %vm2445_vm6, %v9328_v59, %v2402_v15  ;;  %v7170_v15 = vld [vmem:[#allocation28 + $0x4] ss:$8 sps:$4 sm:$0xff]  }
 0x446   : > { %v2440_v12 = vmul.f32 0.0078125, %v2439_v51  ;;  %v2458_v18 = vpack.c.bf16 %v2446_v62, %v2446_v62  ;;  %v7173_v51 = vld [vmem:[#allocation28 + $0x14] ss:$8 sps:$4 sm:$0xff]   ;;  %v7171_v62 = vld [vmem:[#allocation28 + $0x10] ss:$8 sps:$4 sm:$0xff]  }
 0x448   : > { %6446 = vmatmul.mubr.msk.bf16.vlgmr.msra.gmra.mrb[64].mxu0 %vm1332_vm2, %v2458_v18  ;;  %v2449_v19 = vsel %vm2445_vm6, %v9333_v2, %v2440_v12  ;;  %v7176_v12 = vld [vmem:[#allocation28 + $0x24] ss:$8 sps:$4 sm:$0xff]   ;;  %v7174_v18 = vld [vmem:[#allocation28 + $0x20] ss:$8 sps:$4 sm:$0xff]  }
 0x449   : > { %v2534_v23 = vpack.c.bf16 %v2449_v19, %v2449_v19  ;;  %6457 = vmatprep.mubr.msk.bf16.mxu0 %vm8211_vm3, %v8210_v33  ;;  %6456 = vmatpush3.bf16.msra.mxu0 %v7153_v20  ;;  %v7179_v19 = vld [vmem:[#allocation28 + $0x34] ss:$8 sps:$4 sm:$0xff]   ;;  %v7182_v20 = vld [vmem:[#allocation28 + $0x44] ss:$8 sps:$4 sm:$0xff]  }
 0x44a   : > { %6469 = vmatprep.subr.bf16.mxu0 %v8210_v33 }
 0x44b   : > { %6452 = vmatmul.mubr.msk.bf16.vlgmr.msra.gmra.mrb[64].mxu1 %vm1066_vm1, %v2534_v23  ;;  %v7177_v23 = vld [vmem:[#allocation28 + $0x30] ss:$8 sps:$4 sm:$0xff]  }
 0x44c   : > { %6465 = vmatprep.mubr.msk.bf16.mxu1 %vm8211_vm3, %v8210_v33  ;;  %6462 = vmatpush3.bf16.msra.mxu1 %v7154_v32 }
 0x44d   : > { %6463 = vmatprep.subr.bf16.mxu1 %v8210_v33 }
 0x450   : > { %6464 = vmatpush3.bf16.msra.mxu1 %v7155_v35  ;;  %v7191_v35 = vld [vmem:[#allocation28 + $0x74] ss:$8 sps:$4 sm:$0xff]  }
 0x451   : > { %6481 = vmatprep.subr.bf16.mxu1 %v8210_v33 }
 0x51b   : > { %v9381_v59 = vpop.f32.mrb[64].mxu0 }
 0x51c   : > { %v6447_v7 = vpop.f32.mrb[65].mxu0  ;;  %v2528_v45 = vadd.f32 %v5861_v52, %v9381_v59  ;;  %v7180_v59 = vld [vmem:[#allocation28 + $0x40] ss:$8 sps:$4 sm:$0xff]  }
 0x51d   : > { %v2530_v25 = vpop.f32.mrb[66].mxu0  ;;  %v7185_v7 = vld [vmem:[#allocation28 + $0x54] ss:$8 sps:$4 sm:$0xff]  }
 0x51e   : > { %v2582_v10 = vpop.f32.mrb[64].mxu1  ;;  %v6448_v2 = vpop.f32.mrb[67].mxu0  ;;  %v2804_v3 = vrot.slane %v2528_v45, 4  ;;  %v7188_v25 = vld [vmem:[#allocation28 + $0x64] ss:$8 sps:$4 sm:$0xff]  }
 0x51f   : > { %v2583_v28 = vadd.f32 %v5867_v16, %v2582_v10  ;;  %v6453_v63 = vpop.f32.mrb[65].mxu1  ;;  %v7183_v16 = vld [vmem:[#allocation28 + $0x50] ss:$8 sps:$4 sm:$0xff]   ;;  %v7186_v10 = vld [vmem:[#allocation28 + $0x60] ss:$8 sps:$4 sm:$0xff]  }
 0x520   : > { %v2585_v26 = vpop.f32.mrb[66].mxu1  ;;  %v5882_v2 = vld [vmem:[#allocation24] ss:$0 sm:$0xff]  ;;  %v7231_v52 = vld [vmem:[#allocation31 + $0x108] ss:$12 sps:$4 sm:$0xff]  }
 0x521   : > { %v2588_v8 = vmax.f32 %v2583_v28, 0.0  ;;  %v6454_v27 = vpop.f32.mrb[67].mxu1  ;;  %v7236_v45 = vld [vmem:[#allocation31 + $0x120] ss:$12 sps:$4 sm:$0xff]  }
 0x523   : > { %v2591_v30 = vpack.c.bf16 %v2588_v8, %v2588_v8 }
 0x525   : > { %6458 = vmatmul.mubr.msk.bf16.vlgmr.msra.gmra.mrb[68].mxu0 %vm2605_vm7, %v2591_v30 }
 0x526   : > { %6477 = vmatprep.mubr.msk.bf16.mxu0 %vm8211_vm3, %v8210_v33  ;;  %6470 = vmatpush3.bf16.msra.mxu0 %v7156_v21  ;;  %v7189_v21 = vld [vmem:[#allocation28 + $0x70] ss:$8 sps:$4 sm:$0xff]  }
 0x527   : > { %6471 = vmatprep.subr.bf16.mxu0 %v8210_v33 }
 0x52a   : > { %6472 = vmatpush3.bf16.msra.mxu0 %v7157_v36  ;;  %v8212_v36 = vmov 0  }
 0x52b   : > { %6473 = vmatprep.subr.bf16.mxu0 %v8210_v33 }
 0x52e   : > { %6474 = vmatpush3.bf16.msra.mxu0 %v7158_v34  ;;  %v7201_v34 = vld [vmem:[#allocation31 + $0x48] ss:$12 sps:$4 sm:$0xff]  }
 0x52f   : > { %6475 = vmatprep.subr.bf16.mxu0 %v8210_v33 }
 0x532   : > { %6476 = vmatpush3.bf16.msra.mxu0 %v7159_v48  ;;  %v7206_v48 = vld [vmem:[#allocation31 + $0x64] ss:$12 sps:$4 sm:$0xff]  }
 0x533   : > { %6493 = vmatprep.subr.bf16.mxu0 %v8210_v33 }
 0x5f8   : > { %v2643_v37 = vpop.f32.mrb[68].mxu0 }
 0x5f9   : > { %v2644_v22 = vadd.f32 %v5869_v38, %v2643_v37  ;;  %v6459_v39 = vpop.f32.mrb[69].mxu0  ;;  %v7192_v38 = vld [vmem:[#allocation31] ss:$12 sps:$4 sm:$0xff]   ;;  %v7194_v37 = vld [vmem:[#allocation31 + $0x4] ss:$12 sps:$4 sm:$0xff]  }
 0x5fa   : > { %v2646_v24 = vpop.f32.mrb[70].mxu0  ;;  %v7195_v39 = vld [vmem:[#allocation31 + $0x18] ss:$12 sps:$4 sm:$0xff]  }
 0x5fb   : > { %v2649_v40 = vmax.f32 %v2644_v22, 0.0  ;;  %v6460_v41 = vpop.f32.mrb[71].mxu0  ;;  %v7197_v22 = vld [vmem:[#allocation31 + $0x1c] ss:$12 sps:$4 sm:$0xff]   ;;  %v7200_v24 = vld [vmem:[#allocation31 + $0x34] ss:$12 sps:$4 sm:$0xff]  }
 0x5fc   : > { %v7198_v41 = vld [vmem:[#allocation31 + $0x30] ss:$12 sps:$4 sm:$0xff]  }
 0x5fd   : > { %v2654_v29 = vpack.c.bf16 %v2649_v40, %v2649_v40  ;;  %v7219_v40 = vld [vmem:[#allocation31 + $0xc8] ss:$12 sps:$4 sm:$0xff]  }
 0x5ff   : > { %6466 = vmatmul.mubr.msk.bf16.vlgmr.msra.gmra.mrb[68].mxu1 %vm2674_vm8, %v2654_v29  ;;  %v7203_v29 = vld [vmem:[#allocation31 + $0x4c] ss:$12 sps:$4 sm:$0xff]  }
 0x600   : > { %6489 = vmatprep.mubr.msk.bf16.mxu1 %vm8211_vm3, %v8210_v33  ;;  %6482 = vmatpush3.bf16.msra.mxu1 %v7160_v49  ;;  %v7204_v49 = vld [vmem:[#allocation31 + $0x60] ss:$12 sps:$4 sm:$0xff]  }
 0x601   : > { %6483 = vmatprep.subr.bf16.mxu1 %v8210_v33 }
 0x604   : > { %6484 = vmatpush3.bf16.msra.mxu1 %v7161_v53  ;;  %v7209_v53 = vld [vmem:[#allocation31 + $0x7c] ss:$12 sps:$4 sm:$0xff]  }
 0x605   : > { %6485 = vmatprep.subr.bf16.mxu1 %v8210_v33 }
 0x608   : > { %6486 = vmatpush3.bf16.msra.mxu1 %v7162_v46  ;;  %v7221_v46 = vld [vmem:[#allocation31 + $0xd8] ss:$12 sps:$4 sm:$0xff]  }
 0x609   : > { %6487 = vmatprep.subr.bf16.mxu1 %v8210_v33 }
 0x60c   : > { %6488 = vmatpush3.bf16.msra.mxu1 %v7163_v61  ;;  %v7228_v61 = vld [vmem:[#allocation31 + $0xf4] ss:$12 sps:$4 sm:$0xff]  }
 0x60d   : > { %3084 = vmatprep.subr.bf16.mxu1 %v7170_v15  ;;  %v7225_v15 = vld [vmem:[#allocation31 + $0x20] ss:$12 sps:$4 sm:$0xff]  }
 0x6d2   : > { %v2712_v31 = vpop.f32.mrb[68].mxu1 }
 0x6d3   : > { %v2713_v54 = vadd.f32 %v5872_v43, %v2712_v31  ;;  %v6467_v55 = vpop.f32.mrb[69].mxu1  ;;  %v7207_v43 = vld [vmem:[#allocation31 + $0x78] ss:$12 sps:$4 sm:$0xff]   ;;  %v7212_v31 = vld [vmem:[#allocation31 + $0x94] ss:$12 sps:$4 sm:$0xff]  }
 0x6d4   : > { %v2715_v44 = vpop.f32.mrb[70].mxu1  ;;  %v7215_v55 = vld [vmem:[#allocation31 + $0xac] ss:$12 sps:$4 sm:$0xff]  }
 0x6d5   : > { %v2718_v60 = vmax.f32 %v2713_v54, 0.0  ;;  %v6468_v57 = vpop.f32.mrb[71].mxu1  ;;  %v7210_v54 = vld [vmem:[#allocation31 + $0x90] ss:$12 sps:$4 sm:$0xff]   ;;  %v7213_v44 = vld [vmem:[#allocation31 + $0xa8] ss:$12 sps:$4 sm:$0xff]  }
 0x6d6   : > { %v7216_v57 = vld [vmem:[#allocation31 + $0xc0] ss:$12 sps:$4 sm:$0xff]  }
 0x6d7   : > { %v2727_v50 = vpack.c.bf16 %v2718_v60, %v2718_v60  ;;  %v7218_v60 = vld [vmem:[#allocation31 + $0xc4] ss:$12 sps:$4 sm:$0xff]  }
 0x6d9   : > { %6478 = vmatmul.mubr.msk.bf16.vlgmr.msra.gmra.mrb[72].mxu0 %vm1332_vm2, %v2727_v50  ;;  %v7223_v50 = vld [vmem:[#allocation31 + $0xdc] ss:$12 sps:$4 sm:$0xff]  }
 0x6da   : > { %6501 = vmatprep.mubr.msk.bf16.mxu0 %vm8211_vm3, %v8210_v33  ;;  %6494 = vmatpush3.bf16.msra.mxu0 %v7164_v0  ;;  %v7226_v0 = vld [vmem:[#allocation31 + $0xf0] ss:$12 sps:$4 sm:$0xff]  }
 0x6db   : > { %6495 = vmatprep.subr.bf16.mxu0 %v8210_v33 }
 0x6de   : > { %6496 = vmatpush3.bf16.msra.mxu0 %v7165_v56  ;;  %v7233_v56 = vld [vmem:[#allocation31 + $0x10c] ss:$12 sps:$4 sm:$0xff]  }
 0x6df   : > { %6497 = vmatprep.subr.bf16.mxu0 %v8210_v33 }
 0x6e2   : > { %6498 = vmatpush3.bf16.msra.mxu0 %v7166_v13  ;;  %v7220_v13 = vld [vmem:[#allocation31 + $0x8] ss:$12 sps:$4 sm:$0xff]  }
 0x6e3   : > { %6499 = vmatprep.subr.bf16.mxu0 %v8210_v33 }
 0x6e6   : > { %6500 = vmatpush3.bf16.msra.mxu0 %v7167_v17 }
 0x6e7   : > { %3466 = vmatprep.subr.bf16.mxu0 %v7194_v37 }
 0x7ac   : > { %v2796_v42 = vpop.f32.mrb[72].mxu0 }
 0x7ad   : > { %v2797_v9 = vadd.f32 %v5876_v1, %v2796_v42  ;;  %v6479_v58 = vpop.f32.mrb[73].mxu0  ;;  %v7238_v1 = vld [vmem:[#allocation31 + $0x124] ss:$12 sps:$4 sm:$0xff]   ;;  %v7243_v42 = vld [vmem:[#allocation31 + $0x13c] ss:$12 sps:$4 sm:$0xff]  }
 0x7ae   : > { %v2799_v47 = vpop.f32.mrb[74].mxu0  ;;  %v5888_v58 = vld [vmem:[#allocation27] ss:$0 sm:$0xff] }
 0x7af   : > { %v2802_v11 = vmax.f32 %v2797_v9, 0.0  ;;  %v6480_v4 = vpop.f32.mrb[75].mxu0  ;;  %v7241_v9 = vld [vmem:[#allocation31 + $0x138] ss:$12 sps:$4 sm:$0xff]  }
 0x7b1   : > { %v2806_v5 = vsel %vm1091_vm0, %v2802_v11, %v2804_v3 }
 0x7b2   : > { %v2815_v14 = vpack.c.bf16 %v2806_v5, %v2806_v5 }
 0x7b4   : > { %6490 = vmatmul.mubr.msk.bf16.vlgmr.msra.gmra.mrb[72].mxu1 %vm1332_vm2, %v2815_v14 }
 0x7b5   : > { %3085 = vmatpush1.bf16.msra.mxu1 %v7168_v6  ;;  %3116 = vmatprep.mubr.bf16.mxu1 %v8212_v36  ;;  %v7224_v6 = vld [vmem:[#allocation31 + $0xe0] ss:$12 sps:$4 sm:$0xff]  }
 0x7b6   : > { %3086 = vmatprep.subr.bf16.mxu1 %v7173_v51  ;;  %v7229_v51 = vld [vmem:[#allocation31 + $0xf8] ss:$12 sps:$4 sm:$0xff]  }
 0x7b9   : > { %3087 = vmatpush1.bf16.msra.mxu1 %v7171_v62  ;;  %v7230_v62 = vld [vmem:[#allocation31 + $0x38] ss:$12 sps:$4 sm:$0xff]  }
 0x7ba   : > { %3088 = vmatprep.subr.bf16.mxu1 %v7176_v12  ;;  %v7234_v12 = vld [vmem:[#allocation31 + $0x110] ss:$12 sps:$4 sm:$0xff]  }
 0x7bd   : > { %3089 = vmatpush1.bf16.msra.mxu1 %v7174_v18  ;;  %v7235_v18 = vld [vmem:[#allocation31 + $0x50] ss:$12 sps:$4 sm:$0xff]  }
 0x7be   : > { %3090 = vmatprep.subr.bf16.mxu1 %v7179_v19  ;;  %v7239_v19 = vld [vmem:[#allocation31 + $0x128] ss:$12 sps:$4 sm:$0xff]  }
 0x7c1   : > { %3091 = vmatpush1.bf16.msra.mxu1 %v7177_v23  ;;  %v7240_v23 = vld [vmem:[#allocation31 + $0x68] ss:$12 sps:$4 sm:$0xff]  }
 0x7c2   : > { %3092 = vmatprep.subr.bf16.mxu1 %v7182_v20  ;;  %v7244_v20 = vld [vmem:[#allocation31 + $0x140] ss:$12 sps:$4 sm:$0xff]  }
 0x7c5   : > { %3093 = vmatpush1.bf16.msra.mxu1 %v7180_v59  ;;  %v7245_v59 = vld [vmem:[#allocation31 + $0x80] ss:$12 sps:$4 sm:$0xff]  }
 0x7c6   : > { %3094 = vmatprep.subr.bf16.mxu1 %v7185_v7  ;;  %v7248_v7 = vld [vmem:[#allocation31 + $0x154] ss:$12 sps:$4 sm:$0xff]  }
 0x7c9   : > { %3095 = vmatpush1.bf16.msra.mxu1 %v7183_v16  ;;  %v7249_v16 = vld [vmem:[#allocation31 + $0x158] ss:$12 sps:$4 sm:$0xff]  }
 0x7ca   : > { %3096 = vmatprep.subr.bf16.mxu1 %v7188_v25  ;;  %v7246_v25 = vld [vmem:[#allocation31 + $0x150] ss:$12 sps:$4 sm:$0xff]  }
 0x7cd   : > { %3097 = vmatpush1.bf16.msra.mxu1 %v7186_v10  ;;  %v7250_v10 = vld [vmem:[#allocation31 + $0x98] ss:$12 sps:$4 sm:$0xff]  }
 0x7ce   : > { %3098 = vmatprep.subr.bf16.mxu1 %v7191_v35 }
 0x7d1   : > { %3099 = vmatpush1.bf16.msra.mxu1 %v7189_v21 }
 0x7d2   : > { %6131 = vmatprep.subr.bf16.mxu1 %v7219_v40 }
 0x887   : > { %v2884_v28 = vpop.f32.mrb[72].mxu1 }
 0x888   : > { %v2885_v63 = vadd.f32 %v5882_v2, %v2884_v28  ;;  %v6491_v26 = vpop.f32.mrb[73].mxu1  ;;  %v7253_v2 = vld [vmem:[#allocation31 + $0x16c] ss:$12 sps:$4 sm:$0xff]   ;;  %v7254_v28 = vld [vmem:[#allocation31 + $0x170] ss:$12 sps:$4 sm:$0xff]  }
 0x889   : > { %v2887_v8 = vpop.f32.mrb[74].mxu1  ;;  %v7255_v26 = vld [vmem:[#allocation31 + $0xb0] ss:$12 sps:$4 sm:$0xff]  }
 0x88a   : > { %v2890_v27 = vmax.f32 %v2885_v63, 0.0  ;;  %v6492_v30 = vpop.f32.mrb[75].mxu1  ;;  %v7251_v63 = vld [vmem:[#allocation31 + $0x168] ss:$12 sps:$4 sm:$0xff]   ;;  %v2994_v8 = vlaneseq }
 0x88c   : > { %v2899_v32 = vpack.c.bf16 %v2890_v27, %v2890_v27  ;;  %v2995_v27 = vshrl.u32 %v2994_v8, 7 }
 0x88e   : > { %6502 = vmatmul.mubr.msk.bf16.vlgmr.msra.gmra.mrb[76].mxu0 %vm1332_vm2, %v2899_v32  ;;  %v2996_v30 = vsub.s32 0, %v2995_v27  ;;  %v2992_v32 = vld [vmem:[#allocation30] sm:$0x3]  ;;  %v3000_v35 = vsub.s32 1, %v2995_v27 }
 0x88f   : > { %3467 = vmatpush1.bf16.msra.mxu0 %v7192_v38 }
 0x890   : > { %3468 = vmatprep.subr.bf16.mxu0 %v7197_v22  ;;  %v2997_v21 = vrot.slane %v2992_v32, %v2996_v30  ;;  %v3001_v36 = vrot.slane %v2992_v32, %v3000_v35 }
 0x893   : > { %3469 = vmatpush1.bf16.msra.mxu0 %v7195_v39 }
 0x894   : > { %3470 = vmatprep.subr.bf16.mxu0 %v7200_v24 }
 0x897   : > { %3471 = vmatpush1.bf16.msra.mxu0 %v7198_v41 }
 0x898   : > { %3472 = vmatprep.subr.bf16.mxu0 %v7203_v29 }
 0x89b   : > { %3473 = vmatpush1.bf16.msra.mxu0 %v7201_v34 }
 0x89c   : > { %3474 = vmatprep.subr.bf16.mxu0 %v7206_v48  ;;  %v7256_v48 = vld [vmem:[%s10221_s22] sm:$0xff]  }
 0x89f   : > { %3475 = vmatpush1.bf16.msra.mxu0 %v7204_v49 }
 0x8a0   : > { %3476 = vmatprep.subr.bf16.mxu0 %v7209_v53  ;;  %v7257_v53 = vld [vmem:[%s10221_s22 + $0x8] sm:$0xff]  }
 0x8a3   : > { %3477 = vmatpush1.bf16.msra.mxu0 %v7207_v43  ;;  %v7258_v43 = vld [vmem:[%s10221_s22 + $0x10] sm:$0xff]  }
 0x8a4   : > { %3478 = vmatprep.subr.bf16.mxu0 %v7212_v31  ;;  %v7259_v31 = vld [vmem:[%s10221_s22 + $0x18] sm:$0xff]  }
 0x8a7   : > { %3479 = vmatpush1.bf16.msra.mxu0 %v7210_v54  ;;  %v7260_v54 = vld [vmem:[%s10221_s22 + $0x20] sm:$0xff]  }
 0x8a8   : > { %3480 = vmatprep.subr.bf16.mxu0 %v7215_v55  ;;  %v7261_v55 = vld [vmem:[%s10221_s22 + $0x28] sm:$0xff]  }
 0x8ab   : > { %3481 = vmatpush1.bf16.msra.mxu0 %v7213_v44  ;;  %v7262_v44 = vld [vmem:[%s10221_s22 + $0x30] sm:$0xff]  }
 0x8ac   : > { %3482 = vmatprep.subr.bf16.mxu0 %v7218_v60  ;;  %v7263_v60 = vld [vmem:[%s10221_s22 + $0x38] sm:$0xff]  }
 0x8af   : > { %3483 = vmatpush1.bf16.msra.mxu0 %v7216_v57  ;;  %v3193_v57 = vld [vmem:[%s10222_s15] sm:$0x7]  ;;  %s10224_s15 = sadd.s32 4294967295, %s8182_s30  }
 0x8b0   : > { %3484 = vmatprep.subr.bf16.mxu0 %v7223_v50  ;;  %v3198_v50 = vrot.slane %v3193_v57, %v2996_v30  ;;  %s5790_s28 = sshll.u32 %s10224_s15, 2 }
 0x8b1   : > { %p1034_p4 = scmp.lt.s32.totalorder %s5790_s28, 7 }
 0x8b3   : > { %3485 = vmatpush1.bf16.msra.mxu0 %v7221_v46  ;;  %v3205_v46 = vsub.s32 2, %v2995_v27  ;;  %s10231_s28 = smov (!%p1034_p4, %s5790_s28), 7 }
 0x8b4   : > { %3486 = vmatprep.subr.bf16.mxu0 %v7228_v61  ;;  %v3202_v61 = vrot.slane %v3193_v57, %v3000_v35  ;;  %s5791_s3 = sshll.u32 %s10231_s28, 3 }
 0x8b5   : > { %s9697_s10 = scalar_lea.vmem %s10225_s17, %s5791_s3 }
 0x8b7   : > { %3487 = vmatpush1.bf16.msra.mxu0 %v7226_v0 }
 0x8b8   : > { %3488 = vmatprep.subr.bf16.mxu0 %v7233_v56 }
 0x8bb   : > { %3489 = vmatpush1.bf16.msra.mxu0 %v7231_v52 }
 0x8bc   : > { %3490 = vmatprep.subr.bf16.mxu0 %v7238_v1 }
 0x8bf   : > { %3491 = vmatpush1.bf16.msra.mxu0 %v7236_v45  ;;  %v3206_v45 = vrot.slane %v3193_v57, %v3205_v46 }
 0x8c0   : > { %3492 = vmatprep.subr.bf16.mxu0 %v7243_v42 }
 0x8c3   : > { %3493 = vmatpush1.bf16.msra.mxu0 %v7241_v9 }
 0x8c4   : > { %3494 = vmatprep.subr.bf16.mxu0 %v7248_v7 }
 0x8c7   : > { %3495 = vmatpush1.bf16.msra.mxu0 %v7246_v25 }
 0x8c8   : > { %3496 = vmatprep.subr.bf16.mxu0 %v7253_v2 }
 0x8cb   : > { %3497 = vmatpush1.bf16.msra.mxu0 %v7251_v63 }
 0x961   : > { %v2968_v47 = vpop.f32.mrb[76].mxu0 }
 0x962   : > { %v2969_v3 = vadd.f32 %v5888_v58, %v2968_v47  ;;  %v6503_v11 = vpop.f32.mrb[77].mxu0 }
 0x963   : > { %v2971_v4 = vpop.f32.mrb[78].mxu0 }
 0x964   : > { %v2974_v5 = vmax.f32 %v2969_v3, 0.0  ;;  %v6504_v14 = vpop.f32.mrb[79].mxu0 }
 0x966   : > { %v2991_v17 = vpack.c.bf16 %v2974_v5, %v2974_v5 }
 0x968   : > { %3117 = vmatmul.mubr.bf16.vlgmr.msra.gmra.mrb[76].mxu1 %v2991_v17 }
 0x969   : > { %6132 = vmatpush3.bf16.msra.mxu1 %v7220_v13 }
 0x96a   : > { %6133 = vmatprep.subr.bf16.mxu1 %v7224_v6 }
 0x96d   : > { %6134 = vmatpush3.bf16.msra.mxu1 %v7225_v15 }
 0x96e   : > { %6135 = vmatprep.subr.bf16.mxu1 %v7229_v51 }
 0x971   : > { %6136 = vmatpush3.bf16.msra.mxu1 %v7230_v62 }
 0x972   : > { %6137 = vmatprep.subr.bf16.mxu1 %v7234_v12 }
 0x975   : > { %6138 = vmatpush3.bf16.msra.mxu1 %v7235_v18 }
 0x976   : > { %6139 = vmatprep.subr.bf16.mxu1 %v7239_v19 }
 0x979   : > { %6140 = vmatpush3.bf16.msra.mxu1 %v7240_v23 }
 0x97a   : > { %6141 = vmatprep.subr.bf16.mxu1 %v7244_v20 }
 0x97d   : > { %6142 = vmatpush3.bf16.msra.mxu1 %v7245_v59 }
 0x97e   : > { %6143 = vmatprep.subr.bf16.mxu1 %v7249_v16 }
 0x981   : > { %6144 = vmatpush3.bf16.msra.mxu1 %v7250_v10 }
 0x982   : > { %6145 = vmatprep.subr.bf16.mxu1 %v7254_v28 }
 0x985   : > { %6146 = vmatpush3.bf16.msra.mxu1 %v7255_v26 }
 0x986   : > { %6505 = vmatprep.subr.bf16.mxu1 %v8210_v33 }
 0xa3b   : > { %v3118_v38 = vpop.f32.mrb[76].mxu1 }
 0xa3c   : > { %v3119_v37 = vadd.f32 %v3118_v38, %v2997_v21  ;;  %v3120_v22 = vpop.f32.mrb[77].mxu1 }
 0xa3d   : > { %v3121_v39 = vadd.f32 %v3120_v22, %v3001_v36  ;;  %v3122_v24 = vpop.f32.mrb[78].mxu1 }
 0xa3e   : > { %v3125_v40 = vmax.f32 %v3119_v37, 0.0  ;;  %v3123_v41 = vpop.f32.mrb[79].mxu1 }
 0xa3f   : > { %v3126_v29 = vmax.f32 %v3121_v39, 0.0 }
 0xa40   : > { %v3191_v49 = vpack.c.bf16 %v3125_v40, %v3125_v40 }
 0xa41   : > { %v3192_v34 = vpack.c.bf16 %v3126_v29, %v3126_v29 }
 0xa43   : > { %3498 = vmatprep.mubr.bf16.mxu0 %v3192_v34  ;;  %3539 = vmatprep.mubr.bf16.mxu1 %v3192_v34 }
 0xa44   : > { %3499 = vmatmul.mubr.bf16.vlgmr.msra.gmra.mrb[80].mxu0 %v3191_v49  ;;  %3540 = vmatmul.mubr.bf16.vlgmr.msra.gmra.mrb[80].mxu1 %v3191_v49 }
 0xa45   : > { %6506 = vmatpush3.bf16.msra.mxu1 %v7256_v48  ;;  %6521 = vmatprep.mubr.msk.bf16.mxu1 %vm8211_vm3, %v8210_v33 }
 0xa46   : > { %6507 = vmatprep.subr.bf16.mxu1 %v8210_v33 }
 0xa49   : > { %6508 = vmatpush3.bf16.msra.mxu1 %v7257_v53 }
 0xa4a   : > { %6509 = vmatprep.subr.bf16.mxu1 %v8210_v33 }
 0xa4d   : > { %6510 = vmatpush3.bf16.msra.mxu1 %v7258_v43 }
 0xa4e   : > { %6511 = vmatprep.subr.bf16.mxu1 %v8210_v33 }
 0xa51   : > { %6512 = vmatpush3.bf16.msra.mxu1 %v7259_v31 }
 0xa52   : > { %6513 = vmatprep.subr.bf16.mxu1 %v8210_v33 }
 0xa55   : > { %6514 = vmatpush3.bf16.msra.mxu1 %v7260_v54 }
 0xa56   : > { %6515 = vmatprep.subr.bf16.mxu1 %v8210_v33 }
 0xa59   : > { %6516 = vmatpush3.bf16.msra.mxu1 %v7261_v55  ;;  %v7264_v55 = vld [vmem:[%s10221_s22] sm:$0xff]  }
 0xa5a   : > { %6517 = vmatprep.subr.bf16.mxu1 %v8210_v33 }
 0xa5d   : > { %6518 = vmatpush3.bf16.msra.mxu1 %v7262_v44 }
 0xa5e   : > { %6519 = vmatprep.subr.bf16.mxu1 %v8210_v33 }
 0xa61   : > { %6520 = vmatpush3.bf16.msra.mxu1 %v7263_v60 }
 0xa62   : > { %6579 = vmatprep.subr.bf16.mxu1 %v8210_v33 }
 0xb17   : > { %v3500_v0 = vpop.f32.mrb[80].mxu0  ;;  %v6147_v56 = vpop.f32.mrb[80].mxu1 }
 0xb18   : > { %v3501_v52 = vadd.f32 %v3500_v0, %v3198_v50  ;;  %v3502_v1 = vpop.f32.mrb[81].mxu0  ;;  %v6148_v42 = vpop.f32.mrb[81].mxu1  ;;  %v7265_v0 = vld [vmem:[%s10221_s22 + $0x8] sm:$0xff]  }
 0xb19   : > { %v3503_v9 = vadd.f32 %v3502_v1, %v3202_v61  ;;  %v6149_v58 = vadd.f32 %v6148_v42, %v6147_v56  ;;  %v3504_v47 = vpop.f32.mrb[82].mxu0  ;;  %v6150_v3 = vpop.f32.mrb[82].mxu1  ;;  %v7266_v56 = vld [vmem:[%s10221_s22 + $0x10] sm:$0xff]   ;;  %v7268_v1 = vld [vmem:[%s10221_s22 + $0x20] sm:$0xff]  }
 0xb1a   : > { %v3505_v11 = vpop.f32.mrb[83].mxu0  ;;  %v6151_v4 = vpop.f32.mrb[83].mxu1  ;;  %v3547_v13 = vsel %vm2441_vm4, %v3501_v52, 0.0  ;;  %v3554_v18 = vrot.slane %v3501_v52, 6  ;;  %v3563_v19 = vrot.slane %v3501_v52, 4  ;;  %v3571_v23 = vrot.slane %v3501_v52, 2 }
 0xb1b   : > { %v3548_v5 = vrot.slane %v3503_v9, 7  ;;  %v3557_v14 = vrot.slane %v3503_v9, 5  ;;  %v3542_v17 = vadd.f32 %v6149_v58, %v3206_v45  ;;  %v3566_v20 = vrot.slane %v3503_v9, 3  ;;  %v7269_v45 = vld [vmem:[%s10221_s22 + $0x28] sm:$0xff]   ;;  %v7270_v42 = vld [vmem:[%s10221_s22 + $0x30] sm:$0xff]   ;;  %v7272_v58 = vld [vmem:[%s10221_s22] sm:$0xff]  }
 0xb1c   : > { %v3573_v59 = vrot.slane %v3503_v9, 1  ;;  %v7271_v9 = vld [vmem:[%s10221_s22 + $0x38] sm:$0xff]   ;;  %v7273_v3 = vld [vmem:[%s10221_s22 + $0x8] sm:$0xff]   ;;  %v7274_v11 = vld [vmem:[%s10221_s22 + $0x10] sm:$0xff]  }
 0xb1d   : > { %v3550_v6 = vsel %vm3549_vm9, %v3548_v5, %v3547_v13  ;;  %v3580_v15 = vsel %vm2441_vm4, %v3557_v14, 0.0  ;;  %v3551_v51 = vrot.slane %v3542_v17, 6  ;;  %v3560_v62 = vrot.slane %v3542_v17, 4  ;;  %v7275_v4 = vld [vmem:[%s10221_s22 + $0x18] sm:$0xff]   ;;  %v7278_v13 = vld [vmem:[%s10221_s22 + $0x30] sm:$0xff]  }
 0xb1e   : > { %v3569_v12 = vrot.slane %v3542_v17, 2 }
 0xb1f   : > { %v3581_v16 = vsel %vm3549_vm9, %v3560_v62, %v3580_v15  ;;  %v3553_v25 = vsel %vm3552_vm10, %v3551_v51, %v3550_v6 }
 0xb20   : > { %v3570_v7 = vsel %vm2441_vm4, %v3569_v12, 0.0  ;;  %v3582_v2 = vsel %vm3552_vm10, %v3563_v19, %v3581_v16  ;;  %v3556_v28 = vsel %vm3555_vm11, %v3554_v18, %v3553_v25 }
 0xb21   : > { %v3572_v10 = vsel %vm3549_vm9, %v3571_v23, %v3570_v7  ;;  %v3583_v26 = vsel %vm3555_vm11, %v3566_v20, %v3582_v2  ;;  %v3559_v8 = vsel %vm3558_vm12, %v3557_v14, %v3556_v28  ;;  %v7277_v14 = vld [vmem:[%s10221_s22 + $0x28] sm:$0xff]  }
 0xb22   : > { %v3574_v63 = vsel %vm3552_vm10, %v3573_v59, %v3572_v10  ;;  %v3562_v30 = vsel %vm3561_vm13, %v3560_v62, %v3559_v8  ;;  %v3584_v32 = vsel %vm3558_vm12, %v3569_v12, %v3583_v26  ;;  %v5958_v62 = vld [vmem:[%s10223_s4] ss:$0 sm:$0xff] }
 0xb23   : > { %v3575_v27 = vsel %vm3555_vm11, %v3542_v17, %v3574_v63  ;;  %v3565_v35 = vsel %vm3564_vm14, %v3563_v19, %v3562_v30  ;;  %v3585_v36 = vsel %vm3561_vm13, %v3571_v23, %v3584_v32 }
 0xb24   : > { %v3576_v21 = vsel %vm3558_vm12, %v3501_v52, %v3575_v27  ;;  %v3568_v38 = vsel %vm3567_vm15, %v3566_v20, %v3565_v35  ;;  %v3586_v22 = vsel %vm3564_vm14, %v3573_v59, %v3585_v36  ;;  %v7267_v52 = vld [vmem:[%s10221_s22 + $0x18] sm:$0xff]  }
 0xb25   : > { %v3577_v37 = vsel %vm3561_vm13, %v3548_v5, %v3576_v21  ;;  %v3587_v24 = vsel %vm3567_vm15, %v3542_v17, %v3586_v22  ;;  %v4543_v49 = vrot.slane %v3568_v38, 6  ;;  %v4064_v43 = vrot.slane %v3568_v38, 3  ;;  %v7276_v5 = vld [vmem:[%s10221_s22 + $0x20] sm:$0xff]   ;;  %v7279_v17 = vld [vmem:[%s10221_s22 + $0x38] sm:$0xff]  }
 0xb26   : > { %v3578_v39 = vsel %vm3564_vm14, %v3551_v51, %v3577_v37  ;;  %v4068_v41 = vrot.slane %v3587_v24, 4  ;;  %v5021_v29 = vrot.slane %v3587_v24, 2  ;;  %v4547_v31 = vrot.slane %v3587_v24, 7 }
 0xb27   : > { %v3579_v40 = vsel %vm3567_vm15, %v3554_v18, %v3578_v39 }
 0xb28   : > { %v3589_v34 = vrot.slane %v3579_v40, 1  ;;  %v4067_v48 = vrot.slane %v3579_v40, 4  ;;  %v4544_v53 = vrot.slane %v3579_v40, 6 }
 0xb2a   : > { %v3591_v54 = vsel %vm2445_vm6, %v3568_v38, %v3589_v34  ;;  %v4069_v44 = vsel %vm1091_vm0, %v4067_v48, %v4068_v41  ;;  %v4545_v60 = vsel %vm2443_vm5, %v4543_v49, %v4544_v53  ;;  %v9475_v57 = vsel %vm2445_vm6, %v3589_v34, %v5021_v29 }
 0xb2b   : > { %v9477_v50 = vpack.c.bf16 %v3591_v54, %v3591_v54  ;;  %v4071_v46 = vsel %vm2445_vm6, %v4064_v43, %v4069_v44  ;;  %v4549_v61 = vsel %vm2445_vm6, %v4545_v60, %v4547_v31  ;;  %vm3721_vm0 = vcmask 48128  }
 0xb2c   : > { %v9516_v47 = vpack.c.bf16 %v4071_v46, %v4071_v46  ;;  %v9550_v6 = vpack.c.bf16 %v4549_v61, %v4549_v61 }
 0xb2d   : > { %3705 = vxpose.xlu0.c.b16.start.end [1/1] (short) %v9477_v50, 128  ;;  %6522 = vmatmul.mubr.bf16.vlgmr.msra.gmra.mrb[84].mxu1 %v9477_v50 }
 0xb2e   : > { %6580 = vmatpush3.bf16.msra.mxu1 %v7264_v55  ;;  %6595 = vmatprep.mubr.msk.bf16.mxu1 %vm8211_vm3, %v8210_v33 }
 0xb2f   : > { %6581 = vmatprep.subr.bf16.mxu1 %v8210_v33 }
 0xb32   : > { %6582 = vmatpush3.bf16.msra.mxu1 %v7265_v0 }
 0xb33   : > { %6583 = vmatprep.subr.bf16.mxu1 %v8210_v33 }
 0xb36   : > { %6584 = vmatpush3.bf16.msra.mxu1 %v7266_v56 }
 0xb37   : > { %6585 = vmatprep.subr.bf16.mxu1 %v8210_v33 }
 0xb3a   : > { %6586 = vmatpush3.bf16.msra.mxu1 %v7267_v52 }
 0xb3b   : > { %6587 = vmatprep.subr.bf16.mxu1 %v8210_v33 }
 0xb3e   : > { %6588 = vmatpush3.bf16.msra.mxu1 %v7268_v1 }
 0xb3f   : > { %6589 = vmatprep.subr.bf16.mxu1 %v8210_v33 }
 0xb42   : > { %6590 = vmatpush3.bf16.msra.mxu1 %v7269_v45 }
 0xb43   : > { %6591 = vmatprep.subr.bf16.mxu1 %v8210_v33 }
 0xb46   : > { %6592 = vmatpush3.bf16.msra.mxu1 %v7270_v42 }
 0xb47   : > { %6593 = vmatprep.subr.bf16.mxu1 %v8210_v33 }
 0xb4a   : > { %6594 = vmatpush3.bf16.msra.mxu1 %v7271_v9 }
 0xb4b   : > { %6653 = vmatprep.subr.bf16.mxu1 %v8210_v33 }
 0xb4d   : > { %6596 = vmatmul.mubr.bf16.vlgmr.msra.gmra.mrb[88].mxu1 %v9516_v47 }
 0xb4e   : > { %6654 = vmatpush3.bf16.msra.mxu1 %v7272_v58  ;;  %6669 = vmatprep.mubr.msk.bf16.mxu1 %vm8211_vm3, %v8210_v33 }
 0xb4f   : > { %6655 = vmatprep.subr.bf16.mxu1 %v8210_v33 }
 0xb52   : > { %6656 = vmatpush3.bf16.msra.mxu1 %v7273_v3 }
 0xb53   : > { %6657 = vmatprep.subr.bf16.mxu1 %v8210_v33 }
 0xb56   : > { %6658 = vmatpush3.bf16.msra.mxu1 %v7274_v11 }
 0xb57   : > { %6659 = vmatprep.subr.bf16.mxu1 %v8210_v33 }
 0xb5a   : > { %6660 = vmatpush3.bf16.msra.mxu1 %v7275_v4 }
 0xb5b   : > { %6661 = vmatprep.subr.bf16.mxu1 %v8210_v33 }
 0xb5e   : > { %6662 = vmatpush3.bf16.msra.mxu1 %v7276_v5 }
 0xb5f   : > { %6663 = vmatprep.subr.bf16.mxu1 %v8210_v33 }
 0xb62   : > { %6664 = vmatpush3.bf16.msra.mxu1 %v7277_v14 }
 0xb63   : > { %6665 = vmatprep.subr.bf16.mxu1 %v8210_v33 }
 0xb66   : > { %6666 = vmatpush3.bf16.msra.mxu1 %v7278_v13 }
 0xb67   : > { %6667 = vmatprep.subr.bf16.mxu1 %v8210_v33 }
 0xb6a   : > { %6668 = vmatpush3.bf16.msra.mxu1 %v7279_v17 }
 0xb6d   : > { %6670 = vmatmul.mubr.bf16.vlgmr.msra.gmra.mrb[92].mxu1 %v9550_v6 }
 0xb6e   : > { %6723 = vmatprep.mubr.msk.bf16.mxu1 %vm8211_vm3, %v8210_v33 }
 0xb93   : > { %v3713_v15 = vpop.trf.xlu0 }
 0xb94   : > { %6527 = vmatprep.mubr.msk.bf16.mxu0 %vm3721_vm0, %v3713_v15 }
 0xb97   : > { %v3714_v51 = vpop.trf.xlu0 }
 0xb9b   : > { %v3715_v18 = vpop.trf.xlu0 }
 0xb9f   : > { %v3716_v25 = vpop.trf.xlu0 }
 0xba3   : > { %v3717_v10 = vpop.trf.xlu0 }
 0xba7   : > { %v3718_v2 = vpop.trf.xlu0 }
 0xbab   : > { %v3719_v28 = vpop.trf.xlu0 }
 0xbaf   : > { %v3720_v63 = vpop.trf.xlu0 }
 0xc00   : > { %v3698_v12 = vpop.f32.mrb[84].mxu1 }
 0xc01   : > { %v3699_v19 = vadd.f32 %v5958_v62, %v3698_v12  ;;  %v6523_v23 = vpop.f32.mrb[85].mxu1 }
 0xc02   : > { %v3701_v20 = vpop.f32.mrb[86].mxu1 }
 0xc03   : > { %v3704_v59 = vpack.c.bf16 %v3699_v19, %v3699_v19  ;;  %v6524_v7 = vpop.f32.mrb[87].mxu1 }
 0xc05   : > { %v3747_v16 = vsel %vm2445_vm6, %v3704_v59, 0  ;;  %6905 = vmatprep.subr.msk.bf16.mxu0 %vm2445_vm6, %v3704_v59 }
 0xc06   : > { %6526 = vmatpush3.bf16.msra.mxu0 %v3747_v16 }
 0xc09   : > { %6528 = vmatmul.mubr.msk.bf16.vlgmr.msra.gmra.mrb[84].mxu0 %vm3721_vm0, %v3714_v51 }
 0xc0a   : > { %6531 = vmatprep.mubr.msk.bf16.mxu0 %vm3721_vm0, %v3715_v18 }
 0xc11   : > { %6532 = vmatmul.mubr.msk.bf16.gmra.mrb[88].mxu0 %vm3721_vm0, %v3716_v25 }
 0xc12   : > { %6535 = vmatprep.mubr.msk.bf16.mxu0 %vm3721_vm0, %v3717_v10 }
 0xc19   : > { %6536 = vmatmul.mubr.msk.bf16.gmra.mrb[92].mxu0 %vm3721_vm0, %v3718_v2 }
 0xc1a   : > { %6539 = vmatprep.mubr.msk.bf16.mxu0 %vm3721_vm0, %v3719_v28 }
 0xc20   : > { %v4178_v26 = vpop.f32.mrb[88].mxu1 }
 0xc21   : > { %v9567_v8 = vadd.f32 %v5958_v62, %v4178_v26  ;;  %v6597_v27 = vpop.f32.mrb[89].mxu1  ;;  %6540 = vmatmul.mubr.msk.bf16.gmra.mrb[96].mxu0 %vm3721_vm0, %v3720_v63 }
 0xc22   : > { %v4181_v30 = vpop.f32.mrb[90].mxu1  ;;  %6575 = vmatprep.mubr.msk.bf16.mxu0 %vm8211_vm3, %v8210_v33 }
 0xc23   : > { %v6598_v32 = vpop.f32.mrb[91].mxu1 }
 0xc40   : > { %v4656_v35 = vpop.f32.mrb[92].mxu1 }
 0xc41   : > { %v9572_v21 = vadd.f32 %v5958_v62, %v4656_v35  ;;  %v6671_v36 = vpop.f32.mrb[93].mxu1 }
 0xc42   : > { %v4659_v38 = vpop.f32.mrb[94].mxu1 }
 0xc43   : > { %v6672_v37 = vpop.f32.mrb[95].mxu1 }
 0xcdc   : > { %v6529_v22 = vpop.f32.mrb[84].mxu0 }
 0xcdd   : > { %v3783_v39 = vpop.f32.mrb[85].mxu0 }
 0xcde   : > { %3846 = vmax.xlane.f32.xlu1 %v3783_v39  ;;  %v6530_v24 = vpop.f32.mrb[86].mxu0 }
 0xcdf   : > { %v3786_v40 = vpop.f32.mrb[87].mxu0 }
 0xce0   : > { %3848 = vmax.xlane.f32.xlu0 %v3786_v40 }
 0xce2   : > { %3850 = vmax.xlane.f32.xlu1 %v6529_v22 }
 0xce4   : > { %v6533_v41 = vpop.f32.mrb[88].mxu0 }
 0xce5   : > { %v3799_v29 = vpop.f32.mrb[89].mxu0 }
 0xce6   : > { %3852 = vmax.xlane.f32.xlu1 %v6530_v24  ;;  %v6534_v34 = vpop.f32.mrb[90].mxu0 }
 0xce7   : > { %v3802_v48 = vpop.f32.mrb[91].mxu0 }
 0xcea   : > { %3858 = vmax.xlane.f32.xlu1 %v6533_v41 }
 0xcec   : > { %v9574_v49 = vpop.f32.mrb[92].mxu0 }
 0xced   : > { %3866 = vmax.xlane.f32.xlu0 %v9574_v49  ;;  %v3815_v53 = vpop.f32.mrb[93].mxu0 }
 0xcee   : > { %3854 = vmax.xlane.f32.xlu1 %v3799_v29  ;;  %v9577_v43 = vpop.f32.mrb[94].mxu0 }
 0xcef   : > { %v9579_v31 = vpop.f32.mrb[95].mxu0 }
 0xcf2   : > { %3860 = vmax.xlane.f32.xlu1 %v6534_v34 }
 0xcf4   : > { %v9581_v54 = vpop.f32.mrb[96].mxu0 }
 0xcf5   : > { %v9583_v55 = vpop.f32.mrb[97].mxu0 }
 0xcf6   : > { %3856 = vmax.xlane.f32.xlu1 %v3802_v48  ;;  %3870 = vmax.xlane.f32.xlu0 %v9583_v55  ;;  %v9586_v44 = vpop.f32.mrb[98].mxu0 }
 0xcf7   : > { %v9588_v60 = vpop.f32.mrb[99].mxu0 }
 0xcfa   : > { %3862 = vmax.xlane.f32.xlu1 %v3815_v53  ;;  %3874 = vmax.xlane.f32.xlu0 %v9581_v54 }
 0xcfe   : > { %3864 = vmax.xlane.f32.xlu1 %v9579_v31 }
 0xd02   : > { %3868 = vmax.xlane.f32.xlu1 %v9577_v43 }
 0xd06   : > { %3872 = vmax.xlane.f32.xlu1 %v9588_v60 }
 0xd0a   : > { %3876 = vmax.xlane.f32.xlu1 %v9586_v44 }
 0xd6b   : > { %v3847_v46 = vpop.xlane.xlu1 %3846 }
 0xd6c   : > { %v3878_v61 = vsub.f32 %v3783_v39, %v3847_v46 }
 0xd6d   : > { %v3849_v0 = vpop.xlane.xlu0 %3848 }
 0xd6e   : > { %v3894_v56 = vmul.f32 1.442695, %v3878_v61  ;;  %v3879_v52 = vsub.f32 %v3786_v40, %v3849_v0 }
 0xd6f   : > { %v3851_v1 = vpop.xlane.xlu1 %3850 }
 0xd70   : > { %7288 = vpow2.f32 %v3894_v56  ;;  %v3896_v45 = vmul.f32 1.442695, %v3879_v52  ;;  %v3880_v42 = vsub.f32 %v6529_v22, %v3851_v1 }
 0xd72   : > { %7290 = vpow2.f32 %v3896_v45  ;;  %v3898_v9 = vmul.f32 1.442695, %v3880_v42 }
 0xd73   : > { %v3853_v58 = vpop.xlane.xlu1 %3852 }
 0xd74   : > { %7292 = vpow2.f32 %v3898_v9  ;;  %v3881_v3 = vsub.f32 %v6530_v24, %v3853_v58 }
 0xd76   : > { %v3900_v11 = vmul.f32 1.442695, %v3881_v3 }
 0xd77   : > { %v3859_v4 = vpop.xlane.xlu1 %3858 }
 0xd78   : > { %7294 = vpow2.f32 %v3900_v11  ;;  %v3884_v17 = vsub.f32 %v6533_v41, %v3859_v4 }
 0xd7a   : > { %v9595_v5 = vpop.eup %7288  ;;  %v3906_v18 = vmul.f32 1.442695, %v3884_v17  ;;  %v3867_v23 = vpop.xlane.xlu0 %3866 }
 0xd7b   : > { %v3855_v14 = vpop.xlane.xlu1 %3854  ;;  %3926 = vadd.xlane.f32.xlu0 %v9595_v5  ;;  %v3888_v10 = vsub.f32 %v9574_v49, %v3867_v23 }
 0xd7c   : > { %v9598_v13 = vpop.eup %7290  ;;  %v3882_v15 = vsub.f32 %v3799_v29, %v3855_v14 }
 0xd7d   : > { %3928 = vadd.xlane.f32.xlu1 %v9598_v13  ;;  %v3914_v30 = vmul.f32 1.442695, %v3888_v10 }
 0xd7e   : > { %v9601_v51 = vpop.eup %7292  ;;  %v3902_v62 = vmul.f32 1.442695, %v3882_v15 }
 0xd7f   : > { %v3861_v12 = vpop.xlane.xlu1 %3860  ;;  %3930 = vadd.xlane.f32.xlu0 %v9601_v51 }
 0xd80   : > { %7296 = vpow2.f32 %v3902_v62  ;;  %v3885_v20 = vsub.f32 %v6534_v34, %v3861_v12 }
 0xd81   : > { %7298 = vpow2.f32 %v3906_v18 }
 0xd82   : > { %v9604_v19 = vpop.eup %7294  ;;  %v3908_v2 = vmul.f32 1.442695, %v3885_v20 }
 0xd83   : > { %v3857_v59 = vpop.xlane.xlu1 %3856  ;;  %3932 = vadd.xlane.f32.xlu1 %v9604_v19  ;;  %v3871_v25 = vpop.xlane.xlu0 %3870 }
 0xd84   : > { %v3883_v7 = vsub.f32 %v3802_v48, %v3857_v59  ;;  %v3890_v32 = vsub.f32 %v9583_v55, %v3871_v25 }
 0xd86   : > { %v3904_v16 = vmul.f32 1.442695, %v3883_v7  ;;  %v3918_v39 = vmul.f32 1.442695, %v3890_v32 }
 0xd87   : > { %v3863_v28 = vpop.xlane.xlu1 %3862  ;;  %v3875_v36 = vpop.xlane.xlu0 %3874 }
 0xd88   : > { %7300 = vpow2.f32 %v3904_v16  ;;  %v3886_v63 = vsub.f32 %v3815_v53, %v3863_v28  ;;  %v3892_v24 = vsub.f32 %v9581_v54, %v3875_v36 }
 0xd89   : > { %7302 = vpow2.f32 %v3908_v2 }
 0xd8a   : > { %v9608_v26 = vpop.eup %7296  ;;  %v3910_v27 = vmul.f32 1.442695, %v3886_v63  ;;  %v3922_v48 = vmul.f32 1.442695, %v3892_v24 }
 0xd8b   : > { %v3865_v35 = vpop.xlane.xlu1 %3864  ;;  %3934 = vadd.xlane.f32.xlu0 %v9608_v26  ;;  %v9613_v37 = vpop.eup %7298 }
 0xd8c   : > { %7304 = vpow2.f32 %v3910_v27  ;;  %v3887_v38 = vsub.f32 %v9579_v31, %v3865_v35 }
 0xd8d   : > { %7306 = vpow2.f32 %v3914_v30 }
 0xd8e   : > { %v3912_v22 = vmul.f32 1.442695, %v3887_v38 }
 0xd8f   : > { %v3869_v40 = vpop.xlane.xlu1 %3868  ;;  %3938 = vadd.xlane.f32.xlu0 %v9613_v37 }
 0xd90   : > { %7308 = vpow2.f32 %v3912_v22  ;;  %v3889_v41 = vsub.f32 %v9577_v43, %v3869_v40 }
 0xd91   : > { %7310 = vpow2.f32 %v3918_v39 }
 0xd92   : > { %v9618_v29 = vpop.eup %7300  ;;  %v3916_v34 = vmul.f32 1.442695, %v3889_v41 }
 0xd93   : > { %3936 = vadd.xlane.f32.xlu1 %v9618_v29  ;;  %v3873_v49 = vpop.xlane.xlu1 %3872  ;;  %v9622_v31 = vpop.eup %7302 }
 0xd94   : > { %7312 = vpow2.f32 %v3916_v34  ;;  %v3891_v53 = vsub.f32 %v9588_v60, %v3873_v49  ;;  %v8213_v60 = vmov 0.0|0.0  }
 0xd95   : > { %7314 = vpow2.f32 %v3922_v48  ;;  %6801 = vmatprep.subr.bf16.mxu0 %v8213_v60  ;;  %6849 = vmatprep.subr.bf16.mxu1 %v8213_v60 }
 0xd96   : > { %v9624_v54 = vpop.eup %7304  ;;  %v3920_v55 = vmul.f32 1.442695, %v3891_v53 }
 0xd97   : > { %3942 = vadd.xlane.f32.xlu0 %v9624_v54  ;;  %3940 = vadd.xlane.f32.xlu1 %v9622_v31  ;;  %v3877_v43 = vpop.xlane.xlu1 %3876  ;;  %v9629_v61 = vpop.eup %7306 }
 0xd98   : > { %7316 = vpow2.f32 %v3920_v55  ;;  %v3893_v46 = vsub.f32 %v9586_v44, %v3877_v43 }
 0xd9a   : > { %v9631_v0 = vpop.eup %7308  ;;  %v3924_v56 = vmul.f32 1.442695, %v3893_v46 }
 0xd9b   : > { %3946 = vadd.xlane.f32.xlu0 %v9629_v61  ;;  %3944 = vadd.xlane.f32.xlu1 %v9631_v0  ;;  %v9637_v52 = vpop.eup %7310 }
 0xd9c   : > { %7318 = vpow2.f32 %v3924_v56 }
 0xd9e   : > { %v9639_v1 = vpop.eup %7312 }
 0xd9f   : > { %3950 = vadd.xlane.f32.xlu0 %v9637_v52  ;;  %3948 = vadd.xlane.f32.xlu1 %v9639_v1  ;;  %v9643_v44 = vpop.eup %7314 }
 0xda2   : > { %v9645_v45 = vpop.eup %7316 }
 0xda3   : > { %3954 = vadd.xlane.f32.xlu0 %v9643_v44  ;;  %3952 = vadd.xlane.f32.xlu1 %v9645_v45 }
 0xda6   : > { %v9649_v42 = vpop.eup %7318 }
 0xda7   : > { %3956 = vadd.xlane.f32.xlu1 %v9649_v42 }
 0xdd0   : > { %4185 = vxpose.xlu0.c.b16.start.end [1/1] (short) %v9516_v47, 128 }
 0xe08   : > { %v3927_v9 = vpop.xlane.xlu0 %3926 }
 0xe09   : > { %7320 = vrcp.f32 %v3927_v9 }
 0xe0a   : > { %v3929_v58 = vpop.xlane.xlu1 %3928 }
 0xe0b   : > { %7322 = vrcp.f32 %v3929_v58 }
 0xe0c   : > { %v3931_v3 = vpop.xlane.xlu0 %3930 }
 0xe0d   : > { %7324 = vrcp.f32 %v3931_v3 }
 0xe10   : > { %v3933_v11 = vpop.xlane.xlu1 %3932 }
 0xe11   : > { %7326 = vrcp.f32 %v3933_v11 }
 0xe13   : > { %v7321_v4 = vpop.eup %7320 }
 0xe14   : > { %v3974_v17 = vmul.f32 %v7321_v4, %v9595_v5 }
 0xe15   : > { %v7323_v14 = vpop.eup %7322 }
 0xe16   : > { %v3975_v15 = vmul.f32 %v7323_v14, %v9598_v13 }
 0xe17   : > { %v7325_v12 = vpop.eup %7324 }
 0xe18   : > { %v6802_v62 = vpack.c.bf16 %v3975_v15, %v3974_v17  ;;  %v3935_v18 = vpop.xlane.xlu0 %3934  ;;  %v3976_v20 = vmul.f32 %v7325_v12, %v9601_v51  ;;  %v4184_v17 = vpack.c.bf16 %v9567_v8, %v9567_v8 }
 0xe19   : > { %7328 = vrcp.f32 %v3935_v18 }
 0xe1a   : > { %6803 = vmatpush3.bf16.msra.mxu0 %v6802_v62 }
 0xe1b   : > { %v7327_v23 = vpop.eup %7326  ;;  %6804 = vmatprep.subr.bf16.mxu0 %v8213_v60 }
 0xe1c   : > { %v3977_v59 = vmul.f32 %v7327_v23, %v9604_v19  ;;  %v3939_v16 = vpop.xlane.xlu0 %3938 }
 0xe1e   : > { %v6805_v7 = vpack.c.bf16 %v3977_v59, %v3976_v20 }
 0xe20   : > { %6806 = vmatpush3.bf16.msra.mxu0 %v6805_v7  ;;  %v3937_v25 = vpop.xlane.xlu1 %3936 }
 0xe21   : > { %7330 = vrcp.f32 %v3937_v25  ;;  %6807 = vmatprep.subr.bf16.mxu0 %v8213_v60 }
 0xe22   : > { %7332 = vrcp.f32 %v3939_v16 }
 0xe23   : > { %v7329_v28 = vpop.eup %7328 }
 0xe24   : > { %v3943_v5 = vpop.xlane.xlu0 %3942  ;;  %v3941_v13 = vpop.xlane.xlu1 %3940  ;;  %v3978_v27 = vmul.f32 %v7329_v28, %v9608_v26 }
 0xe25   : > { %7334 = vrcp.f32 %v3941_v13 }
 0xe26   : > { %7336 = vrcp.f32 %v3943_v5 }
 0xe28   : > { %v3947_v10 = vpop.xlane.xlu0 %3946  ;;  %v3945_v2 = vpop.xlane.xlu1 %3944 }
 0xe29   : > { %7338 = vrcp.f32 %v3945_v2 }
 0xe2a   : > { %7340 = vrcp.f32 %v3947_v10 }
 0xe2b   : > { %v7331_v51 = vpop.eup %7330 }
 0xe2c   : > { %v3951_v19 = vpop.xlane.xlu0 %3950  ;;  %v3949_v63 = vpop.xlane.xlu1 %3948  ;;  %v3979_v30 = vmul.f32 %v7331_v51, %v9618_v29 }
 0xe2d   : > { %v7333_v32 = vpop.eup %7332  ;;  %7342 = vrcp.f32 %v3949_v63 }
 0xe2e   : > { %v6808_v35 = vpack.c.bf16 %v3979_v30, %v3978_v27  ;;  %7344 = vrcp.f32 %v3951_v19  ;;  %v3980_v39 = vmul.f32 %v7333_v32, %v9613_v37 }
 0xe2f   : > { %v7335_v36 = vpop.eup %7334 }
 0xe30   : > { %v3955_v38 = vpop.xlane.xlu0 %3954  ;;  %6809 = vmatpush3.bf16.msra.mxu0 %v6808_v35  ;;  %v3953_v22 = vpop.xlane.xlu1 %3952  ;;  %v3981_v24 = vmul.f32 %v7335_v36, %v9622_v31 }
 0xe31   : > { %6810 = vmatprep.subr.bf16.mxu0 %v8213_v60  ;;  %v7337_v40 = vpop.eup %7336  ;;  %7346 = vrcp.f32 %v3953_v22 }
 0xe32   : > { %7348 = vrcp.f32 %v3955_v38  ;;  %v6811_v26 = vpack.c.bf16 %v3981_v24, %v3980_v39  ;;  %v3982_v34 = vmul.f32 %v7337_v40, %v9624_v54 }
 0xe33   : > { %v7339_v41 = vpop.eup %7338 }
 0xe34   : > { %v3957_v29 = vpop.xlane.xlu1 %3956  ;;  %6812 = vmatpush3.bf16.msra.mxu0 %v6811_v26  ;;  %v3983_v48 = vmul.f32 %v7339_v41, %v9631_v0  ;;  %v7341_v49 = vpop.eup %7340 }
 0xe35   : > { %7350 = vrcp.f32 %v3957_v29  ;;  %6813 = vmatprep.subr.bf16.mxu0 %v8213_v60  ;;  %v3984_v37 = vmul.f32 %v7341_v49, %v9629_v61 }
 0xe36   : > { %v6814_v53 = vpack.c.bf16 %v3983_v48, %v3982_v34  ;;  %v4193_v58 = vpop.trf.xlu0 }
 0xe37   : > { %v7343_v55 = vpop.eup %7342 }
 0xe38   : > { %6815 = vmatpush3.bf16.msra.mxu0 %v6814_v53  ;;  %v3985_v31 = vmul.f32 %v7343_v55, %v9639_v1  ;;  %v7345_v43 = vpop.eup %7344 }
 0xe39   : > { %6816 = vmatprep.subr.bf16.mxu0 %v8213_v60  ;;  %v3986_v54 = vmul.f32 %v7345_v43, %v9637_v52  ;;  %v4226_v52 = vsel %vm2445_vm6, %v4184_v17, 0 }
 0xe3a   : > { %v6817_v46 = vpack.c.bf16 %v3985_v31, %v3984_v37  ;;  %v4194_v14 = vpop.trf.xlu0 }
 0xe3b   : > { %v7347_v56 = vpop.eup %7346 }
 0xe3c   : > { %v7349_v9 = vpop.eup %7348  ;;  %6818 = vmatpush3.bf16.msra.mxu0 %v6817_v46  ;;  %v3987_v0 = vmul.f32 %v7347_v56, %v9645_v45 }
 0xe3d   : > { %6819 = vmatprep.subr.bf16.mxu0 %v8213_v60  ;;  %v3988_v61 = vmul.f32 %v7349_v9, %v9643_v44 }
 0xe3e   : > { %v6820_v11 = vpack.c.bf16 %v3987_v0, %v3986_v54  ;;  %v4195_v44 = vpop.trf.xlu0 }
 0xe3f   : > { %v7351_v3 = vpop.eup %7350 }
 0xe40   : > { %v3989_v1 = vmul.f32 %v7351_v3, %v9649_v42  ;;  %6821 = vmatpush3.bf16.msra.mxu0 %v6820_v11 }
 0xe41   : > { %6822 = vmatprep.subr.bf16.mxu0 %v8213_v60 }
 0xe42   : > { %v6823_v4 = vpack.c.bf16 %v3989_v1, %v3988_v61  ;;  %v4196_v45 = vpop.trf.xlu0 }
 0xe44   : > { %6824 = vmatpush3.bf16.msra.mxu0 %v6823_v4 }
 0xe45   : > { %6906 = vmatprep.subr.msk.bf16.mxu0 %vm2445_vm6, %v4184_v17 }
 0xe46   : > { %v4197_v8 = vpop.trf.xlu0 }
 0xe47   : > { %6576 = vmatmul.mubr.bf16.vlgmr.msra.gmra.mrb[100].mxu0 %v9477_v50 }
 0xe48   : > { %6600 = vmatpush3.bf16.msra.mxu0 %v4226_v52  ;;  %6601 = vmatprep.mubr.msk.bf16.mxu0 %vm3721_vm0, %v4193_v58 }
 0xe49   : > { %6825 = vmatprep.subr.bf16.mxu0 %v8213_v60 }
 0xe4a   : > { %v4198_v42 = vpop.trf.xlu0 }
 0xe4e   : > { %v4199_v15 = vpop.trf.xlu0 }
 0xe4f   : > { %6602 = vmatmul.mubr.msk.bf16.vlgmr.msra.gmra.mrb[104].mxu0 %vm3721_vm0, %v4194_v14 }
 0xe50   : > { %6605 = vmatprep.mubr.msk.bf16.mxu0 %vm3721_vm0, %v4195_v44 }
 0xe52   : > { %v4200_v50 = vpop.trf.xlu0 }
 0xe57   : > { %6606 = vmatmul.mubr.msk.bf16.gmra.mrb[108].mxu0 %vm3721_vm0, %v4196_v45 }
 0xe58   : > { %6609 = vmatprep.mubr.msk.bf16.mxu0 %vm3721_vm0, %v4197_v8 }
 0xe5f   : > { %6610 = vmatmul.mubr.msk.bf16.gmra.mrb[112].mxu0 %vm3721_vm0, %v4198_v42 }
 0xe60   : > { %6613 = vmatprep.mubr.msk.bf16.mxu0 %vm3721_vm0, %v4199_v15 }
 0xe67   : > { %6614 = vmatmul.mubr.msk.bf16.gmra.mrb[116].mxu0 %vm3721_vm0, %v4200_v50 }
 0xe68   : > { %6649 = vmatprep.mubr.msk.bf16.mxu0 %vm8211_vm3, %v8210_v33 }
 0xf1a   : > { %v4056_v62 = vpop.f32.mrb[100].mxu0 }
 0xf1b   : > { %4062 = vst [vmem:[%s9697_s10] sm:$0x3f] %v4056_v62  ;;  %v6577_v12 = vpop.f32.mrb[101].mxu0 }
 0xf1c   : > { %v4059_v18 = vpop.f32.mrb[102].mxu0 }
 0xf1d   : > { %v6578_v23 = vpop.f32.mrb[103].mxu0 }
 0xf22   : > { %v6603_v20 = vpop.f32.mrb[104].mxu0 }
 0xf23   : > { %4329 = vmax.xlane.f32.xlu1 %v6603_v20  ;;  %v4262_v59 = vpop.f32.mrb[105].mxu0 }
 0xf24   : > { %v6604_v7 = vpop.f32.mrb[106].mxu0 }
 0xf25   : > { %v4265_v16 = vpop.f32.mrb[107].mxu0 }
 0xf27   : > { %4325 = vmax.xlane.f32.xlu1 %v4262_v59 }
 0xf2a   : > { %v6607_v25 = vpop.f32.mrb[108].mxu0 }
 0xf2b   : > { %4331 = vmax.xlane.f32.xlu1 %v6604_v7  ;;  %v4278_v5 = vpop.f32.mrb[109].mxu0 }
 0xf2c   : > { %v9700_v13 = vpop.f32.mrb[110].mxu0 }
 0xf2d   : > { %v4281_v10 = vpop.f32.mrb[111].mxu0 }
 0xf2f   : > { %4327 = vmax.xlane.f32.xlu1 %v4265_v16 }
 0xf32   : > { %v9702_v2 = vpop.f32.mrb[112].mxu0 }
 0xf33   : > { %4337 = vmax.xlane.f32.xlu1 %v6607_v25  ;;  %v9704_v28 = vpop.f32.mrb[113].mxu0 }
 0xf34   : > { %v9706_v51 = vpop.f32.mrb[114].mxu0 }
 0xf35   : > { %4347 = vmax.xlane.f32.xlu0 %v9706_v51  ;;  %v9709_v19 = vpop.f32.mrb[115].mxu0 }
 0xf37   : > { %4333 = vmax.xlane.f32.xlu1 %v4278_v5 }
 0xf3a   : > { %v9711_v63 = vpop.f32.mrb[116].mxu0 }
 0xf3b   : > { %4339 = vmax.xlane.f32.xlu1 %v9700_v13  ;;  %v9714_v27 = vpop.f32.mrb[117].mxu0 }
 0xf3c   : > { %v9716_v30 = vpop.f32.mrb[118].mxu0 }
 0xf3d   : > { %v9718_v32 = vpop.f32.mrb[119].mxu0 }
 0xf3f   : > { %4335 = vmax.xlane.f32.xlu1 %v4281_v10 }
 0xf43   : > { %4345 = vmax.xlane.f32.xlu1 %v9702_v2 }
 0xf47   : > { %4341 = vmax.xlane.f32.xlu1 %v9704_v28 }
 0xf4b   : > { %4343 = vmax.xlane.f32.xlu1 %v9709_v19 }
 0xf4f   : > { %4353 = vmax.xlane.f32.xlu1 %v9711_v63 }
 0xf53   : > { %4349 = vmax.xlane.f32.xlu1 %v9714_v27 }
 0xf57   : > { %4351 = vmax.xlane.f32.xlu1 %v9718_v32 }
 0xf5b   : > { %4355 = vmax.xlane.f32.xlu1 %v9716_v30 }
 0xfb0   : > { %v4330_v35 = vpop.xlane.xlu1 %4329 }
 0xfb1   : > { %v4359_v36 = vsub.f32 %v6603_v20, %v4330_v35 }
 0xfb3   : > { %v4377_v38 = vmul.f32 1.442695, %v4359_v36 }
 0xfb4   : > { %v4326_v22 = vpop.xlane.xlu1 %4325 }
 0xfb5   : > { %7352 = vpow2.f32 %v4377_v38  ;;  %v4357_v39 = vsub.f32 %v4262_v59, %v4326_v22 }
 0xfb7   : > { %v4373_v24 = vmul.f32 1.442695, %v4357_v39 }
 0xfb8   : > { %v4332_v40 = vpop.xlane.xlu1 %4331 }
 0xfb9   : > { %7354 = vpow2.f32 %v4373_v24  ;;  %v4360_v26 = vsub.f32 %v6604_v7, %v4332_v40 }
 0xfbb   : > { %v4379_v41 = vmul.f32 1.442695, %v4360_v26 }
 0xfbc   : > { %v4328_v29 = vpop.xlane.xlu1 %4327 }
 0xfbd   : > { %7356 = vpow2.f32 %v4379_v41  ;;  %v4358_v34 = vsub.f32 %v4265_v16, %v4328_v29 }
 0xfbf   : > { %v9727_v48 = vpop.eup %7352  ;;  %v4375_v49 = vmul.f32 1.442695, %v4358_v34 }
 0xfc0   : > { %v4338_v53 = vpop.xlane.xlu1 %4337  ;;  %4409 = vadd.xlane.f32.xlu1 %v9727_v48 }
 0xfc1   : > { %7358 = vpow2.f32 %v4375_v49  ;;  %v4363_v55 = vsub.f32 %v6607_v25, %v4338_v53 }
 0xfc2   : > { %v4348_v8 = vpop.xlane.xlu0 %4347 }
 0xfc3   : > { %v9730_v37 = vpop.eup %7354  ;;  %v4385_v31 = vmul.f32 1.442695, %v4363_v55  ;;  %v4368_v62 = vsub.f32 %v9706_v51, %v4348_v8 }
 0xfc4   : > { %v4334_v43 = vpop.xlane.xlu1 %4333  ;;  %4405 = vadd.xlane.f32.xlu1 %v9730_v37 }
 0xfc5   : > { %7360 = vpow2.f32 %v4385_v31  ;;  %v4361_v46 = vsub.f32 %v4278_v5, %v4334_v43  ;;  %v4395_v59 = vmul.f32 1.442695, %v4368_v62 }
 0xfc7   : > { %v9733_v56 = vpop.eup %7356  ;;  %v4381_v9 = vmul.f32 1.442695, %v4361_v46 }
 0xfc8   : > { %v4340_v54 = vpop.xlane.xlu1 %4339  ;;  %4411 = vadd.xlane.f32.xlu1 %v9733_v56 }
 0xfc9   : > { %7362 = vpow2.f32 %v4381_v9  ;;  %v4364_v3 = vsub.f32 %v9700_v13, %v4340_v54 }
 0xfcb   : > { %v9736_v0 = vpop.eup %7358  ;;  %v4387_v14 = vmul.f32 1.442695, %v4364_v3 }
 0xfcc   : > { %v4336_v58 = vpop.xlane.xlu1 %4335  ;;  %4407 = vadd.xlane.f32.xlu1 %v9736_v0 }
 0xfcd   : > { %v4362_v11 = vsub.f32 %v4281_v10, %v4336_v58 }
 0xfcf   : > { %v9740_v61 = vpop.eup %7360  ;;  %v4383_v1 = vmul.f32 1.442695, %v4362_v11 }
 0xfd0   : > { %v4346_v4 = vpop.xlane.xlu1 %4345  ;;  %4417 = vadd.xlane.f32.xlu0 %v9740_v61 }
 0xfd1   : > { %7364 = vpow2.f32 %v4383_v1  ;;  %v4367_v52 = vsub.f32 %v9702_v2, %v4346_v4 }
 0xfd2   : > { %7366 = vpow2.f32 %v4387_v14 }
 0xfd3   : > { %v9743_v17 = vpop.eup %7362  ;;  %v4393_v15 = vmul.f32 1.442695, %v4367_v52 }
 0xfd4   : > { %v4342_v44 = vpop.xlane.xlu1 %4341  ;;  %4413 = vadd.xlane.f32.xlu1 %v9743_v17 }
 0xfd5   : > { %v4365_v45 = vsub.f32 %v9704_v28, %v4342_v44 }
 0xfd7   : > { %v4389_v42 = vmul.f32 1.442695, %v4365_v45 }
 0xfd8   : > { %v4344_v50 = vpop.xlane.xlu1 %4343 }
 0xfd9   : > { %7368 = vpow2.f32 %v4389_v42  ;;  %v4366_v12 = vsub.f32 %v9709_v19, %v4344_v50 }
 0xfda   : > { %7370 = vpow2.f32 %v4393_v15 }
 0xfdb   : > { %v9750_v18 = vpop.eup %7364  ;;  %v4391_v23 = vmul.f32 1.442695, %v4366_v12 }
 0xfdc   : > { %v4354_v20 = vpop.xlane.xlu1 %4353  ;;  %4415 = vadd.xlane.f32.xlu1 %v9750_v18  ;;  %v9753_v7 = vpop.eup %7366 }
 0xfdd   : > { %7372 = vpow2.f32 %v4391_v23  ;;  %v4371_v16 = vsub.f32 %v9711_v63, %v4354_v20 }
 0xfde   : > { %7374 = vpow2.f32 %v4395_v59 }
 0xfdf   : > { %v4401_v2 = vmul.f32 1.442695, %v4371_v16 }
 0xfe0   : > { %v4350_v25 = vpop.xlane.xlu1 %4349  ;;  %4419 = vadd.xlane.f32.xlu1 %v9753_v7 }
 0xfe1   : > { %v4369_v5 = vsub.f32 %v9714_v27, %v4350_v25 }
 0xfe3   : > { %v9758_v13 = vpop.eup %7368  ;;  %v4397_v10 = vmul.f32 1.442695, %v4369_v5 }
 0xfe4   : > { %4421 = vadd.xlane.f32.xlu0 %v9758_v13  ;;  %v4352_v28 = vpop.xlane.xlu1 %4351  ;;  %v9762_v19 = vpop.eup %7370 }
 0xfe5   : > { %7376 = vpow2.f32 %v4397_v10  ;;  %v4370_v51 = vsub.f32 %v9718_v32, %v4352_v28 }
 0xfe6   : > { %7378 = vpow2.f32 %v4401_v2 }
 0xfe7   : > { %v9764_v35 = vpop.eup %7372  ;;  %v4399_v63 = vmul.f32 1.442695, %v4370_v51 }
 0xfe8   : > { %4425 = vadd.xlane.f32.xlu0 %v9762_v19  ;;  %4423 = vadd.xlane.f32.xlu1 %v9764_v35  ;;  %v4356_v27 = vpop.xlane.xlu1 %4355  ;;  %v9769_v38 = vpop.eup %7374 }
 0xfe9   : > { %7380 = vpow2.f32 %v4399_v63  ;;  %v4372_v36 = vsub.f32 %v9716_v30, %v4356_v27 }
 0xfeb   : > { %v4403_v22 = vmul.f32 1.442695, %v4372_v36 }
 0xfec   : > { %4427 = vadd.xlane.f32.xlu1 %v9769_v38 }
 0xfed   : > { %7382 = vpow2.f32 %v4403_v22 }
 0xfef   : > { %v9772_v32 = vpop.eup %7376 }
 0xff0   : > { %4429 = vadd.xlane.f32.xlu0 %v9772_v32  ;;  %v9775_v39 = vpop.eup %7378 }
 0xff3   : > { %v9777_v24 = vpop.eup %7380 }
 0xff4   : > { %4433 = vadd.xlane.f32.xlu0 %v9775_v39  ;;  %4431 = vadd.xlane.f32.xlu1 %v9777_v24 }
 0xff7   : > { %v9781_v40 = vpop.eup %7382 }
 0xff8   : > { %4435 = vadd.xlane.f32.xlu1 %v9781_v40 }
0x1021   : > { %4663 = vxpose.xlu0.c.b16.start.end [1/1] (short) %v9550_v6, 128 }
0x104d   : > { %v4410_v30 = vpop.xlane.xlu1 %4409 }
0x1051   : > { %v4406_v26 = vpop.xlane.xlu1 %4405 }
0x1052   : > { %7384 = vrcp.f32 %v4406_v26 }
0x1055   : > { %v4412_v41 = vpop.xlane.xlu1 %4411 }
0x1056   : > { %7386 = vrcp.f32 %v4412_v41 }
0x1059   : > { %v4408_v29 = vpop.xlane.xlu1 %4407 }
0x105a   : > { %7388 = vrcp.f32 %v4408_v29 }
0x105b   : > { %7390 = vrcp.f32 %v4410_v30 }
0x105c   : > { %v7385_v34 = vpop.eup %7384 }
0x105d   : > { %v4453_v31 = vmul.f32 %v7385_v34, %v9730_v37  ;;  %v4418_v58 = vpop.xlane.xlu0 %4417  ;;  %v4662_v34 = vpack.c.bf16 %v9572_v21, %v9572_v21  ;;  %v7281_v21 = vld [vmem:[%s10221_s22 + $0x8] sm:$0xff]  }
0x1060   : > { %v7387_v49 = vpop.eup %7386 }
0x1061   : > { %v4414_v55 = vpop.xlane.xlu1 %4413  ;;  %v4456_v54 = vmul.f32 %v7387_v49, %v9733_v56  ;;  %v7282_v49 = vld [vmem:[%s10221_s22 + $0x10] sm:$0xff]  }
0x1062   : > { %7392 = vrcp.f32 %v4414_v55 }
0x1064   : > { %v7389_v53 = vpop.eup %7388 }
0x1065   : > { %v4454_v43 = vmul.f32 %v7389_v53, %v9736_v0  ;;  %v7391_v46 = vpop.eup %7390  ;;  %v7283_v53 = vld [vmem:[%s10221_s22 + $0x18] sm:$0xff]  }
0x1066   : > { %v4455_v11 = vmul.f32 %v7391_v46, %v9727_v48  ;;  %v7285_v46 = vld [vmem:[%s10221_s22 + $0x28] sm:$0xff]  }
0x1067   : > { %v6826_v9 = vpack.c.bf16 %v4454_v43, %v4453_v31  ;;  %v7284_v31 = vld [vmem:[%s10221_s22 + $0x20] sm:$0xff]  }
0x1068   : > { %v6829_v1 = vpack.c.bf16 %v4456_v54, %v4455_v11  ;;  %v7286_v54 = vld [vmem:[%s10221_s22 + $0x30] sm:$0xff]  }
0x1069   : > { %6827 = vmatpush3.bf16.msra.mxu0 %v6826_v9  ;;  %v4416_v3 = vpop.xlane.xlu1 %4415 }
0x106a   : > { %7394 = vrcp.f32 %v4416_v3  ;;  %6828 = vmatprep.subr.bf16.mxu0 %v8213_v60  ;;  %v9857_v3 = vpack.c.bf16 %v9475_v57, %v9475_v57 }
0x106b   : > { %7396 = vrcp.f32 %v4418_v58  ;;  %v7287_v58 = vld [vmem:[%s10221_s22 + $0x38] sm:$0xff]  }
0x106c   : > { %v7393_v0 = vpop.eup %7392 }
0x106d   : > { %6830 = vmatpush3.bf16.msra.mxu0 %v6829_v1  ;;  %v4420_v4 = vpop.xlane.xlu1 %4419  ;;  %v4457_v44 = vmul.f32 %v7393_v0, %v9743_v17 }
0x106e   : > { %7398 = vrcp.f32 %v4420_v4  ;;  %6831 = vmatprep.subr.bf16.mxu0 %v8213_v60 }
0x1071   : > { %v4422_v37 = vpop.xlane.xlu0 %4421 }
0x1072   : > { %7400 = vrcp.f32 %v4422_v37 }
0x1074   : > { %v7395_v14 = vpop.eup %7394 }
0x1075   : > { %v4426_v56 = vpop.xlane.xlu0 %4425  ;;  %v4424_v52 = vpop.xlane.xlu1 %4423  ;;  %v4458_v48 = vmul.f32 %v7395_v14, %v9750_v18 }
0x1076   : > { %v7397_v45 = vpop.eup %7396  ;;  %7402 = vrcp.f32 %v4424_v52 }
0x1077   : > { %v6832_v8 = vpack.c.bf16 %v4458_v48, %v4457_v44  ;;  %7404 = vrcp.f32 %v4426_v56  ;;  %v4459_v50 = vmul.f32 %v7397_v45, %v9740_v61 }
0x1078   : > { %v7399_v42 = vpop.eup %7398 }
0x1079   : > { %6833 = vmatpush3.bf16.msra.mxu0 %v6832_v8  ;;  %v4428_v15 = vpop.xlane.xlu1 %4427  ;;  %v4460_v62 = vmul.f32 %v7399_v42, %v9753_v7 }
0x107a   : > { %7406 = vrcp.f32 %v4428_v15  ;;  %6834 = vmatprep.subr.bf16.mxu0 %v8213_v60 }
0x107b   : > { %v6835_v12 = vpack.c.bf16 %v4460_v62, %v4459_v50 }
0x107c   : > { %v7401_v17 = vpop.eup %7400 }
0x107d   : > { %v4430_v23 = vpop.xlane.xlu0 %4429  ;;  %6836 = vmatpush3.bf16.msra.mxu0 %v6835_v12  ;;  %v4461_v25 = vmul.f32 %v7401_v17, %v9758_v13 }
0x107e   : > { %6837 = vmatprep.subr.bf16.mxu0 %v8213_v60  ;;  %7408 = vrcp.f32 %v4430_v23 }
0x1080   : > { %v7403_v18 = vpop.eup %7402 }
0x1081   : > { %v4434_v20 = vpop.xlane.xlu0 %4433  ;;  %v4432_v59 = vpop.xlane.xlu1 %4431  ;;  %v4462_v61 = vmul.f32 %v7403_v18, %v9764_v35 }
0x1082   : > { %v7405_v16 = vpop.eup %7404  ;;  %7410 = vrcp.f32 %v4432_v59 }
0x1083   : > { %7412 = vrcp.f32 %v4434_v20  ;;  %v6838_v5 = vpack.c.bf16 %v4462_v61, %v4461_v25  ;;  %v4463_v2 = vmul.f32 %v7405_v16, %v9762_v19 }
0x1084   : > { %v7407_v7 = vpop.eup %7406 }
0x1085   : > { %v4436_v10 = vpop.xlane.xlu1 %4435  ;;  %v4464_v28 = vmul.f32 %v7407_v7, %v9769_v38  ;;  %6839 = vmatpush3.bf16.msra.mxu0 %v6838_v5 }
0x1086   : > { %7414 = vrcp.f32 %v4436_v10  ;;  %6840 = vmatprep.subr.bf16.mxu0 %v8213_v60 }
0x1087   : > { %v6841_v51 = vpack.c.bf16 %v4464_v28, %v4463_v2  ;;  %v4671_v13 = vpop.trf.xlu0 }
0x1088   : > { %v7409_v63 = vpop.eup %7408 }
0x1089   : > { %6842 = vmatpush3.bf16.msra.mxu0 %v6841_v51  ;;  %v4465_v36 = vmul.f32 %v7409_v63, %v9772_v32 }
0x108a   : > { %6843 = vmatprep.subr.bf16.mxu0 %v8213_v60 }
0x108b   : > { %v4672_v41 = vpop.trf.xlu0 }
0x108c   : > { %v7411_v35 = vpop.eup %7410 }
0x108d   : > { %v7413_v27 = vpop.eup %7412  ;;  %v4466_v22 = vmul.f32 %v7411_v35, %v9777_v24  ;;  %v4704_v24 = vsel %vm2445_vm6, %v4662_v34, 0 }
0x108e   : > { %v4467_v38 = vmul.f32 %v7413_v27, %v9775_v39  ;;  %v7280_v39 = vld [vmem:[%s10221_s22] sm:$0xff]  }
0x108f   : > { %v6844_v19 = vpack.c.bf16 %v4466_v22, %v4465_v36  ;;  %v4673_v32 = vpop.trf.xlu0 }
0x1090   : > { %v7415_v30 = vpop.eup %7414 }
0x1091   : > { %v4468_v26 = vmul.f32 %v7415_v30, %v9781_v40  ;;  %6845 = vmatpush3.bf16.msra.mxu0 %v6844_v19 }
0x1092   : > { %6846 = vmatprep.subr.bf16.mxu0 %v8213_v60 }
0x1093   : > { %v6847_v29 = vpack.c.bf16 %v4468_v26, %v4467_v38  ;;  %v4674_v40 = vpop.trf.xlu0 }
0x1095   : > { %6848 = vmatpush3.bf16.msra.mxu0 %v6847_v29 }
0x1096   : > { %6907 = vmatprep.subr.msk.bf16.mxu0 %vm2445_vm6, %v4662_v34 }
0x1098   : > { %6650 = vmatmul.mubr.bf16.vlgmr.msra.gmra.mrb[120].mxu0 %v9516_v47  ;;  %v4675_v47 = vpop.trf.xlu0 }
0x1099   : > { %6674 = vmatpush3.bf16.msra.mxu0 %v4704_v24  ;;  %6675 = vmatprep.mubr.msk.bf16.mxu0 %vm3721_vm0, %v4671_v13 }
0x109a   : > { %6727 = vmatprep.subr.bf16.mxu0 %v8210_v33 }
0x109c   : > { %v4676_v55 = vpop.trf.xlu0 }
0x10a0   : > { %6676 = vmatmul.mubr.msk.bf16.vlgmr.msra.gmra.mrb[124].mxu0 %vm3721_vm0, %v4672_v41  ;;  %v4677_v43 = vpop.trf.xlu0 }
0x10a1   : > { %6728 = vmatpush3.bf16.msra.mxu0 %v7280_v39  ;;  %6679 = vmatprep.mubr.msk.bf16.mxu0 %vm3721_vm0, %v4673_v32 }
0x10a2   : > { %6729 = vmatprep.subr.bf16.mxu0 %v8210_v33 }
0x10a4   : > { %v4678_v9 = vpop.trf.xlu0 }
0x10a5   : > { %6730 = vmatpush3.bf16.msra.mxu0 %v7281_v21 }
0x10a6   : > { %6731 = vmatprep.subr.bf16.mxu0 %v8210_v33 }
0x10a8   : > { %6680 = vmatmul.mubr.msk.bf16.gmra.mrb[128].mxu0 %vm3721_vm0, %v4674_v40 }
0x10a9   : > { %6732 = vmatpush3.bf16.msra.mxu0 %v7282_v49  ;;  %6683 = vmatprep.mubr.msk.bf16.mxu0 %vm3721_vm0, %v4675_v47 }
0x10aa   : > { %6733 = vmatprep.subr.bf16.mxu0 %v8210_v33 }
0x10ad   : > { %6734 = vmatpush3.bf16.msra.mxu0 %v7283_v53 }
0x10ae   : > { %6735 = vmatprep.subr.bf16.mxu0 %v8210_v33 }
0x10b0   : > { %6684 = vmatmul.mubr.msk.bf16.gmra.mrb[132].mxu0 %vm3721_vm0, %v4676_v55 }
0x10b1   : > { %6736 = vmatpush3.bf16.msra.mxu0 %v7284_v31  ;;  %6687 = vmatprep.mubr.msk.bf16.mxu0 %vm3721_vm0, %v4677_v43 }
0x10b2   : > { %6737 = vmatprep.subr.bf16.mxu0 %v8210_v33 }
0x10b5   : > { %6738 = vmatpush3.bf16.msra.mxu0 %v7285_v46 }
0x10b6   : > { %6739 = vmatprep.subr.bf16.mxu0 %v8210_v33 }
0x10b8   : > { %6688 = vmatmul.mubr.msk.bf16.gmra.mrb[136].mxu0 %vm3721_vm0, %v4678_v9 }
0x10b9   : > { %6740 = vmatpush3.bf16.msra.mxu0 %v7286_v54  ;;  %6743 = vmatprep.mubr.msk.bf16.mxu0 %vm8211_vm3, %v8210_v33 }
0x10ba   : > { %6741 = vmatprep.subr.bf16.mxu0 %v8210_v33 }
0x10bd   : > { %6742 = vmatpush3.bf16.msra.mxu0 %v7287_v58 }
0x10be   : > { %6873 = vmatprep.subr.bf16.mxu0 %v8213_v60 }
0x10c0   : > { %6744 = vmatmul.mubr.bf16.vlgmr.msra.gmra.mrb[140].mxu0 %v9857_v3 }
0x10c1   : > { %6797 = vmatprep.mubr.msk.bf16.mxu0 %vm8211_vm3, %v8210_v33 }
0x116b   : > { %v4535_v11 = vpop.f32.mrb[120].mxu0 }
0x116c   : > { %5992 = vst [vmem:[%s9697_s10 + $0x8] sm:$0x3f] %v4535_v11  ;;  %v6651_v1 = vpop.f32.mrb[121].mxu0 }
0x116d   : > { %v4538_v4 = vpop.f32.mrb[122].mxu0 }
0x116e   : > { %v6652_v37 = vpop.f32.mrb[123].mxu0 }
0x1173   : > { %v6677_v0 = vpop.f32.mrb[124].mxu0 }
0x1174   : > { %4807 = vmax.xlane.f32.xlu1 %v6677_v0  ;;  %v4740_v14 = vpop.f32.mrb[125].mxu0 }
0x1175   : > { %v6678_v56 = vpop.f32.mrb[126].mxu0 }
0x1176   : > { %v4743_v52 = vpop.f32.mrb[127].mxu0 }
0x1178   : > { %4803 = vmax.xlane.f32.xlu1 %v4740_v14 }
0x117b   : > { %v9864_v57 = vpop.f32.mrb[128].mxu0 }
0x117c   : > { %4809 = vmax.xlane.f32.xlu1 %v6678_v56  ;;  %v4756_v44 = vpop.f32.mrb[129].mxu0 }
0x117d   : > { %v6682_v48 = vpop.f32.mrb[130].mxu0 }
0x117e   : > { %v4759_v45 = vpop.f32.mrb[131].mxu0 }
0x1180   : > { %4805 = vmax.xlane.f32.xlu1 %v4743_v52 }
0x1183   : > { %v9866_v8 = vpop.f32.mrb[132].mxu0 }
0x1184   : > { %4815 = vmax.xlane.f32.xlu1 %v9864_v57  ;;  %v9869_v33 = vpop.f32.mrb[133].mxu0 }
0x1185   : > { %v9871_v42 = vpop.f32.mrb[134].mxu0 }
0x1186   : > { %4825 = vmax.xlane.f32.xlu0 %v9871_v42  ;;  %v9874_v15 = vpop.f32.mrb[135].mxu0 }
0x1188   : > { %4811 = vmax.xlane.f32.xlu1 %v4756_v44 }
0x118b   : > { %v9876_v50 = vpop.f32.mrb[136].mxu0 }
0x118c   : > { %4817 = vmax.xlane.f32.xlu1 %v6682_v48  ;;  %v9878_v62 = vpop.f32.mrb[137].mxu0 }
0x118d   : > { %v9880_v12 = vpop.f32.mrb[138].mxu0 }
0x118e   : > { %v9882_v23 = vpop.f32.mrb[139].mxu0 }
0x1190   : > { %4813 = vmax.xlane.f32.xlu1 %v4759_v45 }
0x1193   : > { %v9884_v17 = vpop.f32.mrb[140].mxu0 }
0x1194   : > { %4823 = vmax.xlane.f32.xlu1 %v9866_v8  ;;  %v6745_v18 = vpop.f32.mrb[141].mxu0 }
0x1195   : > { %v5133_v20 = vpop.f32.mrb[142].mxu0 }
0x1196   : > { %v6746_v59 = vpop.f32.mrb[143].mxu0 }
0x1198   : > { %4819 = vmax.xlane.f32.xlu1 %v9869_v33 }
0x119c   : > { %4821 = vmax.xlane.f32.xlu1 %v9874_v15 }
0x11a0   : > { %4831 = vmax.xlane.f32.xlu1 %v9876_v50 }
0x11a4   : > { %4827 = vmax.xlane.f32.xlu1 %v9878_v62 }
0x11a8   : > { %4829 = vmax.xlane.f32.xlu1 %v9882_v23 }
0x11ac   : > { %4833 = vmax.xlane.f32.xlu1 %v9880_v12 }
0x1201   : > { %v4808_v16 = vpop.xlane.xlu1 %4807 }
0x1202   : > { %v4837_v25 = vsub.f32 %v6677_v0, %v4808_v16 }
0x1204   : > { %v4855_v61 = vmul.f32 1.442695, %v4837_v25 }
0x1205   : > { %v4804_v7 = vpop.xlane.xlu1 %4803 }
0x1206   : > { %7416 = vpow2.f32 %v4855_v61  ;;  %v4835_v5 = vsub.f32 %v4740_v14, %v4804_v7 }
0x1208   : > { %v4851_v10 = vmul.f32 1.442695, %v4835_v5 }
0x1209   : > { %v4810_v2 = vpop.xlane.xlu1 %4809 }
0x120a   : > { %7418 = vpow2.f32 %v4851_v10  ;;  %v4838_v28 = vsub.f32 %v6678_v56, %v4810_v2 }
0x120c   : > { %v4857_v51 = vmul.f32 1.442695, %v4838_v28 }
0x120d   : > { %v4806_v63 = vpop.xlane.xlu1 %4805 }
0x120e   : > { %7420 = vpow2.f32 %v4857_v51  ;;  %v4836_v13 = vsub.f32 %v4743_v52, %v4806_v63 }
0x1210   : > { %v9893_v35 = vpop.eup %7416  ;;  %v4853_v27 = vmul.f32 1.442695, %v4836_v13 }
0x1211   : > { %v4816_v36 = vpop.xlane.xlu1 %4815  ;;  %4887 = vadd.xlane.f32.xlu1 %v9893_v35 }
0x1212   : > { %7422 = vpow2.f32 %v4853_v27  ;;  %v4841_v39 = vsub.f32 %v9864_v57, %v4816_v36 }
0x1213   : > { %v4826_v46 = vpop.xlane.xlu0 %4825 }
0x1214   : > { %v9896_v22 = vpop.eup %7418  ;;  %v4863_v49 = vmul.f32 1.442695, %v4841_v39  ;;  %v4846_v1 = vsub.f32 %v9871_v42, %v4826_v46 }
0x1215   : > { %v4812_v30 = vpop.xlane.xlu1 %4811  ;;  %4883 = vadd.xlane.f32.xlu1 %v9896_v22 }
0x1216   : > { %v4839_v19 = vsub.f32 %v4756_v44, %v4812_v30  ;;  %v4873_v56 = vmul.f32 1.442695, %v4846_v1 }
0x1218   : > { %v9899_v38 = vpop.eup %7420  ;;  %v4859_v26 = vmul.f32 1.442695, %v4839_v19 }
0x1219   : > { %v4818_v41 = vpop.xlane.xlu1 %4817  ;;  %4889 = vadd.xlane.f32.xlu1 %v9899_v38 }
0x121a   : > { %7424 = vpow2.f32 %v4859_v26  ;;  %v4842_v29 = vsub.f32 %v6682_v48, %v4818_v41 }
0x121c   : > { %v9902_v34 = vpop.eup %7422  ;;  %v4865_v32 = vmul.f32 1.442695, %v4842_v29 }
0x121d   : > { %v4814_v24 = vpop.xlane.xlu1 %4813  ;;  %4885 = vadd.xlane.f32.xlu1 %v9902_v34 }
0x121e   : > { %7426 = vpow2.f32 %v4865_v32  ;;  %v4840_v40 = vsub.f32 %v4759_v45, %v4814_v24 }
0x1220   : > { %v4861_v21 = vmul.f32 1.442695, %v4840_v40 }
0x1221   : > { %v4824_v47 = vpop.xlane.xlu1 %4823 }
0x1222   : > { %7428 = vpow2.f32 %v4861_v21  ;;  %v4845_v55 = vsub.f32 %v9866_v8, %v4824_v47 }
0x1223   : > { %7430 = vpow2.f32 %v4863_v49 }
0x1224   : > { %v9906_v53 = vpop.eup %7424  ;;  %v4871_v58 = vmul.f32 1.442695, %v4845_v55 }
0x1225   : > { %v4820_v31 = vpop.xlane.xlu1 %4819  ;;  %4891 = vadd.xlane.f32.xlu1 %v9906_v53 }
0x1226   : > { %v4843_v43 = vsub.f32 %v9869_v33, %v4820_v31 }
0x1228   : > { %v9911_v9 = vpop.eup %7426  ;;  %v4867_v54 = vmul.f32 1.442695, %v4843_v43 }
0x1229   : > { %4897 = vadd.xlane.f32.xlu0 %v9911_v9  ;;  %v4822_v11 = vpop.xlane.xlu1 %4821 }
0x122a   : > { %7432 = vpow2.f32 %v4867_v54  ;;  %v4844_v4 = vsub.f32 %v9874_v15, %v4822_v11 }
0x122b   : > { %7434 = vpow2.f32 %v4871_v58 }
0x122c   : > { %v9916_v37 = vpop.eup %7428  ;;  %v4869_v0 = vmul.f32 1.442695, %v4844_v4 }
0x122d   : > { %v4832_v14 = vpop.xlane.xlu1 %4831  ;;  %4893 = vadd.xlane.f32.xlu1 %v9916_v37  ;;  %v9919_v52 = vpop.eup %7430 }
0x122e   : > { %7436 = vpow2.f32 %v4869_v0  ;;  %v4849_v57 = vsub.f32 %v9876_v50, %v4832_v14 }
0x122f   : > { %7438 = vpow2.f32 %v4873_v56 }
0x1230   : > { %v4879_v33 = vmul.f32 1.442695, %v4849_v57 }
0x1231   : > { %v4828_v44 = vpop.xlane.xlu1 %4827  ;;  %4895 = vadd.xlane.f32.xlu1 %v9919_v52 }
0x1232   : > { %v4847_v48 = vsub.f32 %v9878_v62, %v4828_v44 }
0x1234   : > { %v9924_v45 = vpop.eup %7432  ;;  %v4875_v8 = vmul.f32 1.442695, %v4847_v48 }
0x1235   : > { %4899 = vadd.xlane.f32.xlu1 %v9924_v45  ;;  %v4830_v42 = vpop.xlane.xlu1 %4829  ;;  %v9928_v18 = vpop.eup %7434 }
0x1236   : > { %7440 = vpow2.f32 %v4875_v8  ;;  %v4848_v15 = vsub.f32 %v9882_v23, %v4830_v42 }
0x1237   : > { %7442 = vpow2.f32 %v4879_v33 }
0x1238   : > { %v9930_v20 = vpop.eup %7436  ;;  %v4877_v50 = vmul.f32 1.442695, %v4848_v15 }
0x1239   : > { %4901 = vadd.xlane.f32.xlu0 %v9930_v20  ;;  %4903 = vadd.xlane.f32.xlu1 %v9928_v18  ;;  %v4834_v62 = vpop.xlane.xlu1 %4833  ;;  %v9935_v16 = vpop.eup %7438 }
0x123a   : > { %7444 = vpow2.f32 %v4877_v50  ;;  %v4850_v59 = vsub.f32 %v9880_v12, %v4834_v62 }
0x123c   : > { %v4881_v25 = vmul.f32 1.442695, %v4850_v59 }
0x123d   : > { %4905 = vadd.xlane.f32.xlu0 %v9935_v16 }
0x123e   : > { %7446 = vpow2.f32 %v4881_v25 }
0x1240   : > { %v9938_v23 = vpop.eup %7440 }
0x1241   : > { %4907 = vadd.xlane.f32.xlu1 %v9938_v23  ;;  %v9941_v61 = vpop.eup %7442 }
0x1244   : > { %v9943_v7 = vpop.eup %7444 }
0x1245   : > { %4911 = vadd.xlane.f32.xlu1 %v9941_v61  ;;  %4909 = vadd.xlane.f32.xlu0 %v9943_v7 }
0x1248   : > { %v9947_v5 = vpop.eup %7446 }
0x1249   : > { %4913 = vadd.xlane.f32.xlu0 %v9947_v5 }
0x1272   : > { %5137 = vxpose.xlu1.c.b16.start.end [1/1] (short) %v9857_v3, 128 }
0x129e   : > { %v4888_v12 = vpop.xlane.xlu1 %4887 }
0x12a2   : > { %v4884_v10 = vpop.xlane.xlu1 %4883 }
0x12a3   : > { %7448 = vrcp.f32 %v4884_v10 }
0x12a6   : > { %v4890_v2 = vpop.xlane.xlu1 %4889 }
0x12a7   : > { %7450 = vrcp.f32 %v4890_v2 }
0x12aa   : > { %v4886_v28 = vpop.xlane.xlu1 %4885 }
0x12ab   : > { %7452 = vrcp.f32 %v4886_v28 }
0x12ac   : > { %7454 = vrcp.f32 %v4888_v12 }
0x12ad   : > { %v7449_v51 = vpop.eup %7448 }
0x12ae   : > { %v4931_v36 = vmul.f32 %v7449_v51, %v9896_v22 }
0x12b1   : > { %v7451_v63 = vpop.eup %7450 }
0x12b2   : > { %v4892_v27 = vpop.xlane.xlu1 %4891  ;;  %v4934_v41 = vmul.f32 %v7451_v63, %v9899_v38 }
0x12b3   : > { %7456 = vrcp.f32 %v4892_v27 }
0x12b5   : > { %v7453_v13 = vpop.eup %7452 }
0x12b6   : > { %v4932_v30 = vmul.f32 %v7453_v13, %v9902_v34  ;;  %v7455_v19 = vpop.eup %7454  ;;  %v4898_v29 = vpop.xlane.xlu0 %4897 }
0x12b7   : > { %v4933_v24 = vmul.f32 %v7455_v19, %v9893_v35 }
0x12b8   : > { %v6850_v26 = vpack.c.bf16 %v4932_v30, %v4931_v36 }
0x12b9   : > { %v6853_v39 = vpack.c.bf16 %v4934_v41, %v4933_v24 }
0x12ba   : > { %6851 = vmatpush3.bf16.msra.mxu1 %v6850_v26  ;;  %v4894_v32 = vpop.xlane.xlu1 %4893 }
0x12bb   : > { %7458 = vrcp.f32 %v4894_v32  ;;  %6852 = vmatprep.subr.bf16.mxu1 %v8213_v60 }
0x12bc   : > { %7460 = vrcp.f32 %v4898_v29 }
0x12bd   : > { %v7457_v34 = vpop.eup %7456 }
0x12be   : > { %6854 = vmatpush3.bf16.msra.mxu1 %v6853_v39  ;;  %v4896_v40 = vpop.xlane.xlu1 %4895  ;;  %v4935_v49 = vmul.f32 %v7457_v34, %v9906_v53 }
0x12bf   : > { %7462 = vrcp.f32 %v4896_v40  ;;  %6855 = vmatprep.subr.bf16.mxu1 %v8213_v60 }
0x12c2   : > { %v4900_v22 = vpop.xlane.xlu1 %4899 }
0x12c3   : > { %7464 = vrcp.f32 %v4900_v22 }
0x12c5   : > { %v7459_v21 = vpop.eup %7458 }
0x12c6   : > { %v4902_v38 = vpop.xlane.xlu0 %4901  ;;  %v4904_v47 = vpop.xlane.xlu1 %4903  ;;  %v4936_v35 = vmul.f32 %v7459_v21, %v9916_v37 }
0x12c7   : > { %v7461_v55 = vpop.eup %7460  ;;  %7466 = vrcp.f32 %v4902_v38 }
0x12c8   : > { %v6856_v31 = vpack.c.bf16 %v4936_v35, %v4935_v49  ;;  %7468 = vrcp.f32 %v4904_v47  ;;  %v4938_v58 = vmul.f32 %v7461_v55, %v9911_v9 }
0x12c9   : > { %v7463_v43 = vpop.eup %7462 }
0x12ca   : > { %v4906_v46 = vpop.xlane.xlu0 %4905  ;;  %6857 = vmatpush3.bf16.msra.mxu1 %v6856_v31  ;;  %v4937_v54 = vmul.f32 %v7463_v43, %v9919_v52 }
0x12cb   : > { %7470 = vrcp.f32 %v4906_v46  ;;  %6858 = vmatprep.subr.bf16.mxu1 %v8213_v60 }
0x12cc   : > { %v6859_v11 = vpack.c.bf16 %v4938_v58, %v4937_v54 }
0x12cd   : > { %v7465_v53 = vpop.eup %7464 }
0x12ce   : > { %6860 = vmatpush3.bf16.msra.mxu1 %v6859_v11  ;;  %v4908_v1 = vpop.xlane.xlu1 %4907  ;;  %v4939_v14 = vmul.f32 %v7465_v53, %v9924_v45 }
0x12cf   : > { %6861 = vmatprep.subr.bf16.mxu1 %v8213_v60  ;;  %7472 = vrcp.f32 %v4908_v1 }
0x12d1   : > { %v7467_v4 = vpop.eup %7466 }
0x12d2   : > { %v4910_v37 = vpop.xlane.xlu0 %4909  ;;  %v4912_v0 = vpop.xlane.xlu1 %4911  ;;  %v4940_v56 = vmul.f32 %v7467_v4, %v9930_v20  ;;  %v6011_v20 = vld [vmem:[%s10223_s4] ss:$0 sm:$0xff] }
0x12d3   : > { %v7469_v52 = vpop.eup %7468  ;;  %7474 = vrcp.f32 %v4910_v37  ;;  %v5131_v25 = vadd.f32 %v6011_v20, %v9884_v17 }
0x12d4   : > { %v6862_v9 = vpack.c.bf16 %v4940_v56, %v4939_v14  ;;  %7476 = vrcp.f32 %v4912_v0  ;;  %v4941_v48 = vmul.f32 %v7469_v52, %v9928_v18 }
0x12d5   : > { %v7471_v57 = vpop.eup %7470  ;;  %v5136_v51 = vpack.c.bf16 %v5131_v25, %v5131_v25 }
0x12d6   : > { %v4914_v44 = vpop.xlane.xlu0 %4913  ;;  %6863 = vmatpush3.bf16.msra.mxu1 %v6862_v9  ;;  %v4942_v8 = vmul.f32 %v7471_v57, %v9935_v16 }
0x12d7   : > { %7478 = vrcp.f32 %v4914_v44  ;;  %6864 = vmatprep.subr.bf16.mxu1 %v8213_v60 }
0x12d8   : > { %v6865_v33 = vpack.c.bf16 %v4942_v8, %v4941_v48  ;;  %v5145_v45 = vpop.trf.xlu1 }
0x12d9   : > { %v7473_v42 = vpop.eup %7472 }
0x12da   : > { %6866 = vmatpush3.bf16.msra.mxu1 %v6865_v33  ;;  %v4943_v50 = vmul.f32 %v7473_v42, %v9938_v23 }
0x12db   : > { %6867 = vmatprep.subr.bf16.mxu1 %v8213_v60 }
0x12dc   : > { %v5146_v2 = vpop.trf.xlu1 }
0x12dd   : > { %v7475_v15 = vpop.eup %7474 }
0x12de   : > { %v4944_v18 = vmul.f32 %v7475_v15, %v9943_v7  ;;  %v7477_v62 = vpop.eup %7476  ;;  %v5178_v7 = vsel %vm2445_vm6, %v5136_v51, 0 }
0x12df   : > { %v4945_v12 = vmul.f32 %v7477_v62, %v9941_v61 }
0x12e0   : > { %v6868_v59 = vpack.c.bf16 %v4944_v18, %v4943_v50  ;;  %v5147_v23 = vpop.trf.xlu1 }
0x12e1   : > { %v7479_v16 = vpop.eup %7478 }
0x12e2   : > { %6869 = vmatpush3.bf16.msra.mxu1 %v6868_v59  ;;  %v4946_v10 = vmul.f32 %v7479_v16, %v9947_v5 }
0x12e3   : > { %6870 = vmatprep.subr.bf16.mxu1 %v8213_v60 }
0x12e4   : > { %v6871_v28 = vpack.c.bf16 %v4946_v10, %v4945_v12  ;;  %v5148_v17 = vpop.trf.xlu1 }
0x12e6   : > { %6872 = vmatpush3.bf16.msra.mxu1 %v6871_v28 }
0x12e7   : > { %6908 = vmatprep.subr.msk.bf16.mxu1 %vm2445_vm6, %v5136_v51 }
0x12e8   : > { %v5149_v61 = vpop.trf.xlu1 }
0x12e9   : > { %6724 = vmatmul.mubr.bf16.vlgmr.msra.gmra.mrb[96].mxu1 %v9550_v6 }
0x12ea   : > { %6748 = vmatpush3.bf16.msra.mxu1 %v5178_v7  ;;  %6749 = vmatprep.mubr.msk.bf16.mxu1 %vm3721_vm0, %v5145_v45 }
0x12ec   : > { %v5150_v5 = vpop.trf.xlu1 }
0x12f0   : > { %v5151_v63 = vpop.trf.xlu1 }
0x12f1   : > { %6750 = vmatmul.mubr.msk.bf16.vlgmr.msra.gmra.mrb[100].mxu1 %vm3721_vm0, %v5146_v2 }
0x12f2   : > { %6753 = vmatprep.mubr.msk.bf16.mxu1 %vm3721_vm0, %v5147_v23 }
0x12f4   : > { %v5152_v6 = vpop.trf.xlu1 }
0x12f9   : > { %6754 = vmatmul.mubr.msk.bf16.gmra.mrb[104].mxu1 %vm3721_vm0, %v5148_v17 }
0x12fa   : > { %6757 = vmatprep.mubr.msk.bf16.mxu1 %vm3721_vm0, %v5149_v61 }
0x1301   : > { %6758 = vmatmul.mubr.msk.bf16.gmra.mrb[108].mxu1 %vm3721_vm0, %v5150_v5 }
0x1302   : > { %6761 = vmatprep.mubr.msk.bf16.mxu1 %vm3721_vm0, %v5151_v63 }
0x1309   : > { %6762 = vmatmul.mubr.msk.bf16.gmra.mrb[112].mxu1 %vm3721_vm0, %v5152_v6 }
0x13bc   : > { %v5013_v13 = vpop.f32.mrb[96].mxu1 }
0x13bd   : > { %6010 = vst [vmem:[%s9697_s10 + $0x10] sm:$0x3f] %v5013_v13  ;;  %v6725_v27 = vpop.f32.mrb[97].mxu1 }
0x13be   : > { %v5016_v36 = vpop.f32.mrb[98].mxu1 }
0x13bf   : > { %v6726_v30 = vpop.f32.mrb[99].mxu1 }
0x13c4   : > { %v6751_v19 = vpop.f32.mrb[100].mxu1 }
0x13c5   : > { %5281 = vmax.xlane.f32.xlu0 %v6751_v19  ;;  %v5214_v26 = vpop.f32.mrb[101].mxu1 }
0x13c6   : > { %v6752_v41 = vpop.f32.mrb[102].mxu1 }
0x13c7   : > { %v5217_v29 = vpop.f32.mrb[103].mxu1 }
0x13c9   : > { %5277 = vmax.xlane.f32.xlu0 %v5214_v26 }
0x13cc   : > { %v9990_v32 = vpop.f32.mrb[104].mxu1 }
0x13cd   : > { %5283 = vmax.xlane.f32.xlu0 %v6752_v41  ;;  %v5230_v24 = vpop.f32.mrb[105].mxu1 }
0x13ce   : > { %v6756_v39 = vpop.f32.mrb[106].mxu1 }
0x13cf   : > { %v5233_v40 = vpop.f32.mrb[107].mxu1 }
0x13d1   : > { %5279 = vmax.xlane.f32.xlu0 %v5217_v29 }
0x13d4   : > { %v9992_v22 = vpop.f32.mrb[108].mxu1 }
0x13d5   : > { %5289 = vmax.xlane.f32.xlu0 %v9990_v32  ;;  %v9995_v34 = vpop.f32.mrb[109].mxu1 }
0x13d6   : > { %v9997_v21 = vpop.f32.mrb[110].mxu1 }
0x13d7   : > { %v9999_v38 = vpop.f32.mrb[111].mxu1 }
0x13d9   : > { %5285 = vmax.xlane.f32.xlu0 %v5230_v24 }
0x13dc   : > { %v10001_v47 = vpop.f32.mrb[112].mxu1 }
0x13dd   : > { %5291 = vmax.xlane.f32.xlu0 %v6756_v39  ;;  %v10003_v49 = vpop.f32.mrb[113].mxu1 }
0x13de   : > { %5301 = vmax.xlane.f32.xlu1 %v10003_v49  ;;  %v10006_v35 = vpop.f32.mrb[114].mxu1 }
0x13df   : > { %v10008_v55 = vpop.f32.mrb[115].mxu1 }
0x13e1   : > { %5287 = vmax.xlane.f32.xlu0 %v5233_v40 }
0x13e5   : > { %5297 = vmax.xlane.f32.xlu0 %v9992_v22 }
0x13e9   : > { %5293 = vmax.xlane.f32.xlu0 %v9995_v34 }
0x13ed   : > { %5299 = vmax.xlane.f32.xlu0 %v9997_v21 }
0x13f1   : > { %5295 = vmax.xlane.f32.xlu0 %v9999_v38 }
0x13f5   : > { %5305 = vmax.xlane.f32.xlu0 %v10001_v47 }
0x13f9   : > { %5303 = vmax.xlane.f32.xlu0 %v10008_v55 }
0x13fd   : > { %5307 = vmax.xlane.f32.xlu0 %v10006_v35 }
0x1452   : > { %v5282_v31 = vpop.xlane.xlu0 %5281 }
0x1453   : > { %v5311_v43 = vsub.f32 %v6751_v19, %v5282_v31 }
0x1455   : > { %v5329_v46 = vmul.f32 1.442695, %v5311_v43 }
0x1456   : > { %v5278_v54 = vpop.xlane.xlu0 %5277 }
0x1457   : > { %7480 = vpow2.f32 %v5329_v46  ;;  %v5309_v58 = vsub.f32 %v5214_v26, %v5278_v54 }
0x1459   : > { %v5325_v11 = vmul.f32 1.442695, %v5309_v58 }
0x145a   : > { %v5284_v1 = vpop.xlane.xlu0 %5283 }
0x145b   : > { %7482 = vpow2.f32 %v5325_v11  ;;  %v5312_v53 = vsub.f32 %v6752_v41, %v5284_v1 }
0x145d   : > { %v5331_v4 = vmul.f32 1.442695, %v5312_v53 }
0x145e   : > { %v5280_v37 = vpop.xlane.xlu0 %5279 }
0x145f   : > { %7484 = vpow2.f32 %v5331_v4  ;;  %v5310_v0 = vsub.f32 %v5217_v29, %v5280_v37 }
0x1461   : > { %v10017_v14 = vpop.eup %7480  ;;  %v5327_v56 = vmul.f32 1.442695, %v5310_v0 }
0x1462   : > { %v5290_v52 = vpop.xlane.xlu0 %5289  ;;  %5361 = vadd.xlane.f32.xlu0 %v10017_v14 }
0x1463   : > { %7486 = vpow2.f32 %v5327_v56  ;;  %v5315_v50 = vsub.f32 %v9990_v32, %v5290_v52 }
0x1465   : > { %v10020_v9 = vpop.eup %7482  ;;  %v5337_v16 = vmul.f32 1.442695, %v5315_v50 }
0x1466   : > { %v5286_v57 = vpop.xlane.xlu0 %5285  ;;  %5357 = vadd.xlane.f32.xlu0 %v10020_v9 }
0x1467   : > { %v5313_v44 = vsub.f32 %v5230_v24, %v5286_v57 }
0x1469   : > { %v10023_v48 = vpop.eup %7484  ;;  %v5333_v8 = vmul.f32 1.442695, %v5313_v44 }
0x146a   : > { %v5292_v33 = vpop.xlane.xlu0 %5291  ;;  %5363 = vadd.xlane.f32.xlu0 %v10023_v48 }
0x146b   : > { %7488 = vpow2.f32 %v5333_v8  ;;  %v5316_v42 = vsub.f32 %v6756_v39, %v5292_v33  ;;  %v5302_v10 = vpop.xlane.xlu1 %5301 }
0x146c   : > { %v5321_v7 = vsub.f32 %v10003_v49, %v5302_v10 }
0x146d   : > { %v10026_v45 = vpop.eup %7486  ;;  %v5339_v15 = vmul.f32 1.442695, %v5316_v42 }
0x146e   : > { %v5288_v20 = vpop.xlane.xlu0 %5287  ;;  %5359 = vadd.xlane.f32.xlu0 %v10026_v45  ;;  %v5349_v63 = vmul.f32 1.442695, %v5321_v7 }
0x146f   : > { %7490 = vpow2.f32 %v5339_v15  ;;  %v5314_v18 = vsub.f32 %v5233_v40, %v5288_v20 }
0x1471   : > { %v5335_v62 = vmul.f32 1.442695, %v5314_v18 }
0x1472   : > { %v5298_v59 = vpop.xlane.xlu0 %5297 }
0x1473   : > { %7492 = vpow2.f32 %v5335_v62  ;;  %v5319_v2 = vsub.f32 %v9992_v22, %v5298_v59 }
0x1474   : > { %7494 = vpow2.f32 %v5337_v16 }
0x1475   : > { %v10030_v25 = vpop.eup %7488  ;;  %v5345_v61 = vmul.f32 1.442695, %v5319_v2 }
0x1476   : > { %v5294_v12 = vpop.xlane.xlu0 %5293  ;;  %5365 = vadd.xlane.f32.xlu0 %v10030_v25 }
0x1477   : > { %v5317_v28 = vsub.f32 %v9995_v34, %v5294_v12 }
0x1479   : > { %v10035_v51 = vpop.eup %7490  ;;  %v5341_v23 = vmul.f32 1.442695, %v5317_v28 }
0x147a   : > { %v5300_v17 = vpop.xlane.xlu0 %5299  ;;  %5371 = vadd.xlane.f32.xlu1 %v10035_v51 }
0x147b   : > { %7496 = vpow2.f32 %v5341_v23  ;;  %v5320_v6 = vsub.f32 %v9997_v21, %v5300_v17 }
0x147c   : > { %7498 = vpow2.f32 %v5345_v61 }
0x147d   : > { %v10039_v5 = vpop.eup %7492  ;;  %7500 = vpow2.f32 %v5349_v63  ;;  %v5347_v19 = vmul.f32 1.442695, %v5320_v6 }
0x147e   : > { %v5296_v13 = vpop.xlane.xlu0 %5295  ;;  %5367 = vadd.xlane.f32.xlu0 %v10039_v5  ;;  %v10044_v36 = vpop.eup %7494 }
0x147f   : > { %v5318_v27 = vsub.f32 %v9999_v38, %v5296_v13 }
0x1481   : > { %v5343_v30 = vmul.f32 1.442695, %v5318_v27 }
0x1482   : > { %v5306_v26 = vpop.xlane.xlu0 %5305  ;;  %5369 = vadd.xlane.f32.xlu0 %v10044_v36 }
0x1483   : > { %7502 = vpow2.f32 %v5343_v30  ;;  %v5323_v41 = vsub.f32 %v10001_v47, %v5306_v26 }
0x1484   : > { %7504 = vpow2.f32 %v5347_v19 }
0x1485   : > { %v10048_v29 = vpop.eup %7496  ;;  %v5353_v32 = vmul.f32 1.442695, %v5323_v41 }
0x1486   : > { %5373 = vadd.xlane.f32.xlu0 %v10048_v29  ;;  %v5304_v24 = vpop.xlane.xlu0 %5303  ;;  %v10052_v40 = vpop.eup %7498 }
0x1487   : > { %7506 = vpow2.f32 %v5353_v32  ;;  %v5322_v39 = vsub.f32 %v10008_v55, %v5304_v24  ;;  %v10056_v38 = vpop.eup %7500 }
0x1489   : > { %v5351_v22 = vmul.f32 1.442695, %v5322_v39 }
0x148a   : > { %5377 = vadd.xlane.f32.xlu0 %v10052_v40  ;;  %v5308_v34 = vpop.xlane.xlu0 %5307 }
0x148b   : > { %7508 = vpow2.f32 %v5351_v22  ;;  %v5324_v21 = vsub.f32 %v10006_v35, %v5308_v34 }
0x148d   : > { %v10058_v47 = vpop.eup %7502  ;;  %v5355_v49 = vmul.f32 1.442695, %v5324_v21 }
0x148e   : > { %5375 = vadd.xlane.f32.xlu1 %v10058_v47  ;;  %5381 = vadd.xlane.f32.xlu0 %v10056_v38  ;;  %v10062_v55 = vpop.eup %7504 }
0x148f   : > { %7510 = vpow2.f32 %v5355_v49 }
0x1491   : > { %v10064_v31 = vpop.eup %7506 }
0x1492   : > { %5379 = vadd.xlane.f32.xlu1 %v10062_v55  ;;  %5385 = vadd.xlane.f32.xlu0 %v10064_v31 }
0x1495   : > { %v10068_v43 = vpop.eup %7508 }
0x1496   : > { %5383 = vadd.xlane.f32.xlu1 %v10068_v43 }
0x1499   : > { %v10071_v35 = vpop.eup %7510 }
0x149a   : > { %5387 = vadd.xlane.f32.xlu1 %v10071_v35 }
0x14ef   : > { %v5362_v46 = vpop.xlane.xlu0 %5361 }
0x14f3   : > { %v5358_v54 = vpop.xlane.xlu0 %5357 }
0x14f4   : > { %7512 = vrcp.f32 %v5358_v54 }
0x14f7   : > { %v5364_v58 = vpop.xlane.xlu0 %5363 }
0x14f8   : > { %7514 = vrcp.f32 %v5364_v58 }
0x14fb   : > { %v5360_v11 = vpop.xlane.xlu0 %5359 }
0x14fc   : > { %7516 = vrcp.f32 %v5360_v11 }
0x14fd   : > { %7518 = vrcp.f32 %v5362_v46 }
0x14fe   : > { %v7513_v1 = vpop.eup %7512 }
0x14ff   : > { %v5405_v0 = vmul.f32 %v7513_v1, %v10020_v9 }
0x1502   : > { %v7515_v53 = vpop.eup %7514 }
0x1503   : > { %v5366_v37 = vpop.xlane.xlu0 %5365  ;;  %v5408_v44 = vmul.f32 %v7515_v53, %v10023_v48 }
0x1504   : > { %7520 = vrcp.f32 %v5366_v37 }
0x1506   : > { %v7517_v4 = vpop.eup %7516 }
0x1507   : > { %v5406_v56 = vmul.f32 %v7517_v4, %v10026_v45  ;;  %v7519_v52 = vpop.eup %7518  ;;  %v5372_v8 = vpop.xlane.xlu1 %5371 }
0x1508   : > { %v5407_v42 = vmul.f32 %v7519_v52, %v10017_v14 }
0x1509   : > { %v6874_v57 = vpack.c.bf16 %v5406_v56, %v5405_v0 }
0x150a   : > { %v6877_v15 = vpack.c.bf16 %v5408_v44, %v5407_v42 }
0x150b   : > { %6875 = vmatpush3.bf16.msra.mxu0 %v6874_v57  ;;  %v5368_v33 = vpop.xlane.xlu0 %5367 }
0x150c   : > { %7522 = vrcp.f32 %v5368_v33  ;;  %6876 = vmatprep.subr.bf16.mxu0 %v8213_v60 }
0x150d   : > { %7524 = vrcp.f32 %v5372_v8 }
0x150e   : > { %v7521_v45 = vpop.eup %7520 }
0x150f   : > { %6878 = vmatpush3.bf16.msra.mxu0 %v6877_v15  ;;  %v5370_v20 = vpop.xlane.xlu0 %5369  ;;  %v5409_v18 = vmul.f32 %v7521_v45, %v10030_v25 }
0x1510   : > { %7526 = vrcp.f32 %v5370_v20  ;;  %6879 = vmatprep.subr.bf16.mxu0 %v8213_v60 }
0x1513   : > { %v5374_v9 = vpop.xlane.xlu0 %5373 }
0x1514   : > { %7528 = vrcp.f32 %v5374_v9 }
0x1516   : > { %v7523_v50 = vpop.eup %7522 }
0x1517   : > { %v5378_v48 = vpop.xlane.xlu0 %5377  ;;  %v5410_v62 = vmul.f32 %v7523_v50, %v10039_v5  ;;  %v7525_v59 = vpop.eup %7524 }
0x1518   : > { %v5412_v2 = vmul.f32 %v7525_v59, %v10035_v51 }
0x1519   : > { %v6880_v14 = vpack.c.bf16 %v5410_v62, %v5409_v18 }
0x151a   : > { %v7527_v16 = vpop.eup %7526 }
0x151b   : > { %v5376_v12 = vpop.xlane.xlu1 %5375  ;;  %6881 = vmatpush3.bf16.msra.mxu0 %v6880_v14  ;;  %v5411_v10 = vmul.f32 %v7527_v16, %v10044_v36  ;;  %v5382_v28 = vpop.xlane.xlu0 %5381 }
0x151c   : > { %7530 = vrcp.f32 %v5376_v12  ;;  %6882 = vmatprep.subr.bf16.mxu0 %v8213_v60 }
0x151d   : > { %v6883_v23 = vpack.c.bf16 %v5412_v2, %v5411_v10  ;;  %7532 = vrcp.f32 %v5378_v48 }
0x151e   : > { %v7529_v61 = vpop.eup %7528 }
0x151f   : > { %v5380_v7 = vpop.xlane.xlu1 %5379  ;;  %6884 = vmatpush3.bf16.msra.mxu0 %v6883_v23  ;;  %v5386_v25 = vpop.xlane.xlu0 %5385  ;;  %v5413_v51 = vmul.f32 %v7529_v61, %v10048_v29 }
0x1520   : > { %7534 = vrcp.f32 %v5380_v7  ;;  %6885 = vmatprep.subr.bf16.mxu0 %v8213_v60 }
0x1521   : > { %7536 = vrcp.f32 %v5382_v28 }
0x1523   : > { %v5384_v17 = vpop.xlane.xlu1 %5383 }
0x1524   : > { %7538 = vrcp.f32 %v5384_v17 }
0x1525   : > { %7540 = vrcp.f32 %v5386_v25 }
0x1526   : > { %v7531_v5 = vpop.eup %7530 }
0x1527   : > { %v5388_v63 = vpop.xlane.xlu1 %5387  ;;  %v5414_v6 = vmul.f32 %v7531_v5, %v10058_v47  ;;  %v7533_v13 = vpop.eup %7532 }
0x1528   : > { %7542 = vrcp.f32 %v5388_v63  ;;  %v5415_v30 = vmul.f32 %v7533_v13, %v10052_v40 }
0x1529   : > { %v6886_v27 = vpack.c.bf16 %v5414_v6, %v5413_v51 }
0x152a   : > { %v7535_v36 = vpop.eup %7534 }
0x152b   : > { %6887 = vmatpush3.bf16.msra.mxu0 %v6886_v27  ;;  %v5416_v19 = vmul.f32 %v7535_v36, %v10062_v55  ;;  %v7537_v26 = vpop.eup %7536 }
0x152c   : > { %6888 = vmatprep.subr.bf16.mxu0 %v8213_v60  ;;  %v5417_v29 = vmul.f32 %v7537_v26, %v10056_v38 }
0x152d   : > { %v6889_v41 = vpack.c.bf16 %v5416_v19, %v5415_v30 }
0x152e   : > { %v7539_v32 = vpop.eup %7538 }
0x152f   : > { %6890 = vmatpush3.bf16.msra.mxu0 %v6889_v41  ;;  %v5418_v24 = vmul.f32 %v7539_v32, %v10068_v43  ;;  %v7541_v39 = vpop.eup %7540 }
0x1530   : > { %6891 = vmatprep.subr.bf16.mxu0 %v8213_v60  ;;  %v5419_v40 = vmul.f32 %v7541_v39, %v10064_v31 }
0x1531   : > { %v6892_v22 = vpack.c.bf16 %v5418_v24, %v5417_v29 }
0x1532   : > { %v7543_v34 = vpop.eup %7542 }
0x1533   : > { %6893 = vmatpush3.bf16.msra.mxu0 %v6892_v22  ;;  %v5420_v21 = vmul.f32 %v7543_v34, %v10071_v35 }
0x1534   : > { %6894 = vmatprep.subr.bf16.mxu0 %v8213_v60 }
0x1535   : > { %v6895_v47 = vpack.c.bf16 %v5420_v21, %v5419_v40 }
0x1537   : > { %6896 = vmatpush3.bf16.msra.mxu0 %v6895_v47 }
0x153a   : > { %6798 = vmatmul.mubr.bf16.vlgmr.msra.gmra.mrb[144].mxu0 %v9857_v3 }
0x160d   : > { %v5487_v49 = vpop.f32.mrb[144].mxu0 }
0x160e   : > { %6028 = vst [vmem:[%s9697_s10 + $0x18] sm:$0x3f] %v5487_v49  ;;  %v6799_v38 = vpop.f32.mrb[145].mxu0 }
0x160f   : > { %v5490_v55 = vpop.f32.mrb[146].mxu0 }
0x1610   : > { %v6800_v43 = vpop.f32.mrb[147].mxu0 }
0x1611 PF: > { %p45_p5 = scmp.ge.s32.totalorder %s8778_s7, 4   ;;  %s10226_s29 = smov %s8174_s2 }
0x1612   : > { %s10227_s2 = smov %s8178_s6  ;;  %s10228_s6 = smov %s8789_s1 }
0x1613   : > { %s10229_s30 = smov %s8778_s7  ;;  %47 = sbr.rel (!%p45_p5) target bundleno = 33 (0x21), region = 242 }
0x161a   :  { %5517 = vsyncpa [#allocation3], 1 }
0x161b   :  { %5519 = vsyncpa [#allocation3 + $0x1], 1 }
0x161c   :  { %5520 = vsyncpa [#allocation5], 1 }
0x161d   :  { %5521 = vsyncpa [#allocation8], 1 }
0x161e   :  { %5522 = vsyncpa [#allocation11], 1 }
0x161f   :  { %5523 = vsyncpa [#allocation14], 1 }
0x1620   :  { %5524 = vsyncpa [#allocation17], 1 }
0x1621   :  { %5525 = vsyncpa [#allocation20], 1 }
0x1622   :  { %5526 = vsyncpa [#allocation23], 1 }
0x1623   :  { %5527 = vsyncpa [#allocation26], 1 }
0x1624   :  { %5528 = vsyncpa [#allocation29], 1 }
0x1625   :  { %5529 = vsyncpa [#allocation32], 1 }

</bundles_post_ra>
